<compile_context>
chip_gen: v7x
topology: tpu7x:2x2x1
jax: 0.10.0
libtpu: 0.0.40
codegen_flags: <defaults>
</compile_context>

<pallas_src>
import functools
import math

import jax
import jax.numpy as jnp
from jax.experimental import pallas as pl
from jax.experimental.pallas import tpu as pltpu


# -----------------------------------------------------------------------------
# Kernel: one (group, batch, H-tile, cout-tile) block.
#   lhs[f32->bf16] = im2col of the input slab          (th*wo, k*k*cig)
#   acc[f32]       = lhs @ W                           (single MXU matmul)
#   out            = relu(acc * scale + shift)
# -----------------------------------------------------------------------------
def _conv_bn_relu_kernel(x_ref, w_ref, st_ref, o_ref, *, k, stride, th, wo,
                         has_relu):
    # x_ref : (tin, wp, cig)   bf16   input slab, tin = (th-1)*stride + k rows
    # w_ref : (k*k*cig, tn)    bf16   tap-major flattened weights
    # st_ref: (2, tn)          f32    fused scale / shift (conv bias + BN)
    # o_ref : (th*wo, tn)             flattened-spatial output tile
    taps = []
    if stride == 1:
        for kh in range(k):
            for kw in range(k):
                xt = x_ref[kh:kh + th, kw:kw + wo, :]          # targeted load
                taps.append(xt.reshape(th * wo, xt.shape[-1]))
    else:
        # strided taps: load the slab once and slice the value (proven path)
        xs = x_ref[...]
        for kh in range(k):
            for kw in range(k):
                xt = xs[kh:kh + (th - 1) * stride + 1:stride,
                        kw:kw + (wo - 1) * stride + 1:stride, :]
                taps.append(xt.reshape(th * wo, xt.shape[-1]))
    lhs = taps[0] if len(taps) == 1 else jnp.concatenate(taps, axis=-1)

    acc = jnp.dot(lhs, w_ref[...], preferred_element_type=jnp.float32)

    st = st_ref[...]
    y = acc * st[0:1, :] + st[1:2, :]
    if has_relu:
        y = jnp.maximum(y, 0.0)
    o_ref[...] = y.astype(o_ref.dtype)


# -----------------------------------------------------------------------------
# Wrapper: NCHW in / NCHW out.
# -----------------------------------------------------------------------------
def conv_bn_relu(x_nchw, weight, bias, bn_params, *, stride=1, padding=0,
                 groups=1, has_bn=True, has_relu=True, eps=1e-5,
                 max_tile_bytes=None):
    n, cin, h, w = x_nchw.shape
    cout, cig, k, k2 = weight.shape          # PyTorch layout (Cout, Cin/g, K, K)
    assert k == k2 and cig * groups == cin and cout % groups == 0
    cog = cout // groups
    kk = k * k
    out_dtype = x_nchw.dtype
    out_isz = jnp.dtype(out_dtype).itemsize

    ho = (h + 2 * padding - k) // stride + 1
    wo = (w + 2 * padding - k) // stride + 1
    assert ho >= 1 and wo >= 1
    wp = w + 2 * padding

    # ---- generation-aware VMEM budget --------------------------------------
    try:
        vmem_cap = int(getattr(pltpu.get_tpu_info(), "vmem_capacity_bytes",
                               128 << 20))
    except Exception:
        vmem_cap = 128 << 20
    # ~96 MiB on 128-MiB parts (v5e/v6e), ~48 MiB on 64-MiB parts (v7x).
    vmem_limit = int(min(100 << 20, (vmem_cap * 3) // 4))
    tile_budget = (vmem_limit * 3) // 5
    if max_tile_bytes is not None:
        tile_budget = min(tile_budget, int(max_tile_bytes))

    # ---- cout tiling (lane-dense 128/256) -----------------------------------
    cogp = -(-cog // 128) * 128
    tn = 256 if (cogp % 256 == 0 and vmem_cap >= (96 << 20)) else 128
    ct = cogp // tn

    # ---- H tiling ------------------------------------------------------------
    def tin_of(th_):
        return (th_ - 1) * stride + k

    def ws_bytes(th_, tn_):
        m = th_ * wo
        x_blk = tin_of(th_) * wp * cig * 2          # bf16 slab
        w_blk = kk * cig * tn_ * 2                  # bf16 weights
        o_blk = m * tn_ * out_isz
        lhs = m * kk * cig * 2                      # im2col LHS (bf16)
        acc = m * tn_ * 4                           # f32 matmul result
        return 2 * (x_blk + w_blk + o_blk) + lhs + acc + 4 * tn_ * 4

    q = 8 // math.gcd(wo, 8)       # th granularity keeping th*wo % 8 == 0
    if ws_bytes(ho, tn) <= tile_budget:
        th = ho                    # primary path: whole output height, no halo
    else:
        th = max(q, (max(1, 512 // wo) // q) * q)
        while th > q and ws_bytes(th, tn) > tile_budget:
            th -= q
        if th >= ho:
            th = ho
    ht = -(-ho // th)

    # v7x has 2 TensorCores: make sure the parallel grid has >= 2 iterations.
    if groups * n * ct * ht < 2:
        th2 = (((ho + 1) // 2) + q - 1) // q * q
        if 0 < th2 < ho:
            th = th2
            ht = -(-ho // th)

    ts = th * stride
    tin = tin_of(th)
    hp = max(h + 2 * padding, (ht - 1) * ts + tin)

    # ---- input: NCHW -> (G, N, ht, tin, wp, cig), zero-padded, bf16 ----------
    xb = jnp.transpose(x_nchw, (0, 2, 3, 1)).astype(jnp.bfloat16)
    xb = jnp.pad(xb, ((0, 0), (padding, hp - h - padding),
                      (padding, padding), (0, 0)))
    xg = jnp.transpose(xb.reshape(n, hp, wp, groups, cig), (3, 0, 1, 2, 4))
    if ht == 1:
        xt = xg[:, :, None, :tin]                        # no halo, no gather
    else:
        # overlapping row windows (halo) gathered once in HBM by XLA
        idx = jnp.arange(ht)[:, None] * ts + jnp.arange(tin)[None, :]
        xt = jnp.take(xg, idx, axis=2)                   # (G, N, ht, tin, wp, cig)

    # ---- weights: (Cout, cig, K, K) -> (G, kk*cig, cogp) bf16 -----------------
    wg = weight.reshape(groups, cog, cig, k, k)
    wg = jnp.transpose(wg, (0, 3, 4, 2, 1)).reshape(groups, kk * cig, cog)
    wg = jnp.pad(wg, ((0, 0), (0, 0), (0, cogp - cog))).astype(jnp.bfloat16)

    # ---- fold conv bias + inference BN into one (G, 2, cogp) f32 array -------
    if bias is None:
        bias = jnp.zeros((cout,), jnp.float32)
    bias = bias.astype(jnp.float32)
    if has_bn:
        gamma, beta, rmean, rvar = bn_params
        s = gamma.astype(jnp.float32) * jax.lax.rsqrt(rvar.astype(jnp.float32) + eps)
        t = (bias - rmean.astype(jnp.float32)) * s + beta.astype(jnp.float32)
    else:
        s = jnp.ones((cout,), jnp.float32)
        t = bias
    st = jnp.stack([s.reshape(groups, cog), t.reshape(groups, cog)], axis=1)
    st = jnp.pad(st, ((0, 0), (0, 0), (0, cogp - cog)))

    # ---- BlockSpecs: cout tile is the innermost grid axis so the activation
    #      slab block index is unchanged across it (stays VMEM-resident).
    x_spec = pl.BlockSpec((None, None, None, tin, wp, cig),
                          lambda g, b, i, c: (g, b, i, 0, 0, 0))
    w_spec = pl.BlockSpec((None, kk * cig, tn), lambda g, b, i, c: (g, 0, c))
    st_spec = pl.BlockSpec((None, 2, tn), lambda g, b, i, c: (g, 0, c))
    o_spec = pl.BlockSpec((None, None, None, th * wo, tn),
                          lambda g, b, i, c: (g, b, i, 0, c))

    kernel = functools.partial(_conv_bn_relu_kernel, k=k, stride=stride,
                               th=th, wo=wo, has_relu=has_relu)

    out = pl.pallas_call(
        kernel,
        out_shape=jax.ShapeDtypeStruct((groups, n, ht, th * wo, cogp), out_dtype),
        grid_spec=pltpu.PrefetchScalarGridSpec(
            num_scalar_prefetch=0,
            grid=(groups, n, ht, ct),
            in_specs=[x_spec, w_spec, st_spec],
            out_specs=o_spec),
        compiler_params=pltpu.CompilerParams(
            dimension_semantics=("parallel",) * 4,
            vmem_limit_bytes=vmem_limit),
    )(xt, wg, st)

    # (G, N, ht, th*wo, cogp) -> NCHW
    out = out.reshape(groups, n, ht * th, wo, cogp)[:, :, :ho, :, :cog]
    out = jnp.transpose(out, (1, 0, 4, 2, 3)).reshape(n, cout, ho, wo)
    return out


# -----------------------------------------------------------------------------
# Pure-JAX reference for correctness.
# -----------------------------------------------------------------------------
def conv_bn_relu_ref(x, weight, bias, bn_params, *, stride, padding, groups,
                     has_bn, has_relu, eps=1e-5):
    y = jax.lax.conv_general_dilated(
        x, weight, window_strides=(stride, stride),
        padding=[(padding, padding), (padding, padding)],
        dimension_numbers=("NCHW", "OIHW", "NCHW"),
        feature_group_count=groups)
    if bias is not None:
        y = y + bias[None, :, None, None]
    if has_bn:
        gamma, beta, rmean, rvar = bn_params
        y = (y - rmean[None, :, None, None]) / jnp.sqrt(rvar[None, :, None, None] + eps)
        y = y * gamma[None, :, None, None] + beta[None, :, None, None]
    if has_relu:
        y = jnp.maximum(y, 0.0)
    return y


def _run_case(name, seed, *, N, CIN, H, W, COUT, K, STRIDE, PAD, GROUPS,
              HAS_BN, HAS_RELU, max_tile_bytes=None):
    key = jax.random.PRNGKey(seed)
    kx, kw_, kb, kg, kbe, km, kv = jax.random.split(key, 7)
    x = jax.random.normal(kx, (N, CIN, H, W), jnp.float32)
    weight = 0.01 * jax.random.normal(kw_, (COUT, CIN // GROUPS, K, K), jnp.float32)
    bias = 0.1 * jax.random.normal(kb, (COUT,), jnp.float32)
    gamma = 1.0 + 0.1 * jax.random.normal(kg, (COUT,), jnp.float32)
    beta = 0.1 * jax.random.normal(kbe, (COUT,), jnp.float32)
    rmean = 0.05 * jax.random.normal(km, (COUT,), jnp.float32)
    rvar = jax.random.uniform(kv, (COUT,), jnp.float32, 0.5, 1.5)
    bn_params = (gamma, beta, rmean, rvar)
    # TODO(synk): SyncBN cross-device statistics sync (training mode) has no
    # single-kernel equivalent; inference-mode BN (running stats) is fused.

    out = conv_bn_relu(x, weight, bias, bn_params, stride=STRIDE, padding=PAD,
                       groups=GROUPS, has_bn=HAS_BN, has_relu=HAS_RELU,
                       max_tile_bytes=max_tile_bytes)
    out = jax.block_until_ready(out)
    ref = conv_bn_relu_ref(x, weight, bias, bn_params, stride=STRIDE,
                           padding=PAD, groups=GROUPS, has_bn=HAS_BN,
                           has_relu=HAS_RELU)
    assert out.shape == ref.shape, (name, out.shape, ref.shape)
    err = float(jnp.max(jnp.abs(out - ref)))
    # bf16 matmul operands (f32 accumulation) -> relaxed tolerance vs f32 ref.
    assert jnp.allclose(out, ref, rtol=2e-2, atol=2e-2), (name, err)


if __name__ == "__main__":
    # Main config (matches the original self-test shapes).
    _run_case("3x3_s1_bn_relu", 0, N=2, CIN=16, H=16, W=16, COUT=32, K=3,
              STRIDE=1, PAD=1, GROUPS=1, HAS_BN=True, HAS_RELU=True)
    # Stride-2 conv (strided-tap path + auto H-split for 2-core parallelism).
    _run_case("3x3_s2", 1, N=1, CIN=16, H=16, W=16, COUT=64, K=3,
              STRIDE=2, PAD=1, GROUPS=1, HAS_BN=True, HAS_RELU=True)
    # Grouped conv, Wo not a multiple of 8, no BN.
    _run_case("3x3_groups2_nobn", 2, N=1, CIN=16, H=14, W=14, COUT=32, K=3,
              STRIDE=1, PAD=1, GROUPS=2, HAS_BN=False, HAS_RELU=True)
    # 1x1 conv, no padding, no ReLU.
    _run_case("1x1", 3, N=1, CIN=32, H=8, W=8, COUT=64, K=1,
              STRIDE=1, PAD=0, GROUPS=1, HAS_BN=True, HAS_RELU=False)
    # Force the H-tiled (halo-gather) fallback path with a small tile budget.
    _run_case("3x3_htile_halo", 4, N=1, CIN=16, H=16, W=16, COUT=32, K=3,
              STRIDE=1, PAD=1, GROUPS=1, HAS_BN=True, HAS_RELU=True,
              max_tile_bytes=300_000)
    print("KERNEL_OK")
</pallas_src>

<mosaic_0001>
module attributes {stable_mosaic.version = 11 : i64} {
  func.func @_conv_bn_relu_kernel(%arg0: i32, %arg1: i32, %arg2: i32, %arg3: i32, %arg4: memref<1x1x1x18x18x16xbf16, #tpu.memory_space<vmem>>, %arg5: memref<1x144x128xbf16, #tpu.memory_space<vmem>>, %arg6: memref<1x2x128xf32, #tpu.memory_space<vmem>>, %arg7: memref<1x1x1x256x128xf32, #tpu.memory_space<vmem>>) attributes {dimension_semantics = [#tpu.dimension_semantics<parallel>, #tpu.dimension_semantics<parallel>, #tpu.dimension_semantics<parallel>, #tpu.dimension_semantics<parallel>], iteration_bounds = array<i64: 1, 2, 1, 1>, scalar_prefetch = 0 : i64, scratch_operands = 0 : i64, tpu.core_type = #tpu.core_type<tc>, window_params = [{transform_indices = @transform_0, window_bounds = array<i64: 1, 1, 1, 18, 18, 16>}, {transform_indices = @transform_1, window_bounds = array<i64: 1, 144, 128>}, {transform_indices = @transform_2, window_bounds = array<i64: 1, 2, 128>}, {transform_indices = @transform_3, window_bounds = array<i64: 1, 1, 1, 256, 128>}]} {
    %c0 = arith.constant 0 : index
    %c0_0 = arith.constant 0 : index
    %c0_1 = arith.constant 0 : index
    %c0_2 = arith.constant 0 : index
    %c0_3 = arith.constant 0 : index
    %c0_4 = arith.constant 0 : index
    %0 = vector.load %arg4[%c0, %c0_0, %c0_1, %c0_2, %c0_3, %c0_4] : memref<1x1x1x18x18x16xbf16, #tpu.memory_space<vmem>>, vector<1x1x1x16x16x16xbf16>
    %1 = vector.shape_cast %0 : vector<1x1x1x16x16x16xbf16> to vector<16x16x16xbf16>
    %2 = vector.shape_cast %1 : vector<16x16x16xbf16> to vector<256x16xbf16>
    %c0_5 = arith.constant 0 : index
    %c0_6 = arith.constant 0 : index
    %c0_7 = arith.constant 0 : index
    %c0_8 = arith.constant 0 : index
    %c1 = arith.constant 1 : index
    %c0_9 = arith.constant 0 : index
    %3 = vector.load %arg4[%c0_5, %c0_6, %c0_7, %c0_8, %c1, %c0_9] : memref<1x1x1x18x18x16xbf16, #tpu.memory_space<vmem>>, vector<1x1x1x16x16x16xbf16>
    %4 = vector.shape_cast %3 : vector<1x1x1x16x16x16xbf16> to vector<16x16x16xbf16>
    %5 = vector.shape_cast %4 : vector<16x16x16xbf16> to vector<256x16xbf16>
    %c0_10 = arith.constant 0 : index
    %c0_11 = arith.constant 0 : index
    %c0_12 = arith.constant 0 : index
    %c0_13 = arith.constant 0 : index
    %c2 = arith.constant 2 : index
    %c0_14 = arith.constant 0 : index
    %6 = vector.load %arg4[%c0_10, %c0_11, %c0_12, %c0_13, %c2, %c0_14] : memref<1x1x1x18x18x16xbf16, #tpu.memory_space<vmem>>, vector<1x1x1x16x16x16xbf16>
    %7 = vector.shape_cast %6 : vector<1x1x1x16x16x16xbf16> to vector<16x16x16xbf16>
    %8 = vector.shape_cast %7 : vector<16x16x16xbf16> to vector<256x16xbf16>
    %c0_15 = arith.constant 0 : index
    %c0_16 = arith.constant 0 : index
    %c0_17 = arith.constant 0 : index
    %c1_18 = arith.constant 1 : index
    %c0_19 = arith.constant 0 : index
    %c0_20 = arith.constant 0 : index
    %9 = vector.load %arg4[%c0_15, %c0_16, %c0_17, %c1_18, %c0_19, %c0_20] : memref<1x1x1x18x18x16xbf16, #tpu.memory_space<vmem>>, vector<1x1x1x16x16x16xbf16>
    %10 = vector.shape_cast %9 : vector<1x1x1x16x16x16xbf16> to vector<16x16x16xbf16>
    %11 = vector.shape_cast %10 : vector<16x16x16xbf16> to vector<256x16xbf16>
    %c0_21 = arith.constant 0 : index
    %c0_22 = arith.constant 0 : index
    %c0_23 = arith.constant 0 : index
    %c1_24 = arith.constant 1 : index
    %c1_25 = arith.constant 1 : index
    %c0_26 = arith.constant 0 : index
    %12 = vector.load %arg4[%c0_21, %c0_22, %c0_23, %c1_24, %c1_25, %c0_26] : memref<1x1x1x18x18x16xbf16, #tpu.memory_space<vmem>>, vector<1x1x1x16x16x16xbf16>
    %13 = vector.shape_cast %12 : vector<1x1x1x16x16x16xbf16> to vector<16x16x16xbf16>
    %14 = vector.shape_cast %13 : vector<16x16x16xbf16> to vector<256x16xbf16>
    %c0_27 = arith.constant 0 : index
    %c0_28 = arith.constant 0 : index
    %c0_29 = arith.constant 0 : index
    %c1_30 = arith.constant 1 : index
    %c2_31 = arith.constant 2 : index
    %c0_32 = arith.constant 0 : index
    %15 = vector.load %arg4[%c0_27, %c0_28, %c0_29, %c1_30, %c2_31, %c0_32] : memref<1x1x1x18x18x16xbf16, #tpu.memory_space<vmem>>, vector<1x1x1x16x16x16xbf16>
    %16 = vector.shape_cast %15 : vector<1x1x1x16x16x16xbf16> to vector<16x16x16xbf16>
    %17 = vector.shape_cast %16 : vector<16x16x16xbf16> to vector<256x16xbf16>
    %c0_33 = arith.constant 0 : index
    %c0_34 = arith.constant 0 : index
    %c0_35 = arith.constant 0 : index
    %c2_36 = arith.constant 2 : index
    %c0_37 = arith.constant 0 : index
    %c0_38 = arith.constant 0 : index
    %18 = vector.load %arg4[%c0_33, %c0_34, %c0_35, %c2_36, %c0_37, %c0_38] : memref<1x1x1x18x18x16xbf16, #tpu.memory_space<vmem>>, vector<1x1x1x16x16x16xbf16>
    %19 = vector.shape_cast %18 : vector<1x1x1x16x16x16xbf16> to vector<16x16x16xbf16>
    %20 = vector.shape_cast %19 : vector<16x16x16xbf16> to vector<256x16xbf16>
    %c0_39 = arith.constant 0 : index
    %c0_40 = arith.constant 0 : index
    %c0_41 = arith.constant 0 : index
    %c2_42 = arith.constant 2 : index
    %c1_43 = arith.constant 1 : index
    %c0_44 = arith.constant 0 : index
    %21 = vector.load %arg4[%c0_39, %c0_40, %c0_41, %c2_42, %c1_43, %c0_44] : memref<1x1x1x18x18x16xbf16, #tpu.memory_space<vmem>>, vector<1x1x1x16x16x16xbf16>
    %22 = vector.shape_cast %21 : vector<1x1x1x16x16x16xbf16> to vector<16x16x16xbf16>
    %23 = vector.shape_cast %22 : vector<16x16x16xbf16> to vector<256x16xbf16>
    %c0_45 = arith.constant 0 : index
    %c0_46 = arith.constant 0 : index
    %c0_47 = arith.constant 0 : index
    %c2_48 = arith.constant 2 : index
    %c2_49 = arith.constant 2 : index
    %c0_50 = arith.constant 0 : index
    %24 = vector.load %arg4[%c0_45, %c0_46, %c0_47, %c2_48, %c2_49, %c0_50] : memref<1x1x1x18x18x16xbf16, #tpu.memory_space<vmem>>, vector<1x1x1x16x16x16xbf16>
    %25 = vector.shape_cast %24 : vector<1x1x1x16x16x16xbf16> to vector<16x16x16xbf16>
    %26 = vector.shape_cast %25 : vector<16x16x16xbf16> to vector<256x16xbf16>
    %27 = tpu.concatenate %2, %5, %8, %11, %14, %17, %20, %23, %26 in 1 : vector<256x16xbf16>, vector<256x16xbf16>, vector<256x16xbf16>, vector<256x16xbf16>, vector<256x16xbf16>, vector<256x16xbf16>, vector<256x16xbf16>, vector<256x16xbf16>, vector<256x16xbf16> -> vector<256x144xbf16>
    %c0_51 = arith.constant 0 : index
    %c0_52 = arith.constant 0 : index
    %c0_53 = arith.constant 0 : index
    %28 = vector.load %arg5[%c0_51, %c0_52, %c0_53] : memref<1x144x128xbf16, #tpu.memory_space<vmem>>, vector<1x144x128xbf16>
    %29 = vector.shape_cast %28 : vector<1x144x128xbf16> to vector<144x128xbf16>
    %cst = arith.constant dense<0.000000e+00> : vector<256x128xf32>
    %30 = tpu.matmul %27, %29, %cst {dimension_numbers = #tpu.dot_dimension_numbers<[1], [0], [0], [1], [0, 0, 1, 1], [], []>} : vector<256x144xbf16>, vector<144x128xbf16>, vector<256x128xf32> -> vector<256x128xf32>
    %c0_54 = arith.constant 0 : index
    %c0_55 = arith.constant 0 : index
    %c0_56 = arith.constant 0 : index
    %31 = vector.load %arg6[%c0_54, %c0_55, %c0_56] : memref<1x2x128xf32, #tpu.memory_space<vmem>>, vector<1x2x128xf32>
    %32 = vector.shape_cast %31 : vector<1x2x128xf32> to vector<2x128xf32>
    %33 = vector.extract_strided_slice %32 {offsets = [0, 0], sizes = [1, 128], strides = [1, 1]} : vector<2x128xf32> to vector<1x128xf32>
    %34 = vector.broadcast %33 : vector<1x128xf32> to vector<256x128xf32>
    %35 = arith.mulf %30, %34 : vector<256x128xf32>
    %36 = vector.extract_strided_slice %32 {offsets = [1, 0], sizes = [1, 128], strides = [1, 1]} : vector<2x128xf32> to vector<1x128xf32>
    %37 = vector.broadcast %36 : vector<1x128xf32> to vector<256x128xf32>
    %38 = arith.addf %35, %37 : vector<256x128xf32>
    %cst_57 = arith.constant 0.000000e+00 : f32
    %39 = vector.broadcast %cst_57 : f32 to vector<256x128xf32>
    %40 = arith.maximumf %38, %39 : vector<256x128xf32>
    %c0_58 = arith.constant 0 : index
    %c0_59 = arith.constant 0 : index
    %c0_60 = arith.constant 0 : index
    %c0_61 = arith.constant 0 : index
    %c0_62 = arith.constant 0 : index
    %41 = vector.load %arg7[%c0_58, %c0_59, %c0_60, %c0_61, %c0_62] : memref<1x1x1x256x128xf32, #tpu.memory_space<vmem>>, vector<1x1x1x256x128xf32>
    %42 = vector.shape_cast %41 : vector<1x1x1x256x128xf32> to vector<256x128xf32>
    %43 = vector.shape_cast %40 : vector<256x128xf32> to vector<1x1x1x256x128xf32>
    tpu.vector_store %arg7[%c0_58, %c0_59, %c0_60, %c0_61, %c0_62], %43 {strides = array<i32>} : memref<1x1x1x256x128xf32, #tpu.memory_space<vmem>>, vector<1x1x1x256x128xf32>,
    return
  }
  func.func @transform_0(%arg0: i32, %arg1: i32, %arg2: i32, %arg3: i32) -> (i32, i32, i32, i32, i32, i32) {
    %c0_i32 = arith.constant 0 : i32
    %c0_i32_0 = arith.constant 0 : i32
    %c0_i32_1 = arith.constant 0 : i32
    %c0_i32_2 = arith.constant 0 : i32
    return %arg0, %arg1, %arg2, %c0_i32, %c0_i32_0, %c0_i32_1 : i32, i32, i32, i32, i32, i32
  }
  func.func @transform_1(%arg0: i32, %arg1: i32, %arg2: i32, %arg3: i32) -> (i32, i32, i32) {
    %c0_i32 = arith.constant 0 : i32
    %c0_i32_0 = arith.constant 0 : i32
    return %arg0, %c0_i32, %arg3 : i32, i32, i32
  }
  func.func @transform_2(%arg0: i32, %arg1: i32, %arg2: i32, %arg3: i32) -> (i32, i32, i32) {
    %c0_i32 = arith.constant 0 : i32
    %c0_i32_0 = arith.constant 0 : i32
    return %arg0, %c0_i32, %arg3 : i32, i32, i32
  }
  func.func @transform_3(%arg0: i32, %arg1: i32, %arg2: i32, %arg3: i32) -> (i32, i32, i32, i32, i32) {
    %c0_i32 = arith.constant 0 : i32
    %c0_i32_0 = arith.constant 0 : i32
    return %arg0, %arg1, %arg2, %c0_i32, %arg3 : i32, i32, i32, i32, i32
  }
}

</mosaic_0001>

<bundles_post_ra>
// kernel: tpu_custom_call.1
= control target key start
LH: loop header
LB: loop body
LE: loop exit
PB: predicated region body
PF: predicated region fallthrough
CT: control target
= control target key end

     0   :  { %8 = vsyncpa [#allocation3], 0  ;;  %s6400_s0 = inlined_call_operand.hbm [shape: bf16[1,2,1,18,18,16], index: 0, kind: input, shape index: {}]   ;;  %s6401_s1 = inlined_call_operand.hbm [shape: bf16[1,144,128], index: 1, kind: input, shape index: {}]   ;;  %s6402_s2 = inlined_call_operand.hbm [shape: f32[1,2,128], index: 2, kind: input, shape index: {}]   ;;  %s6403_s3 = inlined_call_operand.hbm [shape: f32[1,2,1,256,128], index: 3, kind: output, shape index: {}]  }
   0x1   :  { %10 = vsyncpa [#allocation3 + $0x1], 0 }
   0x2   :  { %11 = vsyncpa [#allocation6], 0 }
   0x3   :  { %12 = vsyncpa [#allocation4], 0 }
   0x4   :  { %14 = vsyncpa [#allocation4 + $0x1], 0  ;;  %s4415_s12 = smov 0   ;;  %s4417_s13 = smov 0  }
   0x5   :  { %s4419_s14 = smov 0   ;;  %s4421_s15 = smov 0  }
   0x6   :  { %s4423_s16 = smov 0   ;;  %s4425_s17 = smov 0  }
   0x7 LB: > { %s3638_s18 = sadd.s32 4294967295, %s4377_s17   ;;  %s3639_s19 = sadd.s32 4294967294, %s4377_s17   ;;  %s4377_s17 = sphi %s4425_s17, %s20_s17   ;;  %s4373_s16 = sphi %s4423_s16, %s6463_s16   ;;  %s4369_s15 = sphi %s4421_s15, %s6462_s15   ;;  %s4365_s14 = sphi %s4419_s14, %s6461_s14   ;;  %s4361_s13 = sphi %s4417_s13, %s6460_s13   ;;  %s4357_s12 = sphi %s4415_s12, %s6459_s12  }
   0x8   : > { %p70_p0 = scmp.ne.s32.totalorder %s4361_s13, %s4357_s12  ;;  %p4449_p1 = scmp.eq.s32.totalorder %s3638_s18, 0 }
   0x9   : > { %p4453_p2 = scmp.eq.s32.totalorder %s3638_s18, 1  ;;  %p162_p3 = scmp.eq.s32.totalorder %s3639_s19, 1 }
   0xa   : > { %s6412_s20 = scalar_select %p4449_p1, 1, 0 }
   0xb   : > { %p4459_p4 = por %p4449_p1, %p70_p0  ;;  %p3640_p5 = scmp.ge.s32.totalorder %s4377_s17, 1 }
   0xc   : > { %p4464_p6 = por %p162_p3, %p70_p0  ;;  %p169_p7 = scmp.lt.s32.totalorder %s4377_s17, 3 }
   0xd   : > { %s6414_s22 = scalar_select %p4459_p4, 1, 0 }
   0xe   : > { %s6415_s23 = scalar_select %p4464_p6, 1, 0 }
   0xf   : > { %p4469_p8 = pnand %p3640_p5, %p169_p7  ;;  %s4379_s25 = smov [#allocation5]  }
  0x10   : > { %s185_s26 = sshll.u32 %s4379_s25, 4  ;;  %s4380_s28 = smov [#allocation7]   ;;  %s4473_s26 = int_to_ptr.vmem [resolvable:$true] %s185_s26 }
  0x11   : > { %p4033_p9 = pneg %p4469_p8  ;;  %s202_s29 = sshll.u32 %s4380_s28, 4  ;;  %s4484_s29 = int_to_ptr.vmem [resolvable:$true] %s202_s29 }
  0x12   : > { %s4205_s5 = scalar_lea.hbm %s6401_s1, 1152 }
  0x13   : > { %p4480_p11 = pnand %p4033_p9, %p4449_p1  ;;  %p4206_p12 = scmp.ne.s32.totalorder %s6401_s1, %s4205_s5 }
  0x14   : > { %p4212_p5 = scmp.lt.u32.totalorder %s4205_s5, %s6401_s1 }
  0x15   : > { %p4207_p13 = pneg %p4480_p11 }
  0x17   : > { %p4208_p0 = pnand %p4207_p13, %p4206_p12 }
  0x19   : > { %p4209_p3 = pneg %p4208_p0 }
  0x1b   : > { %p4214_p7 = pnand %p4212_p5, %p4209_p3 }
  0x1d   : > { %4217 = shalt.err (!%p4214_p7)
}
  0x1e   : > { %s4218_s10 = scalar_lea.vmem %s4473_s26, 1152  ;;  %p4226_p1 = scmp.lt.s32.totalorder %s4473_s26, %s4473_s26 }
  0x1f   : > { %p4219_p9 = scmp.ne.s32.totalorder %s4473_s26, %s4218_s10  ;;  %p4227_p12 = scmp.lt.s32.totalorder %s4218_s10, %s4218_s10 }
  0x21   : > { %p4221_p10 = pnand %p4219_p9, %p4207_p13  ;;  %p4228_p0 = por %p4227_p12, %p4226_p1 }
  0x23   : > { %p4222_p6 = pneg %p4221_p10 }
  0x25   : > { %p4229_p4 = pnand %p4228_p0, %p4222_p6 }
  0x27   : > { %4232 = shalt.err (!%p4229_p4)
}
  0x28   : > { %s4381_s11 = smov 64   ;;  %s4382_s18 = smov 4  }
  0x29   : > { %4036 = dma.hbm_to_vmem [thread:$0]  (!%p4480_p11), %s6401_s1, 1152, %s4473_s26, [#allocation6], %s4381_s11, %s4381_s11, %s4382_s18  }
  0x2a   : > { %s4233_s4 = scalar_lea.hbm %s6402_s2, 32 }
  0x2b   : > { %p4234_p1 = scmp.ne.s32.totalorder %s6402_s2, %s4233_s4  ;;  %p4240_p10 = scmp.lt.u32.totalorder %s4233_s4, %s6402_s2 }
  0x2d   : > { %p4236_p4 = pnand %p4234_p1, %p4207_p13 }
  0x2f   : > { %p4237_p6 = pneg %p4236_p4 }
  0x31   : > { %p4242_p3 = pnand %p4240_p10, %p4237_p6 }
  0x33   : > { %4245 = shalt.err (!%p4242_p3)
}
  0x34   : > { %s4246_s26 = scalar_lea.vmem %s4484_s29, 32  ;;  %p4254_p12 = scmp.lt.s32.totalorder %s4484_s29, %s4484_s29 }
  0x35   : > { %p4247_p5 = scmp.ne.s32.totalorder %s4484_s29, %s4246_s26  ;;  %p4255_p0 = scmp.lt.s32.totalorder %s4246_s26, %s4246_s26 }
  0x37   : > { %p4249_p7 = pnand %p4247_p5, %p4207_p13  ;;  %p4256_p1 = por %p4255_p0, %p4254_p12 }
  0x39   : > { %p4250_p9 = pneg %p4249_p7 }
  0x3b   : > { %p4257_p4 = pnand %p4256_p1, %p4250_p9 }
  0x3d   : > { %4260 = shalt.err (!%p4257_p4)
}
  0x3e   : > { %4039 = dma.hbm_to_vmem [thread:$0]  (!%p4480_p11), %s6402_s2, 32, %s4484_s29, [#allocation6]  }
  0x3f   : > { %s42_s19 = sadd.s32 1, %s4373_s16  ;;  %s57_s25 = sadd.s32 1, %s4365_s14 }
  0x40   : > { %p44_p13 = scmp.ge.s32.totalorder %s42_s19, 2  ;;  %p64_p6 = scmp.ne.s32.totalorder %s4365_s14, %s4361_s13 }
  0x41   : > { %p65_p10 = scmp.eq.s32.totalorder %s4377_s17, 0  ;;  %p4050_p3 = scmp.lt.s32.totalorder %s4377_s17, 2 }
  0x42   : > { %s6465_s19 = smov (%p44_p13, %s42_s19), 0  ;;  %p4551_p7 = por %p4453_p2, %p64_p6 }
  0x43   : > { %p66_p5 = por %p65_p10, %p64_p6  ;;  %s51_s28 = ssub.s32 %s4373_s16, %s6465_s19 }
  0x44   : > { %s6418_s27 = scalar_select %p4551_p7, 1, 0 }
  0x45   : > { %s213_s30 = sand.u32 1, %s4365_s14   ;;  %p55_p9 = scmp.eq.s32.totalorder %s51_s28, 0 }
  0x46   : > { %s4018_s29 = smul.u32 216, %s213_s30  ;;  %p4558_p11 = pnand %p4050_p3, %p66_p5 }
  0x47   : > { %s4563_s5 = scalar_select %p55_p9, %s4365_s14, %s57_s25  }
  0x48   : > { %s4019_s6 = smul.u32 3456, %s4373_s16  ;;  %s217_s7 = scalar_lea.vmem [#allocation2], %s4018_s29 }
  0x49   : > { %s228_s8 = sshll.u32 %s217_s7, 4  ;;  %s4573_s10 = scalar_lea.sflag [#allocation3], %s213_s30  ;;  %s4571_s8 = int_to_ptr.vmem [resolvable:$true] %s228_s8 }
  0x4a   : > { %s4569_s9 = scalar_lea.hbm %s6400_s0, %s4019_s6  ;;  %p4263_p12 = pneg %p4558_p11 }
  0x4b   : > { %s4261_s28 = scalar_lea.hbm %s4569_s9, 3456  ;;  %s4266_s6 = scalar_lea.hbm %s6400_s0, 6912 }
  0x4c   : > { %p4262_p2 = scmp.ne.s32.totalorder %s4569_s9, %s4261_s28  ;;  %p4267_p4 = scmp.lt.u32.totalorder %s4569_s9, %s6400_s0 }
  0x4d   : > { %p4268_p13 = scmp.lt.u32.totalorder %s4266_s6, %s4261_s28  ;;  %p4270_p10 = scmp.lt.u32.totalorder %s4261_s28, %s4569_s9 }
  0x4e   : > { %p4264_p0 = pnand %p4263_p12, %p4262_p2 }
  0x4f   : > { %p4269_p6 = por %p4268_p13, %p4267_p4 }
  0x50   : > { %p4265_p1 = pneg %p4264_p0 }
  0x51   : > { %p4271_p3 = por %p4270_p10, %p4269_p6 }
  0x53   : > { %p4272_p5 = pnand %p4271_p3, %p4265_p1 }
  0x55   : > { %4275 = shalt.err (!%p4272_p5)
}
  0x56   : > { %s4276_s30 = scalar_lea.vmem %s4571_s8, 3456  ;;  %s4383_s26 = smov [#allocation2]  }
  0x57   : > { %p4277_p9 = scmp.ne.s32.totalorder %s4571_s8, %s4276_s30  ;;  %s4281_s25 = sshll.u32 %s4383_s26, 4  ;;  %s4282_s25 = int_to_ptr.vmem [resolvable:$false] %s4281_s25 }
  0x58   : > { %s4283_s29 = scalar_lea.vmem %s4282_s25, 6912  ;;  %p4284_p7 = scmp.lt.s32.totalorder %s4571_s8, %s4282_s25 }
  0x59   : > { %p4279_p2 = pnand %p4277_p9, %p4263_p12  ;;  %p4285_p4 = scmp.lt.s32.totalorder %s4283_s29, %s4276_s30 }
  0x5b   : > { %p4280_p0 = pneg %p4279_p2  ;;  %p4286_p13 = por %p4285_p4, %p4284_p7 }
  0x5d   : > { %p4287_p6 = pnand %p4286_p13, %p4280_p0 }
  0x5f   : > { %4290 = shalt.err (!%p4287_p6)
}
  0x60   : > { %4043 = dma.hbm_to_vmem [thread:$0]  (!%p4558_p11), %s4569_s9, 3456, %s4571_s8, %s4573_s10, %s4381_s11, %s4381_s11, %s4382_s18  }
  0x61   : > { %240 = sbr.rel (%p4469_p8) target bundleno = 769 (0x301), region = 32 }
  0x68   : > { %s4607_s28 = sand.u32 1, %s4361_s13   ;;  %p6420_p7 = scmp.ne.s32.totalorder %s6414_s22, 0 }
  0x69   : > { %s4020_s6 = smul.u32 216, %s4607_s28  ;;  %s243_s7 = scalar_lea.sflag [#allocation3], %s4607_s28 }
  0x6b   : > { %s4611_s21 = scalar_lea.vmem [#allocation2], %s4020_s6 }
  0x6c   : > { %4344 = dma.done.wait (%p6420_p7), %s243_s7, 3456  }
  0x6d   : > { %4346 = vsyncadd (%p6420_p7), %s243_s7, 4294963840  ;;  %p6421_p11 = scmp.ne.s32.totalorder %s6412_s20, 0 }
  0x6f   : > { %4348 = dma.done.wait (%p6421_p11), [#allocation6], 1184  }
  0x70   : > { %4350 = vsyncadd (%p6421_p11), [#allocation6], 4294966112  ;;  %vm777_vm0 = vcmask 1042432   ;;  %vm778_vm1 = vcmask 1046532   ;;  %v3681_v0 = vld [vmem:[%s4611_s21 + $0x6c] sm:$0xf] }
  0x71   : > { %v4623_v1 = vld [vmem:[%s4611_s21 + $0x70] sm:$0xf]  ;;  %v3665_v2 = vld [vmem:[%s4611_s21 + $0xc] sm:$0xf]  ;;  %v1134_v6 = vshrl.u32 %v3681_v0, 16  ;;  %v1137_v8 = vshll.u32 %v3681_v0, 16  ;;  %vm4643_vm2 = vmor %vm777_vm0, %vm778_vm1 }
  0x72   : > { %v1143_v3 = vshll.u32 %v4623_v1, 16  ;;  %v1147_v4 = vshrl.u32 %v4623_v1, 16  ;;  %v3881_v5 = vcombine.low %v3681_v0, %v4623_v1  ;;  %v4630_v7 = vld [vmem:[%s4611_s21 + $0x10] sm:$0xf]  ;;  %v4636_v12 = vld [vmem:[%s4611_s21 + $0x14] sm:$0x1] }
  0x73   : > { %v951_v9 = vshll.u32 %v4630_v7, 16  ;;  %v955_v10 = vshrl.u32 %v4630_v7, 16  ;;  %v3873_v11 = vcombine.low %v3665_v2, %v4630_v7  ;;  %s4384_s20 = smov 48   ;;  %v1136_v14 = vrot.slane %v1134_v6, 4  ;;  %v3713_v18 = vld [vmem:[%s4611_s21 + $0xc] sm:$0xe] }
  0x74   : > { %v4638_v13 = vrot.slane %v1147_v4, 4  ;;  %2414 = vrot.lane.b32.xlu1 %v3881_v5, %s4384_s20  ;;  %v942_v15 = vshrl.u32 %v3665_v2, 16  ;;  %v945_v16 = vshll.u32 %v3665_v2, 16  ;;  %v1139_v19 = vrot.slane %v1137_v8, 5  ;;  %v279_v23 = vld [vmem:[%s4611_s21 + $0x4] sm:$0xf] }
  0x75   : > { %v4648_v20 = vrot.slane %v955_v10, 4  ;;  %2398 = vrot.lane.b32.xlu0 %v3873_v11, %s4384_s20  ;;  %v3729_v21 = vrot.slane %v3713_v18, 9  ;;  %v1391_v22 = vrot.slane %v4630_v7, 5  ;;  %v1394_v26 = vrot.slane %v4636_v12, 5  ;;  %v310_v27 = vld [vmem:[%s4611_s21 + $0x8] sm:$0x1] }
  0x76   : > { %v944_v24 = vrot.slane %v942_v15, 4  ;;  %v947_v25 = vrot.slane %v945_v16, 5  ;;  %v782_v28 = vrot.slane %v279_v23, 5  ;;  %vm326_vm3 = vsmask.f32 3328  ;;  %s4385_s22 = smov 80  }
  0x77   : > { %vm327_vm4 = vsmask.f32 7440  ;;  %v1140_v29 = vor.u32 %v1139_v19, %v1136_v14  ;;  %v1392_v30 = vsel %vm4643_vm2, %v3729_v21, %v1391_v22  ;;  %v1393_v31 = vrot.slane %v1391_v22, 4  ;;  %v713_v32 = vld [vmem:[%s4611_s21] sm:$0xe]  ;;  %s4386_s24 = smov 32  }
  0x78   : > { %v785_v33 = vrot.slane %v310_v27, 5  ;;  %v295_v34 = vld [vmem:[%s4611_s21 + $0x64] sm:$0xf]  ;;  %v948_v35 = vor.u32 %v947_v25, %v944_v24  ;;  %v3649_v36 = vrot.slane %v713_v32, 9  ;;  %v784_v37 = vrot.slane %v782_v28, 4  ;;  %vm4687_vm5 = vmor %vm326_vm3, %vm327_vm4  ;;  %s4387_s11 = smov 16  }
  0x79   : > { %v318_v38 = vld [vmem:[%s4611_s21 + $0x68] sm:$0x1]  ;;  %v721_v39 = vld [vmem:[%s4611_s21 + $0x60] sm:$0xe]  ;;  %v4661_v40 = vrot.slane %v1140_v29, 4  ;;  %v1395_v41 = vsel %vm4643_vm2, %v1393_v31, %v1394_v26  ;;  %v838_v43 = vrot.slane %v295_v34, 5 }
  0x7a   : > { %v3657_v42 = vrot.slane %v721_v39, 9  ;;  %v278_v44 = vld [vmem:[%s4611_s21] sm:$0xf]  ;;  %v4666_v45 = vrot.slane %v948_v35, 4  ;;  %v3905_v46 = vcombine.low %v1392_v30, %v1395_v41  ;;  %v783_v47 = vsel %vm4643_vm2, %v3649_v36, %v782_v28  ;;  %v3721_v49 = vld [vmem:[%s4611_s21 + $0x6c] sm:$0xe] }
  0x7b   : > { %v786_v48 = vsel %vm4643_vm2, %v784_v37, %v785_v33  ;;  %v840_v52 = vrot.slane %v838_v43, 4  ;;  %v841_v53 = vrot.slane %v318_v38, 5  ;;  %v330_v54 = vshrl.u32 %v278_v44, 16  ;;  %v3705_v58 = vld [vmem:[%s4611_s21 + $0x74] sm:$0x1]  ;;  %s4388_s18 = smov 64  }
  0x7c   : > { %v3857_v50 = vcombine.low %v783_v47, %v786_v48  ;;  %v839_v51 = vsel %vm4643_vm2, %v3657_v42, %v838_v43  ;;  %2558 = vrot.lane.b32.xlu0 %v3905_v46, %s4385_s22  ;;  %v333_v55 = vshll.u32 %v278_v44, 16  ;;  %v339_v56 = vshll.u32 %v279_v23, 16  ;;  %v294_v63 = vld [vmem:[%s4611_s21 + $0x60] sm:$0xf]  ;;  %v3761_v42 = vld [vmem:[%s4611_s21 + $0x78] sm:$0xf] }
  0x7d   : > { %v343_v57 = vshrl.u32 %v279_v23, 16  ;;  %v842_v59 = vsel %vm4643_vm2, %v840_v52, %v841_v53  ;;  %v349_v60 = vshll.u32 %v310_v27, 16  ;;  %v3737_v61 = vrot.slane %v3721_v49, 9  ;;  %s4389_s4 = smov 96   ;;  %s4390_s8 = smov 112  }
  0x7e   : > { %2302 = vrot.lane.b32.xlu1 %v3857_v50, %s4386_s24  ;;  %v1447_v62 = vrot.slane %v4623_v1, 5  ;;  %v3865_v0 = vcombine.low %v839_v51, %v842_v59  ;;  %v332_v2 = vrot.slane %v330_v54, 4  ;;  %v335_v4 = vrot.slane %v333_v55, 5  ;;  %v3745_v51 = vld [vmem:[%s4611_s21 + $0x18] sm:$0xf]  ;;  %s3648_s9 = sshll.u32 %s4607_s28, 8 }
  0x7f   : > { %v341_v5 = vrot.slane %v339_v56, 5  ;;  %v345_v6 = vrot.slane %v343_v57, 4  ;;  %v351_v8 = vrot.slane %v349_v60, 5  ;;  %v1450_v15 = vrot.slane %v3705_v58, 5  ;;  %s6234_s10 = scalar_lea.vmem [#allocation8], %s3648_s9  ;;  %s3999_s30 = sshll.u32 %s4369_s15, 12 }
  0x80   : > { %v1448_v10 = vsel %vm4643_vm2, %v3737_v61, %v1447_v62  ;;  %v1449_v11 = vrot.slane %v1447_v62, 4  ;;  %v336_v14 = vor.u32 %v335_v4, %v332_v2  ;;  %v522_v16 = vshrl.u32 %v294_v63, 16  ;;  %v3785_v62 = vld [vmem:[%s4611_s21 + $0x80] sm:$0x1]  ;;  %s3514_s26 = sshll.u32 %s6234_s10, 4  ;;  %s6346_s6 = scalar_lea.hbm %s6403_s3, %s3999_s30  ;;  %s6348_s26 = int_to_ptr.vmem [resolvable:$true] %s3514_s26 }
  0x81   : > { %v525_v18 = vshll.u32 %v294_v63, 16  ;;  %v346_v21 = vor.u32 %v345_v6, %v341_v5  ;;  %v531_v22 = vshll.u32 %v295_v34, 16  ;;  %v535_v23 = vshrl.u32 %v295_v34, 16  ;;  %s3496_s15 = scalar_lea.sflag [#allocation4], %s4607_s28  ;;  %s4291_s7 = scalar_lea.vmem %s6348_s26, 4096 }
  0x82   : > { %2318 = vrot.lane.b32.xlu1 %v3865_v0, %s4386_s24  ;;  %v541_v24 = vshll.u32 %v318_v38, 16  ;;  %v337_v25 = vrot.slane %v336_v14, 4  ;;  %v1451_v26 = vsel %vm4643_vm2, %v1449_v11, %v1450_v15  ;;  %v524_v27 = vrot.slane %v522_v16, 4  ;;  %v296_v14 = vld [vmem:[%s4611_s21 + $0x6c] sm:$0xf]  ;;  %p4292_p8 = scmp.ne.s32.totalorder %s6348_s26, %s4291_s7  ;;  %p6456_p12 = scmp.ne.s32.totalorder %s6418_s27, 0 }
  0x83   : > { %v527_v28 = vrot.slane %v525_v18, 5  ;;  %v347_v29 = vrot.slane %v346_v21, 4  ;;  %v3913_v30 = vcombine.low %v1448_v10, %v1451_v26  ;;  %v533_v31 = vrot.slane %v531_v22, 5  ;;  %v297_v26 = vld [vmem:[%s4611_s21 + $0x70] sm:$0xf] }
  0x84   : > { %v537_v32 = vrot.slane %v535_v23, 4  ;;  %v342_v33 = vsel %vm4687_vm5, %v337_v25, %v341_v5  ;;  %v543_v36 = vrot.slane %v541_v24, 5  ;;  %v1145_v34 = vrot.slane %v1143_v3, 5  ;;  %v3762_v3 = vld [vmem:[%s4611_s21 + $0x7c] sm:$0xf]  ;;  %p4293_p1 = pnand %p4292_p8, %p6456_p12 }
  0x85   : > { %v528_v35 = vor.u32 %v527_v28, %v524_v27  ;;  %v352_v37 = vsel %vm4687_vm5, %v347_v29, %v351_v8  ;;  %v1153_v39 = vshll.u32 %v3705_v58, 16  ;;  %v953_v41 = vrot.slane %v951_v9, 5  ;;  %v3777_v5 = vld [vmem:[%s4611_s21 + $0x20] sm:$0x1] }
  0x86   : > { %2574 = vrot.lane.b32.xlu1 %v3913_v30, %s4385_s22  ;;  %v538_v38 = vor.u32 %v537_v32, %v533_v31  ;;  %v3841_v43 = vcombine.low %v342_v33, %v352_v37  ;;  %v1146_v46 = vsel %vm4687_vm5, %v4661_v40, %v1145_v34  ;;  %v1150_v1 = vor.u32 %v4638_v13, %v1145_v34  ;;  %v4732_v30 = vld [vmem:[%s4611_s21 + $0x74] sm:$0x1]  ;;  %v280_v34 = vld [vmem:[%s4611_s21 + $0xc] sm:$0xf]  ;;  %p4294_p10 = pneg %p4293_p1 }
  0x87   : > { %v529_v44 = vrot.slane %v528_v35, 4  ;;  %v1155_v48 = vrot.slane %v1153_v39, 5  ;;  %v954_v49 = vsel %vm4687_vm5, %v4666_v45, %v953_v41  ;;  %v958_v7 = vor.u32 %v4648_v20, %v953_v41  ;;  %v3746_v20 = vld [vmem:[%s4611_s21 + $0x1c] sm:$0xf] }
  0x88   : > { %v539_v47 = vrot.slane %v538_v38, 4  ;;  %2222 = vrot.lane.b32.xlu0 %v3841_v43, %s4387_s11  ;;  %v1151_v50 = vrot.slane %v1150_v1, 4  ;;  %v961_v40 = vshll.u32 %v4636_v12, 16  ;;  %v1743_v13 = vshrl.u32 %v3761_v42, 16 }
  0x89   : > { %v534_v9 = vsel %vm4687_vm5, %v529_v44, %v533_v31  ;;  %v959_v53 = vrot.slane %v958_v7, 4  ;;  %v1746_v54 = vshll.u32 %v3761_v42, 16  ;;  %v1756_v45 = vshrl.u32 %v3762_v3, 16 }
  0x8a   : > { %v544_v52 = vsel %vm4687_vm5, %v539_v47, %v543_v36  ;;  %v1156_v56 = vsel %vm4687_vm5, %v1151_v50, %v1155_v48  ;;  %v963_v57 = vrot.slane %v961_v40, 5  ;;  %v1745_v58 = vrot.slane %v1743_v13, 4  ;;  %v281_v48 = vld [vmem:[%s4611_s21 + $0x10] sm:$0xf]  ;;  %v311_v13 = vld [vmem:[%s4611_s21 + $0x14] sm:$0x1] }
  0x8b   : > { %v3849_v55 = vcombine.low %v534_v9, %v544_v52  ;;  %v3897_v59 = vcombine.low %v1146_v46, %v1156_v56  ;;  %v1748_v60 = vrot.slane %v1746_v54, 5  ;;  %v3929_v12 = vcombine.low %v3761_v42, %v3762_v3 }
  0x8c   : > { %v1551_v61 = vshrl.u32 %v3745_v51, 16  ;;  %v964_v63 = vsel %vm4687_vm5, %v959_v53, %v963_v57  ;;  %v1554_v0 = vshll.u32 %v3745_v51, 16  ;;  %v1564_v2 = vshrl.u32 %v3746_v20, 16 }
  0x8d   : > { %2238 = vrot.lane.b32.xlu0 %v3849_v55, %s4387_s11  ;;  %v3921_v4 = vcombine.low %v3745_v51, %v3746_v20  ;;  %2494 = vrot.lane.b32.xlu1 %v3897_v59, %s4388_s18  ;;  %v3889_v6 = vcombine.low %v954_v49, %v964_v63  ;;  %v1749_v10 = vor.u32 %v1748_v60, %v1745_v58  ;;  %v1752_v11 = vshll.u32 %v3762_v3, 16  ;;  %v722_v51 = vld [vmem:[%s4611_s21 + $0x6c] sm:$0xe] }
  0x8e   : > { %v1553_v8 = vrot.slane %v1551_v61, 4  ;;  %v1556_v15 = vrot.slane %v1554_v0, 5  ;;  %v1758_v16 = vrot.slane %v1756_v45, 4  ;;  %v1762_v18 = vshll.u32 %v3785_v62, 16  ;;  %v714_v61 = vld [vmem:[%s4611_s21 + $0xc] sm:$0xe] }
  0x8f   : > { %v1560_v21 = vshll.u32 %v3746_v20, 16  ;;  %v1750_v22 = vrot.slane %v1749_v10, 4  ;;  %v1754_v23 = vrot.slane %v1752_v11, 5  ;;  %v1566_v24 = vrot.slane %v1564_v2, 4  ;;  %v3683_v10 = vld [vmem:[%s4611_s21 + $0x78] sm:$0xf] }
  0x90   : > { %v1570_v25 = vshll.u32 %v3777_v5, 16  ;;  %v1764_v27 = vrot.slane %v1762_v18, 5  ;;  %v1557_v28 = vor.u32 %v1556_v15, %v1553_v8  ;;  %v546_v31 = vshrl.u32 %v296_v14, 16 }
  0x91   : > { %2478 = vrot.lane.b32.xlu0 %v3889_v6, %s4388_s18  ;;  %v1562_v29 = vrot.slane %v1560_v21, 5  ;;  %2670 = vrot.lane.b32.xlu1 %v3929_v12, %s4389_s4  ;;  %v1755_v32 = vsel %vm4687_vm5, %v1750_v22, %v1754_v23  ;;  %v1759_v33 = vor.u32 %v1758_v16, %v1754_v23  ;;  %v549_v36 = vshll.u32 %v296_v14, 16 }
  0x92   : > { %v1572_v35 = vrot.slane %v1570_v25, 5  ;;  %v1558_v37 = vrot.slane %v1557_v28, 4  ;;  %v548_v39 = vrot.slane %v546_v31, 4  ;;  %v555_v41 = vshll.u32 %v297_v26, 16 }
  0x93   : > { %v1567_v38 = vor.u32 %v1566_v24, %v1562_v29  ;;  %v1760_v42 = vrot.slane %v1759_v33, 4  ;;  %v551_v43 = vrot.slane %v549_v36, 5  ;;  %v559_v44 = vshrl.u32 %v297_v26, 16  ;;  %v4761_v24 = vld [vmem:[%s4611_s21 + $0x7c] sm:$0xf] }
  0x94   : > { %v565_v46 = vshll.u32 %v4732_v30, 16  ;;  %v1563_v1 = vsel %vm4687_vm5, %v1558_v37, %v1562_v29  ;;  %v557_v47 = vrot.slane %v555_v41, 5  ;;  %v354_v49 = vshrl.u32 %v280_v34, 16  ;;  %v4766_v29 = vld [vmem:[%s4611_s21 + $0x18] sm:$0xf] }
  0x95   : > { %2654 = vrot.lane.b32.xlu0 %v3921_v4, %s4389_s4  ;;  %v1568_v3 = vrot.slane %v1567_v38, 4  ;;  %v1765_v7 = vsel %vm4687_vm5, %v1760_v42, %v1764_v27  ;;  %v552_v9 = vor.u32 %v551_v43, %v548_v39  ;;  %v561_v50 = vrot.slane %v559_v44, 4  ;;  %v3706_v43 = vld [vmem:[%s4611_s21 + $0x80] sm:$0x1] }
  0x96   : > { %v567_v40 = vrot.slane %v565_v46, 5  ;;  %v3945_v52 = vcombine.low %v1755_v32, %v1765_v7  ;;  %v356_v54 = vrot.slane %v354_v49, 4  ;;  %v357_v45 = vshll.u32 %v280_v34, 16 }
  0x97   : > { %v1573_v53 = vsel %vm4687_vm5, %v1568_v3, %v1572_v35  ;;  %v553_v55 = vrot.slane %v552_v9, 4  ;;  %v562_v56 = vor.u32 %v561_v50, %v557_v47  ;;  %v363_v57 = vshll.u32 %v281_v48, 16  ;;  %v4774_v35 = vld [vmem:[%s4611_s21 + $0x1c] sm:$0xf] }
  0x98   : > { %v3937_v20 = vcombine.low %v1563_v1, %v1573_v53  ;;  %2750 = vrot.lane.b32.xlu1 %v3945_v52, %s4390_s8  ;;  %v359_v58 = vrot.slane %v357_v45, 5  ;;  %v367_v59 = vshrl.u32 %v281_v48, 16  ;;  %v373_v60 = vshll.u32 %v311_v13, 16  ;;  %v3722_v52 = vld [vmem:[%s4611_s21 + $0x78] sm:$0xe] }
  0x99   : > { %v3658_v12 = vrot.slane %v722_v51, 9  ;;  %v558_v62 = vsel %vm4687_vm5, %v553_v55, %v557_v47  ;;  %v563_v63 = vrot.slane %v562_v56, 4  ;;  %v365_v0 = vrot.slane %v363_v57, 5  ;;  %v3698_v47 = vld [vmem:[%s4611_s21 + $0x20] sm:$0x1] }
  0x9a   : > { %2734 = vrot.lane.b32.xlu0 %v3937_v20, %s4390_s8  ;;  %v845_v2 = vrot.slane %v297_v26, 5  ;;  %v360_v4 = vor.u32 %v359_v58, %v356_v54  ;;  %v369_v5 = vrot.slane %v367_v59, 4  ;;  %v375_v6 = vrot.slane %v373_v60, 5  ;;  %v3714_v55 = vld [vmem:[%s4611_s21 + $0x18] sm:$0xe] }
  0x9b   : > { %v848_v8 = vrot.slane %v4732_v30, 5  ;;  %v568_v11 = vsel %vm4687_vm5, %v563_v63, %v567_v40  ;;  %v3650_v16 = vrot.slane %v714_v61, 9  ;;  %v789_v23 = vrot.slane %v281_v48, 5  ;;  %v4798_v63 = vld [vmem:[%s4611_s21 + $0x84] sm:$0xf] }
  0x9c   : > { %v846_v14 = vsel %vm4643_vm2, %v3658_v12, %v845_v2  ;;  %v847_v15 = vrot.slane %v845_v2, 4  ;;  %v3850_v18 = vcombine.low %v558_v62, %v568_v11  ;;  %v361_v21 = vrot.slane %v360_v4, 4 }
  0x9d   : > { %v370_v22 = vor.u32 %v369_v5, %v365_v0  ;;  %v792_v26 = vrot.slane %v311_v13, 5  ;;  %v1158_v27 = vshrl.u32 %v3683_v10, 16  ;;  %v1161_v28 = vshll.u32 %v3683_v10, 16 }
  0x9e   : > { %v849_v25 = vsel %vm4643_vm2, %v847_v15, %v848_v8  ;;  %2240 = vrot.lane.b32.xlu1 %v3850_v18, %s4387_s11  ;;  %v366_v30 = vsel %vm4687_vm5, %v361_v21, %v365_v0  ;;  %v790_v33 = vsel %vm4643_vm2, %v3650_v16, %v789_v23  ;;  %v791_v36 = vrot.slane %v789_v23, 4 }
  0x9f   : > { %v371_v31 = vrot.slane %v370_v22, 4  ;;  %v3866_v32 = vcombine.low %v846_v14, %v849_v25  ;;  %v1160_v34 = vrot.slane %v1158_v27, 4  ;;  %v1163_v37 = vrot.slane %v1161_v28, 5 }
  0xa0   : > { %v1171_v38 = vshrl.u32 %v4761_v24, 16  ;;  %v966_v41 = vshrl.u32 %v4766_v29, 16  ;;  %v969_v42 = vshll.u32 %v4766_v29, 16  ;;  %v793_v46 = vsel %vm4643_vm2, %v791_v36, %v792_v26  ;;  %v3747_v26 = vld [vmem:[%s4611_s21 + $0x24] sm:$0xf] }
  0xa1   : > { %v376_v39 = vsel %vm4687_vm5, %v371_v31, %v375_v6  ;;  %v3882_v1 = vcombine.low %v3683_v10, %v4761_v24  ;;  %v979_v3 = vshrl.u32 %v4774_v35, 16  ;;  %v3858_v48 = vcombine.low %v790_v33, %v793_v46  ;;  %v4824_v31 = vld [vmem:[%s4611_s21 + $0x28] sm:$0xf] }
  0xa2   : > { %v3842_v44 = vcombine.low %v366_v30, %v376_v39  ;;  %2320 = vrot.lane.b32.xlu1 %v3866_v32, %s4386_s24  ;;  %v968_v49 = vrot.slane %v966_v41, 4  ;;  %v971_v7 = vrot.slane %v969_v42, 5  ;;  %v1164_v9 = vor.u32 %v1163_v37, %v1160_v34  ;;  %v4830_v37 = vld [vmem:[%s4611_s21 + $0x8c] sm:$0x1] }
  0xa3   : > { %v1167_v50 = vshll.u32 %v4761_v24, 16  ;;  %v1173_v40 = vrot.slane %v1171_v38, 4  ;;  %v1177_v13 = vshll.u32 %v3706_v43, 16  ;;  %v975_v51 = vshll.u32 %v4774_v35, 16 }
  0xa4   : > { %2224 = vrot.lane.b32.xlu0 %v3842_v44, %s4387_s11  ;;  %v1165_v53 = vrot.slane %v1164_v9, 4  ;;  %v972_v54 = vor.u32 %v971_v7, %v968_v49  ;;  %v981_v45 = vrot.slane %v979_v3, 4  ;;  %v985_v20 = vshll.u32 %v3698_v47, 16  ;;  %v4837_v3 = vld [vmem:[%s4611_s21 + $0x2c] sm:$0x1] }
  0xa5   : > { %v3874_v56 = vcombine.low %v4766_v29, %v4774_v35  ;;  %v1169_v57 = vrot.slane %v1167_v50, 5  ;;  %v1179_v58 = vrot.slane %v1177_v13, 5  ;;  %v977_v59 = vrot.slane %v975_v51, 5  ;;  %v298_v9 = vld [vmem:[%s4611_s21 + $0x78] sm:$0xf] }
  0xa6   : > { %2416 = vrot.lane.b32.xlu1 %v3882_v1, %s4384_s20  ;;  %v973_v60 = vrot.slane %v972_v54, 4  ;;  %v3738_v12 = vrot.slane %v3722_v52, 9  ;;  %v1454_v61 = vrot.slane %v4761_v24, 5  ;;  %v1457_v62 = vrot.slane %v3706_v43, 5  ;;  %v4812_v24 = vld [vmem:[%s4611_s21 + $0x88] sm:$0xf] }
  0xa7   : > { %v1174_v0 = vor.u32 %v1173_v40, %v1169_v57  ;;  %v982_v2 = vor.u32 %v981_v45, %v977_v59  ;;  %v987_v4 = vrot.slane %v985_v20, 5  ;;  %v3730_v5 = vrot.slane %v3714_v55, 9  ;;  %v4845_v52 = vld [vmem:[%s4611_s21 + $0x7c] sm:$0xf]  ;;  %v4851_v55 = vld [vmem:[%s4611_s21 + $0x80] sm:$0x1] }
  0xa8   : > { %2304 = vrot.lane.b32.xlu0 %v3858_v48, %s4386_s24  ;;  %v1170_v6 = vsel %vm4687_vm5, %v1165_v53, %v1169_v57  ;;  %v978_v8 = vsel %vm4687_vm5, %v973_v60, %v977_v59  ;;  %v1456_v10 = vrot.slane %v1454_v61, 4  ;;  %v1398_v11 = vrot.slane %v4774_v35, 5  ;;  %v282_v60 = vld [vmem:[%s4611_s21 + $0x18] sm:$0xf] }
  0xa9   : > { %v1175_v14 = vrot.slane %v1174_v0, 4  ;;  %v983_v15 = vrot.slane %v982_v2, 4  ;;  %v1401_v16 = vrot.slane %v3698_v47, 5  ;;  %v1767_v18 = vshrl.u32 %v4798_v63, 16 }
  0xaa   : > { %v1455_v21 = vsel %vm4643_vm2, %v3738_v12, %v1454_v61  ;;  %v1458_v22 = vsel %vm4643_vm2, %v1456_v10, %v1457_v62  ;;  %v1400_v23 = vrot.slane %v1398_v11, 4  ;;  %v1770_v25 = vshll.u32 %v4798_v63, 16 }
  0xab   : > { %v1180_v27 = vsel %vm4687_vm5, %v1175_v14, %v1179_v58  ;;  %v988_v28 = vsel %vm4687_vm5, %v983_v15, %v987_v4  ;;  %v1399_v29 = vsel %vm4643_vm2, %v3730_v5, %v1398_v11  ;;  %v1769_v30 = vrot.slane %v1767_v18, 4  ;;  %v312_v15 = vld [vmem:[%s4611_s21 + $0x20] sm:$0x1] }
  0xac   : > { %2400 = vrot.lane.b32.xlu0 %v3874_v56, %s4384_s20  ;;  %v3898_v32 = vcombine.low %v1170_v6, %v1180_v27  ;;  %v3890_v33 = vcombine.low %v978_v8, %v988_v28  ;;  %v1402_v35 = vsel %vm4643_vm2, %v1400_v23, %v1401_v16  ;;  %v1772_v36 = vrot.slane %v1770_v25, 5  ;;  %v283_v6 = vld [vmem:[%s4611_s21 + $0x1c] sm:$0xf]  ;;  %v723_v28 = vld [vmem:[%s4611_s21 + $0x78] sm:$0xe] }
  0xad   : > { %v1780_v34 = vshrl.u32 %v4812_v24, 16  ;;  %v3914_v38 = vcombine.low %v1455_v21, %v1458_v22  ;;  %v1575_v39 = vshrl.u32 %v3747_v26, 16  ;;  %v1578_v41 = vshll.u32 %v3747_v26, 16 }
  0xae   : > { %2496 = vrot.lane.b32.xlu1 %v3898_v32, %s4388_s18  ;;  %v1588_v42 = vshrl.u32 %v4824_v31, 16  ;;  %v3906_v43 = vcombine.low %v1399_v29, %v1402_v35  ;;  %v1773_v44 = vor.u32 %v1772_v36, %v1769_v30  ;;  %v1776_v46 = vshll.u32 %v4812_v24, 16 }
  0xaf   : > { %v1782_v1 = vrot.slane %v1780_v34, 4  ;;  %v3930_v47 = vcombine.low %v4798_v63, %v4812_v24  ;;  %v1577_v48 = vrot.slane %v1575_v39, 4  ;;  %v1580_v49 = vrot.slane %v1578_v41, 5  ;;  %v715_v39 = vld [vmem:[%s4611_s21 + $0x18] sm:$0xe] }
  0xb0   : > { %2480 = vrot.lane.b32.xlu0 %v3890_v33, %s4388_s18  ;;  %v1786_v7 = vshll.u32 %v4830_v37, 16  ;;  %v1774_v50 = vrot.slane %v1773_v44, 4  ;;  %v1778_v40 = vrot.slane %v1776_v46, 5  ;;  %v1584_v13 = vshll.u32 %v4824_v31, 16 }
  0xb1   : > { %v1590_v51 = vrot.slane %v1588_v42, 4  ;;  %v3922_v53 = vcombine.low %v3747_v26, %v4824_v31  ;;  %v1581_v45 = vor.u32 %v1580_v49, %v1577_v48  ;;  %v1594_v20 = vshll.u32 %v4837_v3, 16  ;;  %v3685_v49 = vld [vmem:[%s4611_s21 + $0x84] sm:$0xf] }
  0xb2   : > { %2576 = vrot.lane.b32.xlu1 %v3914_v38, %s4385_s22  ;;  %v1788_v54 = vrot.slane %v1786_v7, 5  ;;  %v1779_v56 = vsel %vm4687_vm5, %v1774_v50, %v1778_v40  ;;  %v1783_v57 = vor.u32 %v1782_v1, %v1778_v40  ;;  %v1586_v58 = vrot.slane %v1584_v13, 5  ;;  %v4882_v13 = vld [vmem:[%s4611_s21 + $0x88] sm:$0xf] }
  0xb3   : > { %v570_v59 = vshrl.u32 %v298_v9, 16  ;;  %v1582_v12 = vrot.slane %v1581_v45, 4  ;;  %v1596_v61 = vrot.slane %v1594_v20, 5  ;;  %v573_v62 = vshll.u32 %v298_v9, 16 }
  0xb4   : > { %2560 = vrot.lane.b32.xlu0 %v3906_v43, %s4385_s22  ;;  %v579_v63 = vshll.u32 %v4845_v52, 16  ;;  %v1784_v0 = vrot.slane %v1783_v57, 4  ;;  %v1591_v2 = vor.u32 %v1590_v51, %v1586_v58  ;;  %v583_v5 = vshrl.u32 %v4845_v52, 16 }
  0xb5   : > { %v572_v4 = vrot.slane %v570_v59, 4  ;;  %v1587_v8 = vsel %vm4687_vm5, %v1582_v12, %v1586_v58  ;;  %v575_v10 = vrot.slane %v573_v62, 5  ;;  %v589_v14 = vshll.u32 %v4851_v55, 16  ;;  %v4887_v58 = vld [vmem:[%s4611_s21 + $0x24] sm:$0xf] }
  0xb6   : > { %2672 = vrot.lane.b32.xlu1 %v3930_v47, %s4389_s4  ;;  %v581_v11 = vrot.slane %v579_v63, 5  ;;  %v1789_v16 = vsel %vm4687_vm5, %v1784_v0, %v1788_v54  ;;  %v1592_v18 = vrot.slane %v1591_v2, 4  ;;  %v585_v21 = vrot.slane %v583_v5, 4 }
  0xb7   : > { %v378_v22 = vshrl.u32 %v282_v60, 16  ;;  %v3946_v23 = vcombine.low %v1779_v56, %v1789_v16  ;;  %v576_v25 = vor.u32 %v575_v10, %v572_v4  ;;  %v591_v26 = vrot.slane %v589_v14, 5  ;;  %v3699_v16 = vld [vmem:[%s4611_s21 + $0x2c] sm:$0x1] }
  0xb8   : > { %2656 = vrot.lane.b32.xlu0 %v3922_v53, %s4389_s4  ;;  %v381_v27 = vshll.u32 %v282_v60, 16  ;;  %v1597_v29 = vsel %vm4687_vm5, %v1592_v18, %v1596_v61  ;;  %v586_v30 = vor.u32 %v585_v21, %v581_v11  ;;  %v387_v33 = vshll.u32 %v283_v6, 16  ;;  %v4894_v61 = vld [vmem:[%s4611_s21 + $0x28] sm:$0xf]  ;;  %v3723_v18 = vld [vmem:[%s4611_s21 + $0x84] sm:$0xe] }
  0xb9   : > { %v380_v32 = vrot.slane %v378_v22, 4  ;;  %v3938_v35 = vcombine.low %v1587_v8, %v1597_v29  ;;  %v577_v36 = vrot.slane %v576_v25, 4  ;;  %v391_v38 = vshrl.u32 %v283_v6, 16  ;;  %v3707_v8 = vld [vmem:[%s4611_s21 + $0x8c] sm:$0x1] }
  0xba   : > { %2752 = vrot.lane.b32.xlu1 %v3946_v23, %s4390_s8  ;;  %v383_v34 = vrot.slane %v381_v27, 5  ;;  %v587_v41 = vrot.slane %v586_v30, 4  ;;  %v389_v42 = vrot.slane %v387_v33, 5  ;;  %v397_v43 = vshll.u32 %v312_v15, 16 }
  0xbb   : > { %v3659_v44 = vrot.slane %v723_v28, 9  ;;  %v582_v46 = vsel %vm4687_vm5, %v577_v36, %v581_v11  ;;  %v393_v47 = vrot.slane %v391_v38, 4  ;;  %v852_v48 = vrot.slane %v4845_v52, 5  ;;  %v3715_v36 = vld [vmem:[%s4611_s21 + $0x24] sm:$0xe] }
  0xbc   : > { %2736 = vrot.lane.b32.xlu0 %v3938_v35, %s4390_s8  ;;  %v384_v1 = vor.u32 %v383_v34, %v380_v32  ;;  %v592_v7 = vsel %vm4687_vm5, %v587_v41, %v591_v26  ;;  %v399_v9 = vrot.slane %v397_v43, 5  ;;  %v855_v50 = vrot.slane %v4851_v55, 5 }
  0xbd   : > { %v3651_v40 = vrot.slane %v715_v39, 9  ;;  %v3851_v51 = vcombine.low %v582_v46, %v592_v7  ;;  %v394_v54 = vor.u32 %v393_v47, %v389_v42  ;;  %v853_v45 = vsel %vm4643_vm2, %v3659_v44, %v852_v48  ;;  %v4924_v7 = vld [vmem:[%s4611_s21 + $0x90] sm:$0xf] }
  0xbe   : > { %v385_v53 = vrot.slane %v384_v1, 4  ;;  %v854_v20 = vrot.slane %v852_v48, 4  ;;  %v796_v56 = vrot.slane %v283_v6, 5  ;;  %v799_v52 = vrot.slane %v312_v15, 5 }
  0xbf   : > { %v1182_v57 = vshrl.u32 %v3685_v49, 16  ;;  %2242 = vrot.lane.b32.xlu1 %v3851_v51, %s4387_s11  ;;  %v395_v59 = vrot.slane %v394_v54, 4  ;;  %v1185_v60 = vshll.u32 %v3685_v49, 16  ;;  %v1195_v12 = vshrl.u32 %v4882_v13, 16 }
  0xc0   : > { %v390_v55 = vsel %vm4687_vm5, %v385_v53, %v389_v42  ;;  %v856_v62 = vsel %vm4643_vm2, %v854_v20, %v855_v50  ;;  %v797_v63 = vsel %vm4643_vm2, %v3651_v40, %v796_v56  ;;  %v798_v0 = vrot.slane %v796_v56, 4 }
  0xc1   : > { %v1184_v2 = vrot.slane %v1182_v57, 4  ;;  %v400_v4 = vsel %vm4687_vm5, %v395_v59, %v399_v9  ;;  %v3867_v5 = vcombine.low %v853_v45, %v856_v62  ;;  %v1187_v6 = vrot.slane %v1185_v60, 5 }
  0xc2   : > { %v3843_v10 = vcombine.low %v390_v55, %v400_v4  ;;  %v800_v11 = vsel %vm4643_vm2, %v798_v0, %v799_v52  ;;  %v990_v14 = vshrl.u32 %v4887_v58, 16  ;;  %v993_v15 = vshll.u32 %v4887_v58, 16  ;;  %v4932_v52 = vld [vmem:[%s4611_s21 + $0x94] sm:$0xf] }
  0xc3   : > { %2322 = vrot.lane.b32.xlu1 %v3867_v5, %s4386_s24  ;;  %v3859_v21 = vcombine.low %v797_v63, %v800_v11  ;;  %v3883_v22 = vcombine.low %v3685_v49, %v4882_v13  ;;  %v1003_v23 = vshrl.u32 %v4894_v61, 16  ;;  %v1188_v25 = vor.u32 %v1187_v6, %v1184_v2  ;;  %v4947_v4 = vld [vmem:[%s4611_s21 + $0x34] sm:$0xf] }
  0xc4   : > { %2226 = vrot.lane.b32.xlu0 %v3843_v10, %s4387_s11  ;;  %v992_v26 = vrot.slane %v990_v14, 4  ;;  %v995_v27 = vrot.slane %v993_v15, 5  ;;  %v1191_v28 = vshll.u32 %v4882_v13, 16  ;;  %v1197_v29 = vrot.slane %v1195_v12, 4 }
  0xc5   : > { %v1189_v30 = vrot.slane %v1188_v25, 4  ;;  %v1201_v32 = vshll.u32 %v3707_v8, 16  ;;  %v999_v33 = vshll.u32 %v4894_v61, 16  ;;  %v1005_v35 = vrot.slane %v1003_v23, 4  ;;  %v4961_v25 = vld [vmem:[%s4611_s21 + $0x38] sm:$0x1] }
  0xc6   : > { %v1193_v34 = vrot.slane %v1191_v28, 5  ;;  %v996_v38 = vor.u32 %v995_v27, %v992_v26  ;;  %v1009_v39 = vshll.u32 %v3699_v16, 16  ;;  %v3739_v41 = vrot.slane %v3723_v18, 9 }
  0xc7   : > { %2418 = vrot.lane.b32.xlu1 %v3883_v22, %s4384_s20  ;;  %v3875_v42 = vcombine.low %v4887_v58, %v4894_v61  ;;  %v1203_v43 = vrot.slane %v1201_v32, 5  ;;  %v1001_v44 = vrot.slane %v999_v33, 5  ;;  %v1461_v46 = vrot.slane %v4882_v13, 5 }
  0xc8   : > { %2306 = vrot.lane.b32.xlu0 %v3859_v21, %s4386_s24  ;;  %v1194_v1 = vsel %vm4687_vm5, %v1189_v30, %v1193_v34  ;;  %v1198_v47 = vor.u32 %v1197_v29, %v1193_v34  ;;  %v997_v48 = vrot.slane %v996_v38, 4  ;;  %v1464_v49 = vrot.slane %v3707_v8, 5  ;;  %v300_v30 = vld [vmem:[%s4611_s21 + $0x84] sm:$0xf] }
  0xc9   : > { %v1006_v9 = vor.u32 %v1005_v35, %v1001_v44  ;;  %v1011_v50 = vrot.slane %v1009_v39, 5  ;;  %v1463_v40 = vrot.slane %v1461_v46, 4  ;;  %v3731_v51 = vrot.slane %v3715_v36, 9 }
  0xca   : > { %v1199_v53 = vrot.slane %v1198_v47, 4  ;;  %v1462_v13 = vsel %vm4643_vm2, %v3739_v41, %v1461_v46  ;;  %v1405_v54 = vrot.slane %v4894_v61, 5  ;;  %v1408_v45 = vrot.slane %v3699_v16, 5  ;;  %v3749_v61 = vld [vmem:[%s4611_s21 + $0x30] sm:$0xf] }
  0xcb   : > { %v1002_v20 = vsel %vm4687_vm5, %v997_v48, %v1001_v44  ;;  %v1007_v56 = vrot.slane %v1006_v9, 4  ;;  %v1791_v57 = vshrl.u32 %v4924_v7, 16  ;;  %v1794_v58 = vshll.u32 %v4924_v7, 16  ;;  %v4955_v16 = vld [vmem:[%s4611_s21 + $0x98] sm:$0x1] }
  0xcc   : > { %2402 = vrot.lane.b32.xlu0 %v3875_v42, %s4384_s20  ;;  %v1204_v55 = vsel %vm4687_vm5, %v1199_v53, %v1203_v43  ;;  %v1465_v59 = vsel %vm4643_vm2, %v1463_v40, %v1464_v49  ;;  %v1406_v60 = vsel %vm4643_vm2, %v3731_v51, %v1405_v54  ;;  %v1407_v12 = vrot.slane %v1405_v54, 4  ;;  %v301_v42 = vld [vmem:[%s4611_s21 + $0x88] sm:$0xf] }
  0xcd   : > { %v3899_v62 = vcombine.low %v1194_v1, %v1204_v55  ;;  %v1012_v63 = vsel %vm4687_vm5, %v1007_v56, %v1011_v50  ;;  %v1793_v0 = vrot.slane %v1791_v57, 4  ;;  %v1796_v2 = vrot.slane %v1794_v58, 5  ;;  %v4975_v1 = vld [vmem:[%s4611_s21 + $0x8c] sm:$0x1]  ;;  %v284_v50 = vld [vmem:[%s4611_s21 + $0x24] sm:$0xf] }
  0xce   : > { %v3891_v5 = vcombine.low %v1002_v20, %v1012_v63  ;;  %v1409_v6 = vsel %vm4643_vm2, %v1407_v12, %v1408_v45  ;;  %v1804_v8 = vshrl.u32 %v4932_v52, 16  ;;  %v3915_v11 = vcombine.low %v1462_v13, %v1465_v59  ;;  %v285_v57 = vld [vmem:[%s4611_s21 + $0x28] sm:$0xf] }
  0xcf   : > { %2498 = vrot.lane.b32.xlu1 %v3899_v62, %s4388_s18  ;;  %v1599_v14 = vshrl.u32 %v3749_v61, 16  ;;  %v1602_v15 = vshll.u32 %v3749_v61, 16  ;;  %v2007_v18 = vrot.slane %v4824_v31, 5  ;;  %v3907_v21 = vcombine.low %v1406_v60, %v1409_v6  ;;  %v313_v60 = vld [vmem:[%s4611_s21 + $0x2c] sm:$0x1] }
  0xd0   : > { %2482 = vrot.lane.b32.xlu0 %v3891_v5, %s4388_s18  ;;  %v1612_v22 = vshrl.u32 %v4947_v4, 16  ;;  %v1797_v23 = vor.u32 %v1796_v2, %v1793_v0  ;;  %v1800_v28 = vshll.u32 %v4932_v52, 16  ;;  %v1806_v29 = vrot.slane %v1804_v8, 4  ;;  %v724_v2 = vld [vmem:[%s4611_s21 + $0x84] sm:$0xe] }
  0xd1   : > { %v1601_v26 = vrot.slane %v1599_v14, 4  ;;  %v1604_v27 = vrot.slane %v1602_v15, 5  ;;  %v3931_v32 = vcombine.low %v4924_v7, %v4932_v52  ;;  %v1810_v35 = vshll.u32 %v4955_v16, 16 }
  0xd2   : > { %v1798_v33 = vrot.slane %v1797_v23, 4  ;;  %v1608_v36 = vshll.u32 %v4947_v4, 16  ;;  %v1802_v34 = vrot.slane %v1800_v28, 5  ;;  %v1614_v39 = vrot.slane %v1612_v22, 4 }
  0xd3   : > { %2578 = vrot.lane.b32.xlu1 %v3915_v11, %s4385_s22  ;;  %v1605_v38 = vor.u32 %v1604_v27, %v1601_v26  ;;  %v1618_v41 = vshll.u32 %v4961_v25, 16  ;;  %v3923_v43 = vcombine.low %v3749_v61, %v4947_v4  ;;  %v1812_v44 = vrot.slane %v1810_v35, 5  ;;  %v716_v35 = vld [vmem:[%s4611_s21 + $0x24] sm:$0xe] }
  0xd4   : > { %2562 = vrot.lane.b32.xlu0 %v3907_v21, %s4385_s22  ;;  %v1610_v46 = vrot.slane %v1608_v36, 5  ;;  %v594_v47 = vshrl.u32 %v300_v30, 16  ;;  %v1803_v48 = vsel %vm4687_vm5, %v1798_v33, %v1802_v34  ;;  %v1807_v49 = vor.u32 %v1806_v29, %v1802_v34 }
  0xd5   : > { %v1606_v7 = vrot.slane %v1605_v38, 4  ;;  %v1620_v9 = vrot.slane %v1618_v41, 5  ;;  %v597_v53 = vshll.u32 %v300_v30, 16  ;;  %v603_v13 = vshll.u32 %v301_v42, 16  ;;  %v3687_v41 = vld [vmem:[%s4611_s21 + $0x90] sm:$0xf] }
  0xd6   : > { %v1615_v40 = vor.u32 %v1614_v39, %v1610_v46  ;;  %v596_v51 = vrot.slane %v594_v47, 4  ;;  %v1808_v54 = vrot.slane %v1807_v49, 4  ;;  %v607_v20 = vshrl.u32 %v301_v42, 16 }
  0xd7   : > { %2674 = vrot.lane.b32.xlu1 %v3931_v32, %s4389_s4  ;;  %v1611_v45 = vsel %vm4687_vm5, %v1606_v7, %v1610_v46  ;;  %v613_v56 = vshll.u32 %v4975_v1, 16  ;;  %v599_v55 = vrot.slane %v597_v53, 5  ;;  %v605_v59 = vrot.slane %v603_v13, 5  ;;  %v5009_v53 = vld [vmem:[%s4611_s21 + $0x30] sm:$0xf] }
  0xd8   : > { %2658 = vrot.lane.b32.xlu0 %v3923_v43, %s4389_s4  ;;  %v1616_v58 = vrot.slane %v1615_v40, 4  ;;  %v402_v12 = vshrl.u32 %v284_v50, 16  ;;  %v1813_v61 = vsel %vm4687_vm5, %v1808_v54, %v1812_v44  ;;  %v609_v62 = vrot.slane %v607_v20, 4 }
  0xd9   : > { %v615_v63 = vrot.slane %v613_v56, 5  ;;  %v405_v0 = vshll.u32 %v284_v50, 16  ;;  %v3947_v5 = vcombine.low %v1803_v48, %v1813_v61  ;;  %v600_v8 = vor.u32 %v599_v55, %v596_v51  ;;  %v5015_v56 = vld [vmem:[%s4611_s21 + $0x34] sm:$0xf] }
  0xda   : > { %v1621_v6 = vsel %vm4687_vm5, %v1616_v58, %v1620_v9  ;;  %v404_v11 = vrot.slane %v402_v12, 4  ;;  %v610_v15 = vor.u32 %v609_v62, %v605_v59  ;;  %v411_v22 = vshll.u32 %v285_v57, 16  ;;  %v3688_v9 = vld [vmem:[%s4611_s21 + $0x94] sm:$0xf] }
  0xdb   : > { %v3939_v14 = vcombine.low %v1611_v45, %v1621_v6  ;;  %v407_v21 = vrot.slane %v405_v0, 5  ;;  %2754 = vrot.lane.b32.xlu1 %v3947_v5, %s4390_s8  ;;  %v601_v23 = vrot.slane %v600_v8, 4  ;;  %v415_v26 = vshrl.u32 %v285_v57, 16  ;;  %v5026_v8 = vld [vmem:[%s4611_s21 + $0x38] sm:$0x1] }
  0xdc   : > { %v421_v27 = vshll.u32 %v313_v60, 16  ;;  %v3660_v28 = vrot.slane %v724_v2, 9  ;;  %v611_v29 = vrot.slane %v610_v15, 4  ;;  %v413_v32 = vrot.slane %v411_v22, 5  ;;  %v3724_v22 = vld [vmem:[%s4611_s21 + $0x90] sm:$0xe] }
  0xdd   : > { %2738 = vrot.lane.b32.xlu0 %v3939_v14, %s4390_s8  ;;  %v408_v30 = vor.u32 %v407_v21, %v404_v11  ;;  %v859_v33 = vrot.slane %v301_v42, 5  ;;  %v606_v36 = vsel %vm4687_vm5, %v601_v23, %v605_v59  ;;  %v417_v34 = vrot.slane %v415_v26, 4 }
  0xde   : > { %v423_v38 = vrot.slane %v421_v27, 5  ;;  %v862_v39 = vrot.slane %v4975_v1, 5  ;;  %v616_v43 = vsel %vm4687_vm5, %v611_v29, %v615_v63  ;;  %v3652_v49 = vrot.slane %v716_v35, 9  ;;  %v3708_v63 = vld [vmem:[%s4611_s21 + $0x98] sm:$0x1] }
  0xdf   : > { %v409_v44 = vrot.slane %v408_v30, 4  ;;  %v860_v46 = vsel %vm4643_vm2, %v3660_v28, %v859_v33  ;;  %v861_v47 = vrot.slane %v859_v33, 4  ;;  %v3852_v42 = vcombine.low %v606_v36, %v616_v43  ;;  %v3716_v35 = vld [vmem:[%s4611_s21 + $0x30] sm:$0xe] }
  0xe0   : > { %v418_v48 = vor.u32 %v417_v34, %v413_v32  ;;  %v803_v7 = vrot.slane %v285_v57, 5  ;;  %v806_v40 = vrot.slane %v313_v60, 5  ;;  %v1206_v51 = vshrl.u32 %v3687_v41, 16 }
  0xe1   : > { %v414_v50 = vsel %vm4687_vm5, %v409_v44, %v413_v32  ;;  %v863_v1 = vsel %vm4643_vm2, %v861_v47, %v862_v39  ;;  %2244 = vrot.lane.b32.xlu1 %v3852_v42, %s4387_s11  ;;  %v1209_v58 = vshll.u32 %v3687_v41, 16  ;;  %v1219_v55 = vshrl.u32 %v3688_v9, 16 }
  0xe2   : > { %v419_v13 = vrot.slane %v418_v48, 4  ;;  %v3868_v54 = vcombine.low %v860_v46, %v863_v1  ;;  %v804_v45 = vsel %vm4643_vm2, %v3652_v49, %v803_v7  ;;  %v805_v20 = vrot.slane %v803_v7, 4 }
  0xe3   : > { %v1208_v57 = vrot.slane %v1206_v51, 4  ;;  %v3884_v59 = vcombine.low %v3687_v41, %v3688_v9  ;;  %v1014_v61 = vshrl.u32 %v5009_v53, 16  ;;  %v1017_v62 = vshll.u32 %v5009_v53, 16 }
  0xe4   : > { %v424_v60 = vsel %vm4687_vm5, %v419_v13, %v423_v38  ;;  %v807_v12 = vsel %vm4643_vm2, %v805_v20, %v806_v40  ;;  %v1211_v5 = vrot.slane %v1209_v58, 5  ;;  %v1027_v6 = vshrl.u32 %v5015_v56, 16 }
  0xe5   : > { %v3844_v0 = vcombine.low %v414_v50, %v424_v60  ;;  %v3860_v2 = vcombine.low %v804_v45, %v807_v12  ;;  %2324 = vrot.lane.b32.xlu1 %v3868_v54, %s4386_s24  ;;  %v1016_v11 = vrot.slane %v1014_v61, 4  ;;  %v1019_v14 = vrot.slane %v1017_v62, 5  ;;  %v5043_v50 = vld [vmem:[%s4611_s21 + $0x9c] sm:$0xf] }
  0xe6   : > { %v3876_v15 = vcombine.low %v5009_v53, %v5015_v56  ;;  %v1215_v21 = vshll.u32 %v3688_v9, 16  ;;  %v1212_v23 = vor.u32 %v1211_v5, %v1208_v57  ;;  %v1221_v26 = vrot.slane %v1219_v55, 4  ;;  %v5036_v36 = vpop.permute.xlu1 %2414  ;;  %v4132_v53 = vld [vmem:[#allocation5] sm:$0xff]   ;;  %v5076_v5 = vld [vmem:[%s4611_s21 + $0x40] sm:$0xf] }
  0xe7   : > { %2228 = vrot.lane.b32.xlu0 %v3844_v0, %s4387_s11  ;;  %v1225_v27 = vshll.u32 %v3708_v63, 16  ;;  %v1023_v28 = vshll.u32 %v5015_v56, 16  ;;  %v1020_v30 = vor.u32 %v1019_v14, %v1016_v11  ;;  %v1029_v32 = vrot.slane %v1027_v6, 4  ;;  %v5051_v20 = vpop.permute.xlu0 %2398  ;;  %v5065_v12 = vld [vmem:[%s4611_s21 + $0x3c] sm:$0xf] }
  0xe8   : > { %v1217_v29 = vrot.slane %v1215_v21, 5  ;;  %v1033_v33 = vshll.u32 %v5026_v8, 16  ;;  %v1213_v34 = vrot.slane %v1212_v23, 4  ;;  %v3740_v41 = vrot.slane %v3724_v22, 9  ;;  %v4133_v21 = vld [vmem:[#allocation5 + $0x8] sm:$0xff]  }
  0xe9   : > { %v1227_v38 = vrot.slane %v1225_v27, 5  ;;  %v1025_v39 = vrot.slane %v1023_v28, 5  ;;  %2420 = vrot.lane.b32.xlu1 %v3884_v59, %s4384_s20  ;;  %v1021_v44 = vrot.slane %v1020_v30, 4  ;;  %v1468_v47 = vrot.slane %v3688_v9, 5  ;;  %v5060_v59 = vld [vmem:[%s4611_s21 + $0xa0] sm:$0xf] }
  0xea   : > { %v1222_v43 = vor.u32 %v1221_v26, %v1217_v29  ;;  %v1035_v46 = vrot.slane %v1033_v33, 5  ;;  %v1218_v42 = vsel %vm4687_vm5, %v1213_v34, %v1217_v29  ;;  %v1471_v49 = vrot.slane %v3708_v63, 5  ;;  %v5084_v27 = vld [vmem:[%s4611_s21 + $0xa4] sm:$0x1] }
  0xeb   : > { %2308 = vrot.lane.b32.xlu0 %v3860_v2, %s4386_s24  ;;  %v1030_v48 = vor.u32 %v1029_v32, %v1025_v39  ;;  %v3732_v7 = vrot.slane %v3716_v35, 9  ;;  %v1026_v40 = vsel %vm4687_vm5, %v1021_v44, %v1025_v39  ;;  %v1469_v51 = vsel %vm4643_vm2, %v3740_v41, %v1468_v47  ;;  %v5097_v41 = vld [vmem:[%s4611_s21 + $0x44] sm:$0x1] }
  0xec   : > { %v1223_v1 = vrot.slane %v1222_v43, 4  ;;  %v1470_v9 = vrot.slane %v1468_v47, 4  ;;  %v1412_v54 = vrot.slane %v5015_v56, 5  ;;  %v1415_v45 = vrot.slane %v5026_v8, 5  ;;  %v4134_v43 = vld [vmem:[#allocation5 + $0x10] sm:$0xff]  }
  0xed   : > { %v1031_v13 = vrot.slane %v1030_v48, 4  ;;  %v4391_v55 = vmov 0   ;;  %v1815_v56 = vshrl.u32 %v5043_v50, 16  ;;  %v1818_v60 = vshll.u32 %v5043_v50, 16 }
  0xee   : > { %v1228_v57 = vsel %vm4687_vm5, %v1223_v1, %v1227_v38  ;;  %v1472_v58 = vsel %vm4643_vm2, %v1470_v9, %v1471_v49  ;;  %3197 = vmatprep.subr.bf16.mxu0 %v4391_v55  ;;  %4000 = vmatprep.subr.bf16.mxu1 %v4391_v55  ;;  %v1413_v2 = vsel %vm4643_vm2, %v3732_v7, %v1412_v54  ;;  %v1414_v8 = vrot.slane %v1412_v54, 4  ;;  %v5099_v44 = vpop.permute.xlu0 %2558  ;;  %v302_v49 = vld [vmem:[%s4611_s21 + $0x90] sm:$0xf] }
  0xef   : > { %2404 = vrot.lane.b32.xlu0 %v3876_v15, %s4384_s20  ;;  %v3900_v63 = vcombine.low %v1218_v42, %v1228_v57  ;;  %v1036_v0 = vsel %vm4687_vm5, %v1031_v13, %v1035_v46  ;;  %v1817_v11 = vrot.slane %v1815_v56, 4  ;;  %v1820_v14 = vrot.slane %v1818_v60, 5  ;;  %3198 = vmatpush1.bf16.msra.mxu0 %v4132_v53 }
  0xf0   : > { %v5067_v61 = vpop.permute.xlu1 %2302  ;;  %v3892_v6 = vcombine.low %v1026_v40, %v1036_v0  ;;  %4009 = vmatpush1.bf16.msra.mxu1 %v4132_v53  ;;  %v3916_v15 = vcombine.low %v1469_v51, %v1472_v58  ;;  %v1828_v23 = vshrl.u32 %v5060_v59, 16  ;;  %v1623_v26 = vshrl.u32 %v5065_v12, 16  ;;  %3199 = vmatprep.subr.bf16.mxu0 %v4391_v55  ;;  %v5118_v58 = vld [vmem:[%s4611_s21 + $0x98] sm:$0x1] }
  0xf1   : > { %2500 = vrot.lane.b32.xlu1 %v3900_v63, %s4388_s18  ;;  %v1416_v29 = vsel %vm4643_vm2, %v1414_v8, %v1415_v45  ;;  %v1626_v30 = vshll.u32 %v5065_v12, 16  ;;  %v1636_v32 = vshrl.u32 %v5076_v5, 16  ;;  %4001 = vmatprep.subr.bf16.mxu1 %v4391_v55  ;;  %v1821_v39 = vor.u32 %v1820_v14, %v1817_v11  ;;  %v5114_v45 = vld [vmem:[%s4611_s21 + $0x94] sm:$0xf] }
  0xf2   : > { %v3908_v34 = vcombine.low %v1413_v2, %v1416_v29  ;;  %v1625_v38 = vrot.slane %v1623_v26, 4  ;;  %v1824_v47 = vshll.u32 %v5060_v59, 16  ;;  %v1830_v42 = vrot.slane %v1828_v23, 4  ;;  %v4135_v8 = vld [vmem:[#allocation5 + $0x18] sm:$0xff]  }
  0xf3   : > { %2484 = vrot.lane.b32.xlu0 %v3892_v6, %s4388_s18  ;;  %v1628_v46 = vrot.slane %v1626_v30, 5  ;;  %v1834_v48 = vshll.u32 %v5084_v27, 16  ;;  %3200 = vmatpush1.bf16.msra.mxu0 %v4133_v21  ;;  %v3932_v7 = vcombine.low %v5043_v50, %v5060_v59  ;;  %v1822_v1 = vrot.slane %v1821_v39, 4  ;;  %v286_v6 = vld [vmem:[%s4611_s21 + $0x30] sm:$0xf] }
  0xf4   : > { %v5092_v33 = vpop.permute.xlu1 %2318  ;;  %4010 = vmatpush1.bf16.msra.mxu1 %v4133_v21  ;;  %v1632_v40 = vshll.u32 %v5076_v5, 16  ;;  %v1638_v51 = vrot.slane %v1636_v32, 4  ;;  %3201 = vmatprep.subr.bf16.mxu0 %v4391_v55  ;;  %v3924_v9 = vcombine.low %v5065_v12, %v5076_v5  ;;  %v1826_v53 = vrot.slane %v1824_v47, 5  ;;  %v5140_v47 = vld [vmem:[%s4611_s21 + $0x38] sm:$0x1] }
  0xf5   : > { %2580 = vrot.lane.b32.xlu1 %v3916_v15, %s4385_s22  ;;  %v1629_v13 = vor.u32 %v1628_v46, %v1625_v38  ;;  %v1642_v54 = vshll.u32 %v5097_v41, 16  ;;  %4002 = vmatprep.subr.bf16.mxu1 %v4391_v55  ;;  %v1836_v50 = vrot.slane %v1834_v48, 5  ;;  %v618_v56 = vshrl.u32 %v302_v49, 16  ;;  %v5135_v38 = vld [vmem:[%s4611_s21 + $0x34] sm:$0xf] }
  0xf6   : > { %v1634_v57 = vrot.slane %v1632_v40, 5  ;;  %v621_v60 = vshll.u32 %v302_v49, 16  ;;  %v1827_v12 = vsel %vm4687_vm5, %v1822_v1, %v1826_v53  ;;  %v1831_v63 = vor.u32 %v1830_v42, %v1826_v53  ;;  %v725_v40 = vld [vmem:[%s4611_s21 + $0x90] sm:$0xe] }
  0xf7   : > { %2564 = vrot.lane.b32.xlu0 %v3908_v34, %s4385_s22  ;;  %v1630_v0 = vrot.slane %v1629_v13, 4  ;;  %v1644_v2 = vrot.slane %v1642_v54, 5  ;;  %3202 = vmatpush1.bf16.msra.mxu0 %v4134_v43  ;;  %v620_v21 = vrot.slane %v618_v56, 4  ;;  %v627_v23 = vshll.u32 %v5114_v45, 16 }
  0xf8   : > { %4011 = vmatpush1.bf16.msra.mxu1 %v4134_v43  ;;  %v5123_v11 = vpop.permute.xlu1 %2574  ;;  %v1639_v14 = vor.u32 %v1638_v51, %v1634_v57  ;;  %v623_v15 = vrot.slane %v621_v60, 5  ;;  %3203 = vmatprep.subr.bf16.mxu0 %v4391_v55  ;;  %v1832_v29 = vrot.slane %v1831_v63, 4  ;;  %v631_v32 = vshrl.u32 %v5114_v45, 16  ;;  %v4138_v51 = vld [vmem:[#allocation5 + $0x20] sm:$0xff]  }
  0xf9   : > { %2676 = vrot.lane.b32.xlu1 %v3932_v7, %s4389_s4  ;;  %v1635_v30 = vsel %vm4687_vm5, %v1630_v0, %v1634_v57  ;;  %v637_v34 = vshll.u32 %v5118_v58, 16  ;;  %4003 = vmatprep.subr.bf16.mxu1 %v4391_v55  ;;  %v629_v46 = vrot.slane %v627_v23, 5  ;;  %v426_v42 = vshrl.u32 %v286_v6, 16  ;;  %v717_v0 = vld [vmem:[%s4611_s21 + $0x30] sm:$0xe] }
  0xfa   : > { %v5128_v26 = vpop.permute.xlu0 %2222  ;;  %v1640_v39 = vrot.slane %v1639_v14, 4  ;;  %v624_v43 = vor.u32 %v623_v15, %v620_v21  ;;  %v1837_v48 = vsel %vm4687_vm5, %v1832_v29, %v1836_v50  ;;  %v633_v49 = vrot.slane %v631_v32, 4 }
  0xfb   : > { %2660 = vrot.lane.b32.xlu0 %v3924_v9, %s4389_s4  ;;  %v639_v7 = vrot.slane %v637_v34, 5  ;;  %v429_v1 = vshll.u32 %v286_v6, 16  ;;  %3204 = vmatpush1.bf16.msra.mxu0 %v4135_v8  ;;  %v3948_v53 = vcombine.low %v1827_v12, %v1837_v48  ;;  %v428_v54 = vrot.slane %v426_v42, 4 }
  0xfc   : > { %4012 = vmatpush1.bf16.msra.mxu1 %v4135_v8  ;;  %v1645_v9 = vsel %vm4687_vm5, %v1640_v39, %v1644_v2  ;;  %v625_v13 = vrot.slane %v624_v43, 4  ;;  %3205 = vmatprep.subr.bf16.mxu0 %v4391_v55  ;;  %v634_v56 = vor.u32 %v633_v49, %v629_v46  ;;  %v435_v63 = vshll.u32 %v5135_v38, 16 }
  0xfd   : > { %4004 = vmatprep.subr.bf16.mxu1 %v4391_v55  ;;  %v3940_v50 = vcombine.low %v1635_v30, %v1645_v9  ;;  %v431_v60 = vrot.slane %v429_v1, 5  ;;  %2756 = vrot.lane.b32.xlu1 %v3948_v53, %s4390_s8  ;;  %v439_v2 = vshrl.u32 %v5135_v38, 16  ;;  %v445_v8 = vshll.u32 %v5140_v47, 16  ;;  %v4140_v30 = vld [vmem:[#allocation5 + $0x28] sm:$0xff]  }
  0xfe   : > { %v630_v12 = vsel %vm4687_vm5, %v625_v13, %v629_v46  ;;  %v3661_v14 = vrot.slane %v725_v40, 9  ;;  %v635_v21 = vrot.slane %v634_v56, 4  ;;  %v437_v23 = vrot.slane %v435_v63, 5  ;;  %v5164_v46 = vld [vmem:[%s4611_s21 + $0x9c] sm:$0xf] }
  0xff   : > { %v5149_v57 = vpop.permute.xlu0 %2238  ;;  %v5153_v6 = vpop.permute.xlu1 %2494  ;;  %2740 = vrot.lane.b32.xlu0 %v3940_v50, %s4390_s8  ;;  %v432_v15 = vor.u32 %v431_v60, %v428_v54  ;;  %v866_v29 = vrot.slane %v5114_v45, 5  ;;  %3206 = vmatpush1.bf16.msra.mxu0 %v4138_v51  ;;  %v441_v32 = vrot.slane %v439_v2, 4  ;;  %v447_v34 = vrot.slane %v445_v8, 5  ;;  %v5177_v9 = vld [vmem:[%s4611_s21 + $0xa0] sm:$0xf] }
 0x100   : > { %v869_v39 = vrot.slane %v5118_v58, 5  ;;  %v3653_v43 = vrot.slane %v717_v0, 9  ;;  %4013 = vmatpush1.bf16.msra.mxu1 %v4138_v51  ;;  %3207 = vmatprep.subr.bf16.mxu0 %v4391_v55  ;;  %v640_v42 = vsel %vm4687_vm5, %v635_v21, %v639_v7  ;;  %v810_v53 = vrot.slane %v5135_v38, 5  ;;  %v5188_v60 = vld [vmem:[%s4611_s21 + $0x3c] sm:$0xf]  ;;  %v4142_v38 = vld [vmem:[#allocation5 + $0x30] sm:$0xff]  }
 0x101   : > { %v433_v48 = vrot.slane %v432_v15, 4  ;;  %v867_v45 = vsel %vm4643_vm2, %v3661_v14, %v866_v29  ;;  %v868_v49 = vrot.slane %v866_v29, 4  ;;  %4005 = vmatprep.subr.bf16.mxu1 %v4391_v55  ;;  %v3853_v58 = vcombine.low %v630_v12, %v640_v42  ;;  %v5194_v2 = vld [vmem:[%s4611_s21 + $0x40] sm:$0xf]  ;;  %v288_v8 = vld [vmem:[%s4611_s21 + $0x3c] sm:$0xf] }
 0x102   : > { %v442_v40 = vor.u32 %v441_v32, %v437_v23  ;;  %v813_v51 = vrot.slane %v5140_v47, 5  ;;  %v1230_v50 = vshrl.u32 %v5164_v46, 16  ;;  %v1233_v56 = vshll.u32 %v5164_v46, 16 }
 0x103   : > { %v5172_v1 = vpop.permute.xlu0 %2478  ;;  %v5179_v7 = vpop.permute.xlu1 %2670  ;;  %v438_v13 = vsel %vm4687_vm5, %v433_v48, %v437_v23  ;;  %v870_v54 = vsel %vm4643_vm2, %v868_v49, %v869_v39  ;;  %3208 = vmatpush1.bf16.msra.mxu0 %v4140_v30  ;;  %2246 = vrot.lane.b32.xlu1 %v3853_v58, %s4387_s11  ;;  %v811_v0 = vsel %vm4643_vm2, %v3653_v43, %v810_v53  ;;  %v812_v12 = vrot.slane %v810_v53, 4  ;;  %v4145_v49 = vld [vmem:[#allocation5 + $0x38] sm:$0xff]   ;;  %v4173_v53 = vld [vmem:[%s4611_s21 + $0x4] sm:$0xf] }
 0x104   : > { %v443_v47 = vrot.slane %v442_v40, 4  ;;  %v3869_v63 = vcombine.low %v867_v45, %v870_v54  ;;  %4014 = vmatpush1.bf16.msra.mxu1 %v4140_v30  ;;  %v1232_v14 = vrot.slane %v1230_v50, 4  ;;  %v1235_v21 = vrot.slane %v1233_v56, 5  ;;  %3209 = vmatprep.subr.bf16.mxu0 %v4391_v55  ;;  %v5210_v45 = vld [vmem:[%s4611_s21 + $0xa4] sm:$0x1] }
 0x105   : > { %v1243_v15 = vshrl.u32 %v5177_v9, 16  ;;  %4006 = vmatprep.subr.bf16.mxu1 %v4391_v55  ;;  %v814_v29 = vsel %vm4643_vm2, %v812_v12, %v813_v51  ;;  %v1038_v30 = vshrl.u32 %v5188_v60, 16  ;;  %v1041_v32 = vshll.u32 %v5188_v60, 16  ;;  %v4174_v51 = vld [vmem:[%s4611_s21] sm:$0xf] }
 0x106   : > { %v448_v23 = vsel %vm4687_vm5, %v443_v47, %v447_v34  ;;  %v3861_v43 = vcombine.low %v811_v0, %v814_v29  ;;  %v3885_v42 = vcombine.low %v5164_v46, %v5177_v9  ;;  %v1051_v48 = vshrl.u32 %v5194_v2, 16  ;;  %v5222_v47 = vld [vmem:[%s4611_s21 + $0x44] sm:$0x1] }
 0x107   : > { %v3845_v39 = vcombine.low %v438_v13, %v448_v23  ;;  %3210 = vmatpush1.bf16.msra.mxu0 %v4142_v38  ;;  %v5212_v34 = vpop.permute.xlu0 %2654  ;;  %2326 = vrot.lane.b32.xlu1 %v3869_v63, %s4386_s24  ;;  %v1040_v58 = vrot.slane %v1038_v30, 4  ;;  %v1043_v40 = vrot.slane %v1041_v32, 5  ;;  %v3825_v13 = vcombine.low %v4174_v51, %v4173_v53  ;;  %v3725_v23 = vld [vmem:[%s4611_s21 + $0x9c] sm:$0xe]  ;;  %v4175_v51 = vld [vmem:[%s4611_s21 + $0x64] sm:$0xf] }
 0x108   : > { %vm2814_vm6 = vcmask 130048   ;;  %4015 = vmatpush1.bf16.msra.mxu1 %v4142_v38  ;;  %vm2863_vm7 = vcmask 261120   ;;  %v1236_v54 = vor.u32 %v1235_v21, %v1232_v14  ;;  %v1239_v50 = vshll.u32 %v5177_v9, 16  ;;  %3211 = vmatprep.subr.bf16.mxu0 %v4391_v55  ;;  %v4146_v30 = vld [vmem:[#allocation5 + $0x40] sm:$0xff]  }
 0x109   : > { %2230 = vrot.lane.b32.xlu0 %v3845_v39, %s4387_s11  ;;  %v1245_v56 = vrot.slane %v1243_v15, 4  ;;  %v2817_v63 = vsel %vm2814_vm6, %v3825_v13, %v5128_v26  ;;  %v1249_v0 = vshll.u32 %v5210_v45, 16  ;;  %v1044_v38 = vor.u32 %v1043_v40, %v1040_v58  ;;  %4007 = vmatprep.subr.bf16.mxu1 %v4391_v55  ;;  %v3717_v40 = vld [vmem:[%s4611_s21 + $0x3c] sm:$0xe]  ;;  %v4176_v13 = vld [vmem:[%s4611_s21 + $0x60] sm:$0xf] }
 0x10a   : > { %v5217_v46 = vpop.permute.xlu1 %2750  ;;  %v1047_v12 = vshll.u32 %v5194_v2, 16  ;;  %v3877_v14 = vcombine.low %v5188_v60, %v5194_v2  ;;  %v1237_v21 = vrot.slane %v1236_v54, 4  ;;  %v1241_v15 = vrot.slane %v1239_v50, 5 }
 0x10b   : > { %v1053_v29 = vrot.slane %v1051_v48, 4  ;;  %3212 = vmatpush1.bf16.msra.mxu0 %v4145_v49  ;;  %2422 = vrot.lane.b32.xlu1 %v3885_v42, %s4384_s20  ;;  %v2865_v26 = vsel %vm2863_vm7, %v2817_v63, %v5067_v61  ;;  %v1045_v32 = vrot.slane %v1044_v38, 4  ;;  %v1057_v58 = vshll.u32 %v5222_v47, 16 }
 0x10c   : > { %v1049_v39 = vrot.slane %v1047_v12, 5  ;;  %4016 = vmatpush1.bf16.msra.mxu1 %v4145_v49  ;;  %v1246_v60 = vor.u32 %v1245_v56, %v1241_v15  ;;  %v1251_v53 = vrot.slane %v1249_v0, 5  ;;  %v3833_v48 = vcombine.low %v4176_v13, %v4175_v51  ;;  %3213 = vmatprep.subr.bf16.mxu0 %v4391_v55  ;;  %v5242_v42 = vpop.permute.xlu0 %2734  ;;  %v5279_v51 = vld [vmem:[%s4611_s21 + $0xac] sm:$0xf] }
 0x10d   : > { %2310 = vrot.lane.b32.xlu0 %v3861_v43, %s4386_s24  ;;  %v3741_v54 = vrot.slane %v3725_v23, 9  ;;  %v1242_v61 = vsel %vm4687_vm5, %v1237_v21, %v1241_v15  ;;  %v1059_v63 = vrot.slane %v1057_v58, 5  ;;  %v1475_v38 = vrot.slane %v5177_v9, 5  ;;  %4008 = vmatprep.subr.bf16.mxu1 %v4391_v55 }
 0x10e   : > { %v1054_v50 = vor.u32 %v1053_v29, %v1049_v39  ;;  %v1247_v49 = vrot.slane %v1246_v60, 4  ;;  %v2841_v56 = vsel %vm2814_vm6, %v3833_v48, %v5149_v57  ;;  %v1478_v0 = vrot.slane %v5210_v45, 5 }
 0x10f   : > { %v3733_v12 = vrot.slane %v3717_v40, 9  ;;  %3214 = vmatpush1.bf16.msra.mxu0 %v4146_v30  ;;  %v1050_v23 = vsel %vm4687_vm5, %v1045_v32, %v1049_v39  ;;  %v2881_v9 = vsel %vm2863_vm7, %v2841_v56, %v5092_v33  ;;  %v1477_v15 = vrot.slane %v1475_v38, 4  ;;  %v3769_v32 = vld [vmem:[%s4611_s21 + $0xa8] sm:$0xf] }
 0x110   : > { %v5248_v43 = vpop.permute.xlu1 %2240  ;;  %v1055_v21 = vrot.slane %v1054_v50, 4  ;;  %4017 = vmatpush1.bf16.msra.mxu1 %v4146_v30  ;;  %v1252_v55 = vsel %vm4687_vm5, %v1247_v49, %v1251_v53  ;;  %v1476_v57 = vsel %vm4643_vm2, %v3741_v54, %v1475_v38  ;;  %v1419_v45 = vrot.slane %v5194_v2, 5  ;;  %v3753_v54 = vld [vmem:[%s4611_s21 + $0x48] sm:$0xf]  ;;  %v5289_v49 = vld [vmem:[%s4611_s21 + $0x4c] sm:$0xf] }
 0x111   : > { %2406 = vrot.lane.b32.xlu0 %v3877_v14, %s4384_s20  ;;  %v1422_v29 = vrot.slane %v5222_v47, 5  ;;  %v3901_v39 = vcombine.low %v1242_v61, %v1252_v55  ;;  %v1479_v14 = vsel %vm4643_vm2, %v1477_v15, %v1478_v0  ;;  %vm2896_vm8 = vcmask 392192   ;;  %v5350_v50 = vld [vmem:[%s4611_s21 + $0xa0] sm:$0xf] }
 0x112   : > { %v1060_v33 = vsel %vm4687_vm5, %v1055_v21, %v1059_v63  ;;  %v1420_v40 = vsel %vm4643_vm2, %v3733_v12, %v1419_v45  ;;  %v1421_v2 = vrot.slane %v1419_v45, 4  ;;  %vm2929_vm9 = vcmask 523264  }
 0x113   : > { %v3893_v58 = vcombine.low %v1050_v23, %v1060_v33  ;;  %2502 = vrot.lane.b32.xlu1 %v3901_v39, %s4388_s18  ;;  %v3917_v60 = vcombine.low %v1476_v57, %v1479_v14  ;;  %v2914_v53 = vsel %vm2896_vm8, %v2881_v9, %v5036_v36  ;;  %v1839_v13 = vshrl.u32 %v3769_v32, 16 }
 0x114   : > { %v5269_v30 = vpop.permute.xlu1 %2320  ;;  %v1842_v48 = vshll.u32 %v3769_v32, 16  ;;  %v1423_v38 = vsel %vm4643_vm2, %v1421_v2, %v1422_v29  ;;  %v2898_v56 = vsel %vm2896_vm8, %v2865_v26, %v5051_v20  ;;  %v2947_v23 = vsel %vm2929_vm9, %v2914_v53, %v5153_v6  ;;  %v5304_v26 = vld [vmem:[%s4611_s21 + $0xb0] sm:$0x1]  ;;  %v4180_v29 = vld [vmem:[%s4611_s21 + $0x80] sm:$0x1] }
 0x115   : > { %2486 = vrot.lane.b32.xlu0 %v3893_v58, %s4388_s18  ;;  %v3909_v36 = vcombine.low %v1420_v40, %v1423_v38  ;;  %v1841_v0 = vrot.slane %v1839_v13, 4  ;;  %v1852_v21 = vshrl.u32 %v5279_v51, 16  ;;  %v1647_v9 = vshrl.u32 %v3753_v54, 16  ;;  %v5315_v40 = vld [vmem:[%s4611_s21 + $0x50] sm:$0x1] }
 0x116   : > { %v5273_v47 = vpop.permute.xlu0 %2224  ;;  %v1844_v12 = vrot.slane %v1842_v48, 5  ;;  %v1650_v15 = vshll.u32 %v3753_v54, 16  ;;  %v2931_v57 = vsel %vm2929_vm9, %v2898_v56, %v5172_v1  ;;  %v3933_v45 = vcombine.low %v3769_v32, %v5279_v51  ;;  %v3793_v48 = vld [vmem:[%s4611_s21 + $0x18] sm:$0xe] }
 0x117   : > { %2582 = vrot.lane.b32.xlu1 %v3917_v60, %s4385_s22  ;;  %v1660_v20 = vshrl.u32 %v5289_v49, 16  ;;  %vm2962_vm10 = vcmask 654336   ;;  %v1649_v39 = vrot.slane %v1647_v9, 4  ;;  %v3925_v14 = vcombine.low %v3753_v54, %v5289_v49 }
 0x118   : > { %v5306_v6 = vpop.permute.xlu1 %2416  ;;  %v1652_v33 = vrot.slane %v1650_v15, 5  ;;  %vm2995_vm11 = vcmask 785408   ;;  %v2980_v1 = vsel %vm2962_vm10, %v2947_v23, %v5123_v11  ;;  %v1845_v32 = vor.u32 %v1844_v12, %v1841_v0  ;;  %v3801_v0 = vld [vmem:[%s4611_s21 + $0x78] sm:$0xe] }
 0x119   : > { %2566 = vrot.lane.b32.xlu0 %v3909_v36, %s4385_s22  ;;  %v1848_v58 = vshll.u32 %v5279_v51, 16  ;;  %v5319_v2 = vsel %vm2962_vm10, %v2931_v57, %v5099_v44  ;;  %v1854_v60 = vrot.slane %v1852_v21, 4  ;;  %v1858_v53 = vshll.u32 %v5304_v26, 16 }
 0x11a   : > { %v5296_v55 = vpop.permute.xlu0 %2304  ;;  %v1653_v13 = vor.u32 %v1652_v33, %v1649_v39  ;;  %v1846_v11 = vrot.slane %v1845_v32, 4  ;;  %v1656_v36 = vshll.u32 %v5289_v49, 16  ;;  %v1662_v56 = vrot.slane %v1660_v20, 4  ;;  %v304_v20 = vld [vmem:[%s4611_s21 + $0x9c] sm:$0xf] }
 0x11b   : > { %2678 = vrot.lane.b32.xlu1 %v3933_v45, %s4389_s4  ;;  %v1850_v38 = vrot.slane %v1848_v58, 5  ;;  %v5331_v44 = vsel %vm2995_vm11, %v2980_v1, %v5179_v7  ;;  %v1860_v12 = vrot.slane %v1858_v53, 5  ;;  %v1666_v21 = vshll.u32 %v5315_v40, 16  ;;  %v4178_v1 = vld [vmem:[%s4611_s21 + $0x20] sm:$0x1] }
 0x11c   : > { %v1654_v23 = vrot.slane %v1653_v13, 4  ;;  %v1658_v57 = vrot.slane %v1656_v36, 5  ;;  %v3809_v45 = vrot.slane %v3793_v48, 9  ;;  %v2003_v32 = vrot.slane %v4178_v1, 5  ;;  %v4179_v48 = vld [vmem:[%s4611_s21 + $0x7c] sm:$0xf] }
 0x11d   : > { %2662 = vrot.lane.b32.xlu0 %v3925_v14, %s4389_s4  ;;  %v1851_v9 = vsel %vm4687_vm5, %v1846_v11, %v1850_v38  ;;  %v1855_v15 = vor.u32 %v1854_v60, %v1850_v38  ;;  %v1668_v33 = vrot.slane %v1666_v21, 5  ;;  %v4177_v14 = vld [vmem:[%s4611_s21 + $0x1c] sm:$0xf]  ;;  %v3817_v58 = vrot.slane %v3801_v0, 9 }
 0x11e   : > { %v5323_v54 = vpop.permute.xlu0 %2400  ;;  %v2000_v7 = vrot.slane %v4177_v14, 5  ;;  %v1659_v11 = vsel %vm4687_vm5, %v1654_v23, %v1658_v57  ;;  %v1663_v60 = vor.u32 %v1662_v56, %v1658_v57  ;;  %v2056_v38 = vrot.slane %v4179_v48, 5 }
 0x11f   : > { %v1856_v13 = vrot.slane %v1855_v15, 4  ;;  %v2059_v14 = vrot.slane %v4180_v29, 5  ;;  %v642_v0 = vshrl.u32 %v304_v20, 16  ;;  %v5361_v29 = vld [vmem:[%s4611_s21 + $0xa4] sm:$0x1]  ;;  %v645_v63 = vshll.u32 %v304_v20, 16 }
 0x120   : > { %v5337_v39 = vpop.permute.xlu1 %2496  ;;  %v2001_v36 = vsel %vm4643_vm2, %v3809_v45, %v2000_v7  ;;  %v2002_v21 = vrot.slane %v2000_v7, 4  ;;  %v1664_v1 = vrot.slane %v1663_v60, 4  ;;  %v2057_v56 = vsel %vm4643_vm2, %v3817_v58, %v2056_v38  ;;  %v5372_v60 = vld [vmem:[%s4611_s21 + $0x40] sm:$0xf] }
 0x121   : > { %v1861_v15 = vsel %vm4687_vm5, %v1856_v13, %v1860_v12  ;;  %v2058_v23 = vrot.slane %v2056_v38, 4  ;;  %v644_v7 = vrot.slane %v642_v0, 4  ;;  %v655_v20 = vshrl.u32 %v5350_v50, 16  ;;  %v5377_v0 = vld [vmem:[%s4611_s21 + $0x44] sm:$0x1] }
 0x122   : > { %v5341_v53 = vpop.permute.xlu0 %2480  ;;  %v3949_v48 = vcombine.low %v1851_v9, %v1861_v15  ;;  %v2004_v45 = vsel %vm4643_vm2, %v2002_v21, %v2003_v32  ;;  %v1669_v12 = vsel %vm4687_vm5, %v1664_v1, %v1668_v33  ;;  %v651_v9 = vshll.u32 %v5350_v50, 16 }
 0x123   : > { %v3953_v13 = vcombine.low %v2001_v36, %v2004_v45  ;;  %v2060_v58 = vsel %vm4643_vm2, %v2058_v23, %v2059_v14  ;;  %v3941_v32 = vcombine.low %v1659_v11, %v1669_v12  ;;  %v647_v21 = vrot.slane %v645_v63, 5 }
 0x124   : > { %v5356_v57 = vpop.permute.xlu1 %2576  ;;  %2758 = vrot.lane.b32.xlu1 %v3949_v48, %s4390_s8  ;;  %v3961_v38 = vcombine.low %v2057_v56, %v2060_v58  ;;  %v653_v33 = vrot.slane %v651_v9, 5  ;;  %v661_v36 = vshll.u32 %v5361_v29, 16  ;;  %v450_v15 = vshrl.u32 %v288_v8, 16 }
 0x125   : > { %3978 = vmatprep.mubr.msk.bf16.mxu0 %vm2814_vm6, %v3953_v13  ;;  %v453_v14 = vshll.u32 %v288_v8, 16  ;;  %2742 = vrot.lane.b32.xlu0 %v3941_v32, %s4390_s8  ;;  %v648_v11 = vor.u32 %v647_v21, %v644_v7  ;;  %v657_v56 = vrot.slane %v655_v20, 4  ;;  %v459_v63 = vshll.u32 %v5372_v60, 16  ;;  %v726_v21 = vld [vmem:[%s4611_s21 + $0x9c] sm:$0xe] }
 0x126   : > { %v5364_v28 = vpop.permute.xlu0 %2560  ;;  %3986 = vmatprep.mubr.msk.bf16.mxu1 %vm2814_vm6, %v3961_v38  ;;  %v463_v23 = vshrl.u32 %v5372_v60, 16  ;;  %v663_v48 = vrot.slane %v661_v36, 5  ;;  %v452_v45 = vrot.slane %v450_v15, 4  ;;  %v469_v13 = vshll.u32 %v5377_v0, 16 }
 0x127   : > { %v455_v12 = vrot.slane %v453_v14, 5  ;;  %v649_v58 = vrot.slane %v648_v11, 4  ;;  %v658_v8 = vor.u32 %v657_v56, %v653_v33  ;;  %v461_v9 = vrot.slane %v459_v63, 5 }
 0x128   : > { %v5381_v1 = vpop.permute.xlu1 %2672  ;;  %v465_v61 = vrot.slane %v463_v23, 4  ;;  %v2997_v7 = vsel %vm2995_vm11, %v5319_v2, %v5212_v34  ;;  %v471_v38 = vrot.slane %v469_v13, 5  ;;  %vm3028_vm12 = vcmask 916480   ;;  %v718_v23 = vld [vmem:[%s4611_s21 + $0x3c] sm:$0xe] }
 0x129   : > { %v456_v32 = vor.u32 %v455_v12, %v452_v45  ;;  %v654_v36 = vsel %vm4687_vm5, %v649_v58, %v653_v33  ;;  %v659_v15 = vrot.slane %v658_v8, 4  ;;  %v3030_v11 = vsel %vm3028_vm12, %v2997_v7, %v5242_v42  ;;  %v4181_v58 = vld [vmem:[%s4611_s21 + $0x6c] sm:$0xf]  ;;  %v4182_v8 = vld [vmem:[%s4611_s21 + $0x70] sm:$0xf] }
 0x12a   : > { %v5388_v35 = vpop.permute.xlu0 %2656  ;;  %v466_v14 = vor.u32 %v465_v61, %v461_v9  ;;  %3230 = vmatmul.mubr.bf16.vlgmr.msra.gmra.mrb[0].mxu0 %v3030_v11  ;;  %v3054_v63 = vsel %vm3028_vm12, %v5331_v44, %v5217_v46  ;;  %v3662_v45 = vrot.slane %v726_v21, 9  ;;  %v873_v42 = vrot.slane %v5350_v50, 5  ;;  %v3691_v44 = vld [vmem:[%s4611_s21 + $0xa8] sm:$0xf] }
 0x12b   : > { %v457_v2 = vrot.slane %v456_v32, 4  ;;  %v664_v33 = vsel %vm4687_vm5, %v659_v15, %v663_v48  ;;  %3294 = vmatmul.mubr.bf16.vlgmr.msra.gmra.mrb[0].mxu1 %v3054_v63  ;;  %v3834_v7 = vcombine.low %v4181_v58, %v4182_v8  ;;  %v876_v46 = vrot.slane %v5361_v29, 5  ;;  %v4183_v63 = vld [vmem:[%s4611_s21 + $0xc] sm:$0xf] }
 0x12c   : > { %v5394_v20 = vpop.permute.xlu1 %2752  ;;  %v467_v61 = vrot.slane %v466_v14, 4  ;;  %v3854_v12 = vcombine.low %v654_v36, %v664_v33  ;;  %v874_v32 = vsel %vm4643_vm2, %v3662_v45, %v873_v42  ;;  %v875_v50 = vrot.slane %v873_v42, 4  ;;  %v5420_v36 = vld [vmem:[%s4611_s21 + $0xac] sm:$0xf]  ;;  %v4184_v33 = vld [vmem:[%s4611_s21 + $0x10] sm:$0xf] }
 0x12d   : > { %v462_v13 = vsel %vm4687_vm5, %v457_v2, %v461_v9  ;;  %v3654_v21 = vrot.slane %v718_v23, 9  ;;  %v817_v14 = vrot.slane %v5372_v60, 5  ;;  %v820_v11 = vrot.slane %v5377_v0, 5  ;;  %v5436_v58 = vld [vmem:[%s4611_s21 + $0x4c] sm:$0xf] }
 0x12e   : > { %v472_v48 = vsel %vm4687_vm5, %v467_v61, %v471_v38  ;;  %v5422_v9 = vpop.permute.xlu0 %2736  ;;  %2248 = vrot.lane.b32.xlu1 %v3854_v12, %s4387_s11  ;;  %v3675_v38 = vld [vmem:[%s4611_s21 + $0x48] sm:$0xf]  ;;  %v3826_v23 = vcombine.low %v4183_v63, %v4184_v33  ;;  %v877_v61 = vsel %vm4643_vm2, %v875_v50, %v876_v46  ;;  %v1254_v45 = vshrl.u32 %v3691_v44, 16 }
 0x12f   : > { %v3846_v29 = vcombine.low %v462_v13, %v472_v48  ;;  %v1257_v42 = vshll.u32 %v3691_v44, 16  ;;  %v3870_v60 = vcombine.low %v874_v32, %v877_v61  ;;  %v818_v0 = vsel %vm4643_vm2, %v3654_v21, %v817_v14  ;;  %v3710_v21 = vld [vmem:[%s4611_s21 + $0xb0] sm:$0x1] }
 0x130   : > { %v819_v12 = vrot.slane %v817_v14, 4  ;;  %v1267_v13 = vshrl.u32 %v5420_v36, 16  ;;  %v2844_v8 = vsel %vm2814_vm6, %v3834_v7, %v5248_v43  ;;  %v1256_v48 = vrot.slane %v1254_v45, 4  ;;  %v3702_v14 = vld [vmem:[%s4611_s21 + $0x50] sm:$0x1] }
 0x131   : > { %v5429_v2 = vpop.permute.xlu1 %2242  ;;  %2232 = vrot.lane.b32.xlu0 %v3846_v29, %s4387_s11  ;;  %v1259_v46 = vrot.slane %v1257_v42, 5  ;;  %v1062_v50 = vshrl.u32 %v3675_v38, 16  ;;  %v3886_v29 = vcombine.low %v3691_v44, %v5420_v36  ;;  %v1065_v32 = vshll.u32 %v3675_v38, 16 }
 0x132   : > { %2328 = vrot.lane.b32.xlu1 %v3870_v60, %s4386_s24  ;;  %v821_v63 = vsel %vm4643_vm2, %v819_v12, %v820_v11  ;;  %v1075_v33 = vshrl.u32 %v5436_v58, 16  ;;  %v2820_v43 = vsel %vm2814_vm6, %v3826_v23, %v5273_v47  ;;  %v3878_v42 = vcombine.low %v3675_v38, %v5436_v58  ;;  %v3726_v47 = vld [vmem:[%s4611_s21 + $0xa8] sm:$0xe] }
 0x133   : > { %v3862_v7 = vcombine.low %v818_v0, %v821_v63  ;;  %v1064_v45 = vrot.slane %v1062_v50, 4  ;;  %v1067_v11 = vrot.slane %v1065_v32, 5  ;;  %v1260_v44 = vor.u32 %v1259_v46, %v1256_v48  ;;  %v3718_v48 = vld [vmem:[%s4611_s21 + $0x48] sm:$0xe] }
 0x134   : > { %v1263_v12 = vshll.u32 %v5420_v36, 16  ;;  %v1269_v34 = vrot.slane %v1267_v13, 4  ;;  %v1273_v15 = vshll.u32 %v3710_v21, 16  ;;  %v1071_v56 = vshll.u32 %v5436_v58, 16 }
 0x135   : > { %v5451_v61 = vpop.permute.xlu1 %2322  ;;  %2312 = vrot.lane.b32.xlu0 %v3862_v7, %s4386_s24  ;;  %v1077_v62 = vrot.slane %v1075_v33, 4  ;;  %v1081_v10 = vshll.u32 %v3702_v14, 16  ;;  %v2883_v23 = vsel %vm2863_vm7, %v2844_v8, %v5269_v30  ;;  %v1261_v38 = vrot.slane %v1260_v44, 4 }
 0x136   : > { %v5456_v60 = vpop.permute.xlu0 %2226  ;;  %2424 = vrot.lane.b32.xlu1 %v3886_v29, %s4384_s20  ;;  %v1265_v0 = vrot.slane %v1263_v12, 5  ;;  %v1068_v50 = vor.u32 %v1067_v11, %v1064_v45  ;;  %v2867_v13 = vsel %vm2863_vm7, %v2820_v43, %v5296_v55  ;;  %v2916_v46 = vsel %vm2896_vm8, %v2883_v23, %v5306_v6  ;;  %v5495_v23 = vld [vmem:[%s4611_s21 + $0xb8] sm:$0xf] }
 0x137   : > { %v1275_v63 = vrot.slane %v1273_v15, 5  ;;  %v1073_v32 = vrot.slane %v1071_v56, 5  ;;  %v1083_v30 = vrot.slane %v1081_v10, 5  ;;  %v3742_v8 = vrot.slane %v3726_v47, 9  ;;  %v5480_v10 = vld [vmem:[%s4611_s21 + $0xb4] sm:$0xf] }
 0x138   : > { %v1270_v7 = vor.u32 %v1269_v34, %v1265_v0  ;;  %v1069_v22 = vrot.slane %v1068_v50, 4  ;;  %v1482_v11 = vrot.slane %v5420_v36, 5  ;;  %v1485_v55 = vrot.slane %v3710_v21, 5  ;;  %6426 = vst [vmem:[#allocation12_spill] sm:$0xff] %v5495_v23  ;;  %v3755_v50 = vld [vmem:[%s4611_s21 + $0x54] sm:$0xf] }
 0x139   : > { %v5472_v29 = vpop.permute.xlu1 %2418  ;;  %2408 = vrot.lane.b32.xlu0 %v3878_v42, %s4384_s20  ;;  %v1078_v45 = vor.u32 %v1077_v62, %v1073_v32  ;;  %v3734_v43 = vrot.slane %v3718_v48, 9  ;;  %v1266_v6 = vsel %vm4687_vm5, %v1261_v38, %v1265_v0  ;;  %v1426_v15 = vrot.slane %v5436_v58, 5 }
 0x13a   : > { %v5470_v33 = vpop.permute.xlu0 %2306  ;;  %v1271_v56 = vrot.slane %v1270_v7, 4  ;;  %v1429_v34 = vrot.slane %v3702_v14, 5  ;;  %v2900_v44 = vsel %vm2896_vm8, %v2867_v13, %v5323_v54  ;;  %v1074_v62 = vsel %vm4687_vm5, %v1069_v22, %v1073_v32  ;;  %v5509_v7 = vld [vmem:[%s4611_s21 + $0x58] sm:$0xf] }
 0x13b   : > { %v1079_v36 = vrot.slane %v1078_v45, 4  ;;  %v1484_v21 = vrot.slane %v1482_v11, 4  ;;  %v1483_v58 = vsel %vm4643_vm2, %v3742_v8, %v1482_v11  ;;  %v1427_v14 = vsel %vm4643_vm2, %v3734_v43, %v1426_v15  ;;  %6427 = vst [vmem:[#allocation13_spill] sm:$0xff] %v5509_v7 }
 0x13c   : > { %v1276_v12 = vsel %vm4687_vm5, %v1271_v56, %v1275_v63  ;;  %v1428_v47 = vrot.slane %v1426_v15, 4  ;;  %v1863_v0 = vshrl.u32 %v5480_v10, 16  ;;  %v2949_v13 = vsel %vm2929_vm9, %v2916_v46, %v5337_v39  ;;  %v5521_v15 = vld [vmem:[%s4611_s21 + $0xbc] sm:$0x1] }
 0x13d   : > { %v3902_v54 = vcombine.low %v1266_v6, %v1276_v12  ;;  %v1084_v22 = vsel %vm4687_vm5, %v1079_v36, %v1083_v30  ;;  %v1486_v38 = vsel %vm4643_vm2, %v1484_v21, %v1485_v55  ;;  %v1866_v32 = vshll.u32 %v5480_v10, 16 }
 0x13e   : > { %v5486_v42 = vpop.permute.xlu0 %2402  ;;  %v3894_v48 = vcombine.low %v1074_v62, %v1084_v22  ;;  %v1430_v63 = vsel %vm4643_vm2, %v1428_v47, %v1429_v34  ;;  %v2933_v30 = vsel %vm2929_vm9, %v2900_v44, %v5341_v53  ;;  %v3918_v45 = vcombine.low %v1483_v58, %v1486_v38  ;;  %v3794_v38 = vld [vmem:[%s4611_s21 + $0x24] sm:$0xe] }
 0x13f   : > { %2504 = vrot.lane.b32.xlu1 %v3902_v54, %s4388_s18  ;;  %v1865_v11 = vrot.slane %v1863_v0, 4  ;;  %v1876_v55 = vshrl.u32 %v5495_v23, 16  ;;  %v3910_v46 = vcombine.low %v1427_v14, %v1430_v63  ;;  %v1868_v43 = vrot.slane %v1866_v32, 5  ;;  %v5534_v14 = vld [vmem:[%s4611_s21 + $0x5c] sm:$0x1] }
 0x140   : > { %2488 = vrot.lane.b32.xlu0 %v3894_v48, %s4388_s18  ;;  %v1671_v6 = vshrl.u32 %v3755_v50, 16  ;;  %v1674_v56 = vshll.u32 %v3755_v50, 16  ;;  %v5526_v53 = vsel %vm2962_vm10, %v2949_v13, %v5356_v57  ;;  %v2966_v44 = vsel %vm2962_vm10, %v2933_v30, %v5364_v28  ;;  %v3802_v63 = vld [vmem:[%s4611_s21 + $0x84] sm:$0xe] }
 0x141   : > { %v5511_v8 = vpop.permute.xlu1 %2498  ;;  %v1684_v62 = vshrl.u32 %v5509_v7, 16  ;;  %v3934_v36 = vcombine.low %v5480_v10, %v5495_v23  ;;  %v1869_v58 = vor.u32 %v1868_v43, %v1865_v11  ;;  %v3926_v57 = vcombine.low %v3755_v50, %v5509_v7 }
 0x142   : > { %v5517_v39 = vpop.permute.xlu0 %2482  ;;  %v1673_v21 = vrot.slane %v1671_v6, 4  ;;  %v1676_v12 = vrot.slane %v1674_v56, 5  ;;  %v1872_v54 = vshll.u32 %v5495_v23, 16  ;;  %v1878_v28 = vrot.slane %v1876_v55, 4 }
 0x143   : > { %2584 = vrot.lane.b32.xlu1 %v3918_v45, %s4385_s22  ;;  %v1882_v22 = vshll.u32 %v5521_v15, 16  ;;  %v1870_v10 = vrot.slane %v1869_v58, 4  ;;  %v1680_v48 = vshll.u32 %v5509_v7, 16  ;;  %v1686_v13 = vrot.slane %v1684_v62, 4  ;;  %v5562_v58 = vld [vmem:[%s4611_s21 + $0xac] sm:$0xf] }
 0x144   : > { %2568 = vrot.lane.b32.xlu0 %v3910_v46, %s4385_s22  ;;  %v1677_v0 = vor.u32 %v1676_v12, %v1673_v21  ;;  %v5550_v50 = vsel %vm2995_vm11, %v2966_v44, %v5388_v35  ;;  %v1874_v30 = vrot.slane %v1872_v54, 5  ;;  %v1690_v11 = vshll.u32 %v5534_v14, 16  ;;  %v306_v12 = vld [vmem:[%s4611_s21 + $0xa8] sm:$0xf] }
 0x145   : > { %v5536_v47 = vpop.permute.xlu1 %2578  ;;  %v1884_v45 = vrot.slane %v1882_v22, 5  ;;  %v1682_v46 = vrot.slane %v1680_v48, 5  ;;  %v3810_v43 = vrot.slane %v3794_v38, 9  ;;  %v2009_v6 = vrot.slane %v2007_v18, 4 }
 0x146   : > { %v5546_v32 = vpop.permute.xlu0 %2562  ;;  %v1678_v55 = vrot.slane %v1677_v0, 4  ;;  %v1875_v62 = vsel %vm4687_vm5, %v1870_v10, %v1874_v30  ;;  %v1879_v35 = vor.u32 %v1878_v28, %v1874_v30  ;;  %v1692_v44 = vrot.slane %v1690_v11, 5  ;;  %v5576_v10 = vld [vmem:[%s4611_s21 + $0xb0] sm:$0x1] }
 0x147   : > { %2680 = vrot.lane.b32.xlu1 %v3934_v36, %s4389_s4  ;;  %v3818_v21 = vrot.slane %v3802_v63, 9  ;;  %v1687_v22 = vor.u32 %v1686_v13, %v1682_v46  ;;  %v2008_v36 = vsel %vm4643_vm2, %v3810_v43, %v2007_v18  ;;  %v6428_v38 = vrot.slane %v4837_v3, 5 }
 0x148   : > { %2664 = vrot.lane.b32.xlu0 %v3926_v57, %s4389_s4  ;;  %v1683_v54 = vsel %vm4687_vm5, %v1678_v55, %v1682_v46  ;;  %v1880_v0 = vrot.slane %v1879_v35, 4  ;;  %v6429_v48 = vrot.slane %v4812_v24, 5  ;;  %v666_v30 = vshrl.u32 %v306_v12, 16 }
 0x149   : > { %v5555_v56 = vpop.permute.xlu1 %2674  ;;  %v2011_v28 = vsel %vm4643_vm2, %v2009_v6, %v6428_v38  ;;  %v1688_v18 = vrot.slane %v1687_v22, 4  ;;  %v669_v3 = vshll.u32 %v306_v12, 16  ;;  %v675_v11 = vshll.u32 %v5562_v58, 16  ;;  %v5598_v12 = vld [vmem:[%s4611_s21 + $0x4c] sm:$0xf] }
 0x14a   : > { %v3954_v57 = vcombine.low %v2008_v36, %v2011_v28  ;;  %v2064_v13 = vsel %vm4643_vm2, %v3818_v21, %v6429_v48  ;;  %v6430_v31 = vmov %v6429_v48  ;;  %v5585_v55 = vpop.permute.xlu0 %2658  ;;  %v1885_v46 = vsel %vm4687_vm5, %v1880_v0, %v1884_v45  ;;  %v290_v21 = vld [vmem:[%s4611_s21 + $0x48] sm:$0xf]  ;;  %v5605_v0 = vld [vmem:[%s4611_s21 + $0x50] sm:$0x1] }
 0x14b   : > { %v2065_v63 = vrot.slane %v6430_v31, 4  ;;  %v6431_v43 = vrot.slane %v4830_v37, 5  ;;  %v679_v24 = vshrl.u32 %v5562_v58, 16  ;;  %v685_v35 = vshll.u32 %v5576_v10, 16 }
 0x14c   : > { %3979 = vmatprep.mubr.msk.bf16.mxu0 %vm2814_vm6, %v3954_v57  ;;  %v3950_v36 = vcombine.low %v1875_v62, %v1885_v46  ;;  %v1693_v45 = vsel %vm4687_vm5, %v1688_v18, %v1692_v44  ;;  %v668_v28 = vrot.slane %v666_v30, 4  ;;  %v671_v57 = vrot.slane %v669_v3, 5 }
 0x14d   : > { %v2067_v6 = vsel %vm4643_vm2, %v2065_v63, %v6431_v43  ;;  %v5600_v22 = vpop.permute.xlu1 %2754  ;;  %v3942_v37 = vcombine.low %v1683_v54, %v1693_v45  ;;  %v677_v48 = vrot.slane %v675_v11, 5  ;;  %v681_v31 = vrot.slane %v679_v24, 4 }
 0x14e   : > { %v3962_v38 = vcombine.low %v2064_v13, %v2067_v6  ;;  %2760 = vrot.lane.b32.xlu1 %v3950_v36, %s4390_s8  ;;  %v687_v63 = vrot.slane %v685_v35, 5  ;;  %v474_v43 = vshrl.u32 %v290_v21, 16  ;;  %v477_v34 = vshll.u32 %v290_v21, 16  ;;  %v727_v6 = vld [vmem:[%s4611_s21 + $0xa8] sm:$0xe] }
 0x14f   : > { %v483_v62 = vshll.u32 %v5598_v12, 16  ;;  %2744 = vrot.lane.b32.xlu0 %v3942_v37, %s4390_s8  ;;  %v672_v44 = vor.u32 %v671_v57, %v668_v28  ;;  %v682_v13 = vor.u32 %v681_v31, %v677_v48  ;;  %v487_v18 = vshrl.u32 %v5598_v12, 16  ;;  %v5617_v24 = vpop.permute.xlu0 %2738 }
 0x150   : > { %3987 = vmatprep.mubr.msk.bf16.mxu1 %vm2814_vm6, %v3962_v38  ;;  %v493_v54 = vshll.u32 %v5605_v0, 16  ;;  %v476_v30 = vrot.slane %v474_v43, 4  ;;  %v479_v3 = vrot.slane %v477_v34, 5  ;;  %v3033_v46 = vsel %vm3028_vm12, %v5550_v50, %v5422_v9  ;;  %v719_v50 = vld [vmem:[%s4611_s21 + $0x48] sm:$0xe] }
 0x151   : > { %v485_v11 = vrot.slane %v483_v62, 5  ;;  %v3015_v35 = vsel %vm2995_vm11, %v5526_v53, %v5381_v1  ;;  %v673_v21 = vrot.slane %v672_v44, 4  ;;  %v683_v36 = vrot.slane %v682_v13, 4  ;;  %3238 = vmatmul.mubr.bf16.gmra.mrb[4].mxu0 %v3033_v46  ;;  %v4185_v13 = vld [vmem:[%s4611_s21 + $0x78] sm:$0xf] }
 0x152   : > { %v489_v45 = vrot.slane %v487_v18, 4  ;;  %v480_v28 = vor.u32 %v479_v3, %v476_v30  ;;  %v495_v37 = vrot.slane %v493_v54, 5  ;;  %v3057_v9 = vsel %vm3028_vm12, %v3015_v35, %v5394_v20  ;;  %v4186_v18 = vld [vmem:[%s4611_s21 + $0x7c] sm:$0xf] }
 0x153   : > { %v5622_v38 = vpop.permute.xlu1 %2244  ;;  %v678_v1 = vsel %vm4687_vm5, %v673_v21, %v677_v48  ;;  %v688_v53 = vsel %vm4687_vm5, %v683_v36, %v687_v63  ;;  %3302 = vmatmul.mubr.bf16.gmra.mrb[4].mxu1 %v3057_v9  ;;  %v3663_v31 = vrot.slane %v727_v6, 9  ;;  %v3835_v20 = vcombine.low %v4185_v13, %v4186_v18  ;;  %v3693_v63 = vld [vmem:[%s4611_s21 + $0xb4] sm:$0xf]  ;;  %v4188_v9 = vld [vmem:[%s4611_s21 + $0x1c] sm:$0xf] }
 0x154   : > { %v490_v57 = vor.u32 %v489_v45, %v485_v11  ;;  %v3855_v62 = vcombine.low %v678_v1, %v688_v53  ;;  %v481_v44 = vrot.slane %v480_v28, 4  ;;  %v880_v30 = vrot.slane %v5562_v58, 5  ;;  %v5647_v58 = vld [vmem:[%s4611_s21 + $0xb8] sm:$0xf] }
 0x155   : > { %v883_v48 = vrot.slane %v5576_v10, 5  ;;  %v3655_v3 = vrot.slane %v719_v50, 9  ;;  %v824_v21 = vrot.slane %v5598_v12, 5  ;;  %v827_v36 = vrot.slane %v5605_v0, 5  ;;  %v4187_v28 = vld [vmem:[%s4611_s21 + $0x18] sm:$0xf] }
 0x156   : > { %v491_v54 = vrot.slane %v490_v57, 4  ;;  %2250 = vrot.lane.b32.xlu1 %v3855_v62, %s4387_s11  ;;  %v486_v35 = vsel %vm4687_vm5, %v481_v44, %v485_v11  ;;  %v3827_v50 = vcombine.low %v4187_v28, %v4188_v9  ;;  %v881_v1 = vsel %vm4643_vm2, %v3663_v31, %v880_v30  ;;  %v3677_v11 = vld [vmem:[%s4611_s21 + $0x54] sm:$0xf]  ;;  %v5661_v44 = vld [vmem:[%s4611_s21 + $0x58] sm:$0xf] }
 0x157   : > { %v5638_v46 = vpop.permute.xlu1 %2324  ;;  %v882_v53 = vrot.slane %v880_v30, 4  ;;  %v825_v12 = vsel %vm4643_vm2, %v3655_v3, %v824_v21  ;;  %v826_v0 = vrot.slane %v824_v21, 4  ;;  %v1278_v62 = vshrl.u32 %v3693_v63, 16  ;;  %v5672_v21 = vld [vmem:[%s4611_s21 + $0xbc] sm:$0x1] }
 0x158   : > { %v496_v45 = vsel %vm4687_vm5, %v491_v54, %v495_v37  ;;  %v2847_v37 = vsel %vm2814_vm6, %v3835_v20, %v5429_v2  ;;  %v1281_v18 = vshll.u32 %v3693_v63, 16  ;;  %v1291_v31 = vshrl.u32 %v5647_v58, 16 }
 0x159   : > { %v5649_v10 = vpop.permute.xlu0 %2228  ;;  %v3847_v57 = vcombine.low %v486_v35, %v496_v45  ;;  %v884_v13 = vsel %vm4643_vm2, %v882_v53, %v883_v48  ;;  %v828_v30 = vsel %vm4643_vm2, %v826_v0, %v827_v36  ;;  %v1280_v3 = vrot.slane %v1278_v62, 4  ;;  %v3703_v53 = vld [vmem:[%s4611_s21 + $0x5c] sm:$0x1] }
 0x15a   : > { %v3871_v54 = vcombine.low %v881_v1, %v884_v13  ;;  %v1086_v35 = vshrl.u32 %v3677_v11, 16  ;;  %v3863_v20 = vcombine.low %v825_v12, %v828_v30  ;;  %v1283_v28 = vrot.slane %v1281_v18, 5 }
 0x15b   : > { %2234 = vrot.lane.b32.xlu0 %v3847_v57, %s4387_s11  ;;  %v5676_v2 = vpop.permute.xlu1 %2420  ;;  %v1089_v48 = vshll.u32 %v3677_v11, 16  ;;  %v1099_v9 = vshrl.u32 %v5661_v44, 16  ;;  %v2823_v1 = vsel %vm2814_vm6, %v3827_v50, %v5456_v60  ;;  %v3887_v36 = vcombine.low %v3693_v63, %v5647_v58 }
 0x15c   : > { %2330 = vrot.lane.b32.xlu1 %v3871_v54, %s4386_s24  ;;  %v1088_v57 = vrot.slane %v1086_v35, 4  ;;  %v3879_v0 = vcombine.low %v3677_v11, %v5661_v44  ;;  %v1284_v13 = vor.u32 %v1283_v28, %v1280_v3  ;;  %v1287_v12 = vshll.u32 %v5647_v58, 16  ;;  %v3727_v54 = vld [vmem:[%s4611_s21 + $0xb4] sm:$0xe] }
 0x15d   : > { %v5674_v45 = vpop.permute.xlu0 %2308  ;;  %v1091_v62 = vrot.slane %v1089_v48, 5  ;;  %v1293_v18 = vrot.slane %v1291_v31, 4  ;;  %v1297_v30 = vshll.u32 %v5672_v21, 16  ;;  %v1095_v43 = vshll.u32 %v5661_v44, 16  ;;  %v3719_v28 = vld [vmem:[%s4611_s21 + $0x54] sm:$0xe] }
 0x15e   : > { %v1101_v60 = vrot.slane %v1099_v9, 4  ;;  %v1105_v50 = vshll.u32 %v3703_v53, 16  ;;  %v2885_v63 = vsel %vm2863_vm7, %v2847_v37, %v5451_v61  ;;  %v1285_v11 = vrot.slane %v1284_v13, 4 }
 0x15f   : > { %2314 = vrot.lane.b32.xlu0 %v3863_v20, %s4386_s24  ;;  %v1289_v35 = vrot.slane %v1287_v12, 5  ;;  %v1092_v3 = vor.u32 %v1091_v62, %v1088_v57  ;;  %v2869_v31 = vsel %vm2863_vm7, %v2823_v1, %v5470_v33  ;;  %v2918_v20 = vsel %vm2896_vm8, %v2885_v63, %v5472_v29 }
 0x160   : > { %2426 = vrot.lane.b32.xlu1 %v3887_v36, %s4384_s20  ;;  %v1299_v48 = vrot.slane %v1297_v30, 5  ;;  %v1097_v9 = vrot.slane %v1095_v43, 5  ;;  %v1107_v61 = vrot.slane %v1105_v50, 5  ;;  %v3743_v37 = vrot.slane %v3727_v54, 9  ;;  %v5726_v54 = vld [vmem:[%s4611_s21 + $0xc4] sm:$0xf] }
 0x161   : > { %v5690_v6 = vpop.permute.xlu0 %2404  ;;  %v1294_v23 = vor.u32 %v1293_v18, %v1289_v35  ;;  %v1093_v7 = vrot.slane %v1092_v3, 4  ;;  %v1489_v62 = vrot.slane %v5647_v58, 5  ;;  %v1492_v33 = vrot.slane %v5672_v21, 5  ;;  %v5711_v18 = vld [vmem:[%s4611_s21 + $0xc0] sm:$0xf] }
 0x162   : > { %v1102_v57 = vor.u32 %v1101_v60, %v1097_v9  ;;  %v3735_v1 = vrot.slane %v3719_v28, 9  ;;  %v1290_v29 = vsel %vm4687_vm5, %v1285_v11, %v1289_v35  ;;  %v1433_v13 = vrot.slane %v5661_v44, 5  ;;  %v3757_v35 = vld [vmem:[%s4611_s21 + $0x60] sm:$0xf] }
 0x163   : > { %v5700_v34 = vpop.permute.xlu1 %2500  ;;  %2410 = vrot.lane.b32.xlu0 %v3879_v0, %s4384_s20  ;;  %v1295_v43 = vrot.slane %v1294_v23, 4  ;;  %v1436_v12 = vrot.slane %v3703_v53, 5  ;;  %v2902_v0 = vsel %vm2896_vm8, %v2869_v31, %v5486_v42  ;;  %v1098_v58 = vsel %vm4687_vm5, %v1093_v7, %v1097_v9  ;;  %v5740_v9 = vld [vmem:[%s4611_s21 + $0x64] sm:$0xf] }
 0x164   : > { %v1103_v21 = vrot.slane %v1102_v57, 4  ;;  %v1491_v30 = vrot.slane %v1489_v62, 4  ;;  %v1490_v44 = vsel %vm4643_vm2, %v3743_v37, %v1489_v62  ;;  %v1434_v53 = vsel %vm4643_vm2, %v3735_v1, %v1433_v13 }
 0x165   : > { %v5705_v36 = vpop.permute.xlu0 %2484  ;;  %v1300_v23 = vsel %vm4687_vm5, %v1295_v43, %v1299_v48  ;;  %v1435_v50 = vrot.slane %v1433_v13, 4  ;;  %v1887_v11 = vshrl.u32 %v5711_v18, 16  ;;  %v2951_v28 = vsel %vm2929_vm9, %v2918_v20, %v5511_v8  ;;  %v5750_v43 = vld [vmem:[%s4611_s21 + $0xc8] sm:$0x1] }
 0x166   : > { %v3903_v42 = vcombine.low %v1290_v29, %v1300_v23  ;;  %v1108_v7 = vsel %vm4687_vm5, %v1103_v21, %v1107_v61  ;;  %v1493_v63 = vsel %vm4643_vm2, %v1491_v30, %v1492_v33  ;;  %v1890_v48 = vshll.u32 %v5711_v18, 16 }
 0x167   : > { %v5717_v60 = vpop.permute.xlu1 %2580  ;;  %v3895_v3 = vcombine.low %v1098_v58, %v1108_v7  ;;  %v1437_v31 = vsel %vm4643_vm2, %v1435_v50, %v1436_v12  ;;  %v2935_v61 = vsel %vm2929_vm9, %v2902_v0, %v5517_v39  ;;  %v3919_v57 = vcombine.low %v1490_v44, %v1493_v63 }
 0x168   : > { %2506 = vrot.lane.b32.xlu1 %v3903_v42, %s4388_s18  ;;  %v1889_v62 = vrot.slane %v1887_v11, 4  ;;  %v1900_v33 = vshrl.u32 %v5726_v54, 16  ;;  %v3911_v8 = vcombine.low %v1434_v53, %v1437_v31  ;;  %v1892_v20 = vrot.slane %v1890_v48, 5  ;;  %v5763_v53 = vld [vmem:[%s4611_s21 + $0x68] sm:$0x1] }
 0x169   : > { %v5742_v37 = vpop.permute.xlu0 %2564  ;;  %2490 = vrot.lane.b32.xlu0 %v3895_v3, %s4388_s18  ;;  %v1695_v1 = vshrl.u32 %v3757_v35, 16  ;;  %v1698_v29 = vshll.u32 %v3757_v35, 16  ;;  %v2984_v13 = vsel %vm2962_vm10, %v2951_v28, %v5536_v47  ;;  %v2968_v39 = vsel %vm2962_vm10, %v2935_v61, %v5546_v32  ;;  %v3795_v42 = vld [vmem:[%s4611_s21 + $0x30] sm:$0xe] }
 0x16a   : > { %v3935_v12 = vcombine.low %v5711_v18, %v5726_v54  ;;  %v1708_v0 = vshrl.u32 %v5740_v9, 16  ;;  %v3927_v23 = vcombine.low %v3757_v35, %v5740_v9  ;;  %v1893_v44 = vor.u32 %v1892_v20, %v1889_v62  ;;  %v3803_v3 = vld [vmem:[%s4611_s21 + $0x90] sm:$0xe] }
 0x16b   : > { %v5759_v58 = vpop.permute.xlu1 %2676  ;;  %v1697_v21 = vrot.slane %v1695_v1, 4  ;;  %v1700_v30 = vrot.slane %v1698_v29, 5  ;;  %v5768_v47 = vsel %vm2995_vm11, %v2984_v13, %v5555_v56  ;;  %v1896_v32 = vshll.u32 %v5726_v54, 16 }
 0x16c   : > { %2586 = vrot.lane.b32.xlu1 %v3919_v57, %s4385_s22  ;;  %v1902_v18 = vrot.slane %v1900_v33, 4  ;;  %v1906_v50 = vshll.u32 %v5750_v43, 16  ;;  %v1894_v7 = vrot.slane %v1893_v44, 4  ;;  %v1704_v11 = vshll.u32 %v5740_v9, 16 }
 0x16d   : > { %2570 = vrot.lane.b32.xlu0 %v3911_v8, %s4385_s22  ;;  %v1701_v63 = vor.u32 %v1700_v30, %v1697_v21  ;;  %v1710_v35 = vrot.slane %v1708_v0, 4  ;;  %v5776_v28 = vpop.permute.xlu0 %2660  ;;  %v5780_v56 = vsel %vm2995_vm11, %v2968_v39, %v5585_v55  ;;  %v1898_v31 = vrot.slane %v1896_v32, 5  ;;  %v5789_v39 = vld [vmem:[%s4611_s21 + $0xb4] sm:$0xf]  ;;  %v5792_v0 = vld [vmem:[%s4611_s21 + $0xb8] sm:$0xf] }
 0x16e   : > { %v1908_v48 = vrot.slane %v1906_v50, 5  ;;  %v1714_v61 = vshll.u32 %v5763_v53, 16  ;;  %v1706_v62 = vrot.slane %v1704_v11, 5  ;;  %v3811_v33 = vrot.slane %v3795_v42, 9  ;;  %v5808_v42 = vld [vmem:[%s4611_s21 + $0xbc] sm:$0x1] }
 0x16f   : > { %v1702_v57 = vrot.slane %v1701_v63, 4  ;;  %v6432_v8 = vrot.slane %v4947_v4, 5  ;;  %v1899_v1 = vsel %vm4687_vm5, %v1894_v7, %v1898_v31  ;;  %v1903_v29 = vor.u32 %v1902_v18, %v1898_v31  ;;  %v5794_v21 = vpop.permute.xlu1 %2756 }
 0x170   : > { %2682 = vrot.lane.b32.xlu1 %v3935_v12, %s4389_s4  ;;  %v1716_v13 = vrot.slane %v1714_v61, 5  ;;  %v3819_v55 = vrot.slane %v3803_v3, 9  ;;  %v1711_v44 = vor.u32 %v1710_v35, %v1706_v62  ;;  %v6434_v18 = vrot.slane %v4961_v25, 5 }
 0x171   : > { %v2016_v20 = vrot.slane %v6432_v8, 4  ;;  %2666 = vrot.lane.b32.xlu0 %v3927_v23, %s4389_s4  ;;  %v1707_v30 = vsel %vm4687_vm5, %v1702_v57, %v1706_v62  ;;  %v6433_v12 = vmov %v6432_v8  ;;  %v1904_v7 = vrot.slane %v1903_v29, 4  ;;  %v5819_v57 = vpop.permute.xlu0 %2740  ;;  %v5831_v29 = vld [vmem:[%s4611_s21 + $0x54] sm:$0xf] }
 0x172   : > { %v2015_v32 = vsel %vm4643_vm2, %v3811_v33, %v6433_v12  ;;  %v6435_v63 = vrot.slane %v4932_v52, 5  ;;  %v1712_v3 = vrot.slane %v1711_v44, 4  ;;  %v690_v25 = vshrl.u32 %v5789_v39, 16 }
 0x173   : > { %v2018_v50 = vsel %vm4643_vm2, %v2016_v20, %v6434_v18  ;;  %v693_v31 = vshll.u32 %v5789_v39, 16  ;;  %v699_v61 = vshll.u32 %v5792_v0, 16  ;;  %v1909_v62 = vsel %vm4687_vm5, %v1904_v7, %v1908_v48  ;;  %v5839_v18 = vld [vmem:[%s4611_s21 + $0x5c] sm:$0x1] }
 0x174   : > { %v3955_v23 = vcombine.low %v2015_v32, %v2018_v50  ;;  %v2071_v11 = vsel %vm4643_vm2, %v3819_v55, %v6435_v63  ;;  %v6436_v4 = vmov %v6435_v63  ;;  %v6437_v33 = vrot.slane %v4955_v16, 5  ;;  %v5834_v55 = vld [vmem:[%s4611_s21 + $0x58] sm:$0xf] }
 0x175   : > { %v2072_v35 = vrot.slane %v6436_v4, 4  ;;  %v703_v8 = vshrl.u32 %v5792_v0, 16  ;;  %v709_v20 = vshll.u32 %v5808_v42, 16  ;;  %v3951_v44 = vcombine.low %v1899_v1, %v1909_v62  ;;  %v5841_v63 = vpop.permute.xlu1 %2246 }
 0x176   : > { %3980 = vmatprep.mubr.msk.bf16.mxu0 %vm2814_vm6, %v3955_v23  ;;  %v1717_v12 = vsel %vm4687_vm5, %v1712_v3, %v1716_v13  ;;  %v692_v32 = vrot.slane %v690_v25, 4  ;;  %v695_v50 = vrot.slane %v693_v31, 5  ;;  %v701_v7 = vrot.slane %v699_v61, 5 }
 0x177   : > { %v2074_v52 = vsel %vm4643_vm2, %v2072_v35, %v6437_v33  ;;  %v3943_v16 = vcombine.low %v1707_v30, %v1717_v12  ;;  %v705_v23 = vrot.slane %v703_v8, 4  ;;  %2762 = vrot.lane.b32.xlu1 %v3951_v44, %s4390_s8  ;;  %v711_v4 = vrot.slane %v709_v20, 5 }
 0x178   : > { %v3963_v48 = vcombine.low %v2071_v11, %v2074_v52  ;;  %v498_v1 = vshrl.u32 %v5831_v29, 16  ;;  %v501_v13 = vshll.u32 %v5831_v29, 16  ;;  %v507_v11 = vshll.u32 %v5834_v55, 16  ;;  %v728_v52 = vld [vmem:[%s4611_s21 + $0xb4] sm:$0xe] }
 0x179   : > { %2746 = vrot.lane.b32.xlu0 %v3943_v16, %s4390_s8  ;;  %v696_v30 = vor.u32 %v695_v50, %v692_v32  ;;  %v706_v35 = vor.u32 %v705_v23, %v701_v7  ;;  %v511_v3 = vshrl.u32 %v5834_v55, 16  ;;  %v517_v25 = vshll.u32 %v5839_v18, 16  ;;  %v4189_v50 = vld [vmem:[%s4611_s21 + $0x84] sm:$0xf]  ;;  %v4190_v23 = vld [vmem:[%s4611_s21 + $0x88] sm:$0xf] }
 0x17a   : > { %3988 = vmatprep.mubr.msk.bf16.mxu1 %vm2814_vm6, %v3963_v48  ;;  %v500_v31 = vrot.slane %v498_v1, 4  ;;  %v503_v61 = vrot.slane %v501_v13, 5  ;;  %v509_v62 = vrot.slane %v507_v11, 5  ;;  %v3036_v33 = vsel %vm3028_vm12, %v5780_v56, %v5617_v24  ;;  %v4191_v13 = vld [vmem:[%s4611_s21 + $0x24] sm:$0xf] }
 0x17b   : > { %v5855_v8 = vpop.permute.xlu0 %2230  ;;  %v697_v20 = vrot.slane %v696_v30, 4  ;;  %v707_v44 = vrot.slane %v706_v35, 4  ;;  %v513_v12 = vrot.slane %v511_v3, 4  ;;  %v519_v48 = vrot.slane %v517_v25, 5  ;;  %3246 = vmatmul.mubr.bf16.gmra.mrb[8].mxu0 %v3036_v33  ;;  %v4192_v11 = vld [vmem:[%s4611_s21 + $0x28] sm:$0xf] }
 0x17c   : > { %v504_v32 = vor.u32 %v503_v61, %v500_v31  ;;  %v3060_v16 = vsel %vm3028_vm12, %v5768_v47, %v5600_v22  ;;  %v3836_v1 = vcombine.low %v4189_v50, %v4190_v23  ;;  %v3828_v24 = vcombine.low %v4191_v13, %v4192_v11  ;;  %v720_v56 = vld [vmem:[%s4611_s21 + $0x54] sm:$0xe]  ;;  %v5869_v31 = vpop.permute.xlu1 %2326 }
 0x17d   : > { %v702_v30 = vsel %vm4687_vm5, %v697_v20, %v701_v7  ;;  %v712_v35 = vsel %vm4687_vm5, %v707_v44, %v711_v4  ;;  %v514_v3 = vor.u32 %v513_v12, %v509_v62  ;;  %3310 = vmatmul.mubr.bf16.gmra.mrb[8].mxu1 %v3060_v16  ;;  %v3664_v25 = vrot.slane %v728_v52, 9  ;;  %v3695_v44 = vld [vmem:[%s4611_s21 + $0xc0] sm:$0xf]  ;;  %v5888_v16 = vld [vmem:[%s4611_s21 + $0xc4] sm:$0xf] }
 0x17e   : > { %v3856_v22 = vcombine.low %v702_v30, %v712_v35  ;;  %v505_v47 = vrot.slane %v504_v32, 4  ;;  %v2850_v61 = vsel %vm2814_vm6, %v3836_v1, %v5622_v38  ;;  %v2826_v33 = vsel %vm2814_vm6, %v3828_v24, %v5649_v10 }
 0x17f   : > { %v515_v50 = vrot.slane %v514_v3, 4  ;;  %v887_v7 = vrot.slane %v5792_v0, 5  ;;  %v890_v4 = vrot.slane %v5808_v42, 5  ;;  %v3656_v20 = vrot.slane %v720_v56, 9  ;;  %v5878_v52 = vpop.permute.xlu0 %2310  ;;  %v5900_v56 = vld [vmem:[%s4611_s21 + $0x64] sm:$0xf] }
 0x180   : > { %2252 = vrot.lane.b32.xlu1 %v3856_v22, %s4387_s11  ;;  %v510_v12 = vsel %vm4687_vm5, %v505_v47, %v509_v62  ;;  %v831_v38 = vrot.slane %v5834_v55, 5  ;;  %v834_v10 = vrot.slane %v5839_v18, 5  ;;  %v2887_v32 = vsel %vm2863_vm7, %v2850_v61, %v5638_v46  ;;  %v3679_v62 = vld [vmem:[%s4611_s21 + $0x60] sm:$0xf] }
 0x181   : > { %v520_v42 = vsel %vm4687_vm5, %v515_v50, %v519_v48  ;;  %v888_v23 = vsel %vm4643_vm2, %v3664_v25, %v887_v7  ;;  %v889_v1 = vrot.slane %v887_v7, 4  ;;  %v2871_v13 = vsel %vm2863_vm7, %v2826_v33, %v5674_v45  ;;  %v5906_v45 = vpop.permute.xlu1 %2422  ;;  %v3712_v33 = vld [vmem:[%s4611_s21 + $0xc8] sm:$0x1] }
 0x182   : > { %v3848_v11 = vcombine.low %v510_v12, %v520_v42  ;;  %v832_v18 = vsel %vm4643_vm2, %v3656_v20, %v831_v38  ;;  %v833_v24 = vrot.slane %v831_v38, 4  ;;  %v1302_v46 = vshrl.u32 %v3695_v44, 16  ;;  %v5914_v12 = vld [vmem:[%s4611_s21 + $0x68] sm:$0x1] }
 0x183   : > { %v891_v48 = vsel %vm4643_vm2, %v889_v1, %v890_v4  ;;  %v1305_v30 = vshll.u32 %v3695_v44, 16  ;;  %v1315_v35 = vshrl.u32 %v5888_v16, 16  ;;  %v3888_v3 = vcombine.low %v3695_v44, %v5888_v16  ;;  %v5916_v44 = vpop.permute.xlu0 %2406 }
 0x184   : > { %2236 = vrot.lane.b32.xlu0 %v3848_v11, %s4387_s11  ;;  %v3872_v25 = vcombine.low %v888_v23, %v891_v48  ;;  %v835_v22 = vsel %vm4643_vm2, %v833_v24, %v834_v10  ;;  %v1304_v47 = vrot.slane %v1302_v46, 4  ;;  %v1110_v61 = vshrl.u32 %v3679_v62, 16 }
 0x185   : > { %v3864_v50 = vcombine.low %v832_v18, %v835_v22  ;;  %v1307_v7 = vrot.slane %v1305_v30, 5  ;;  %v1113_v20 = vshll.u32 %v3679_v62, 16  ;;  %v1123_v4 = vshrl.u32 %v5900_v56, 16 }
 0x186   : > { %2332 = vrot.lane.b32.xlu1 %v3872_v25, %s4386_s24  ;;  %v1112_v38 = vrot.slane %v1110_v61, 4  ;;  %v3880_v42 = vcombine.low %v3679_v62, %v5900_v56  ;;  %v2920_v10 = vsel %vm2896_vm8, %v2887_v32, %v5676_v2  ;;  %v2904_v23 = vsel %vm2896_vm8, %v2871_v13, %v5690_v6  ;;  %v3728_v25 = vld [vmem:[%s4611_s21 + $0xc0] sm:$0xe] }
 0x187   : > { %v1115_v1 = vrot.slane %v1113_v20, 5  ;;  %v1308_v11 = vor.u32 %v1307_v7, %v1304_v47  ;;  %v1311_v18 = vshll.u32 %v5888_v16, 16  ;;  %v1317_v24 = vrot.slane %v1315_v35, 4  ;;  %v3720_v13 = vld [vmem:[%s4611_s21 + $0x60] sm:$0xe]  ;;  %v5932_v47 = vpop.permute.xlu1 %2502 }
 0x188   : > { %2316 = vrot.lane.b32.xlu0 %v3864_v50, %s4386_s24  ;;  %v1321_v46 = vshll.u32 %v3712_v33, 16  ;;  %v1119_v48 = vshll.u32 %v5900_v56, 16  ;;  %v1125_v30 = vrot.slane %v1123_v4, 4  ;;  %v1129_v62 = vshll.u32 %v5914_v12, 16 }
 0x189   : > { %v1309_v22 = vrot.slane %v1308_v11, 4  ;;  %v1313_v2 = vrot.slane %v1311_v18, 5  ;;  %v1116_v32 = vor.u32 %v1115_v1, %v1112_v38  ;;  %v2953_v6 = vsel %vm2929_vm9, %v2920_v10, %v5700_v34  ;;  %v5939_v11 = vpop.permute.xlu0 %2486 }
 0x18a   : > { %2428 = vrot.lane.b32.xlu1 %v3888_v3, %s4384_s20  ;;  %v1323_v35 = vrot.slane %v1321_v46, 5  ;;  %v1121_v61 = vrot.slane %v1119_v48, 5  ;;  %v1131_v50 = vrot.slane %v1129_v62, 5  ;;  %v2937_v7 = vsel %vm2929_vm9, %v2904_v23, %v5705_v36  ;;  %v5948_v48 = vld [vmem:[%s4611_s21 + $0xcc] sm:$0xf] }
 0x18b   : > { %v1314_v20 = vsel %vm4687_vm5, %v1309_v22, %v1313_v2  ;;  %v1318_v4 = vor.u32 %v1317_v24, %v1313_v2  ;;  %v1117_v38 = vrot.slane %v1116_v32, 4  ;;  %v3744_v1 = vrot.slane %v3728_v25, 9  ;;  %v5961_v22 = vld [vmem:[%s4611_s21 + $0xd0] sm:$0xf]  ;;  %v5963_v2 = vpop.permute.xlu1 %2582 }
 0x18c   : > { %2412 = vrot.lane.b32.xlu0 %v3880_v42, %s4384_s20  ;;  %v1126_v34 = vor.u32 %v1125_v30, %v1121_v61  ;;  %v1496_v3 = vrot.slane %v5888_v16, 5  ;;  %v1499_v10 = vrot.slane %v3712_v33, 5  ;;  %v3736_v18 = vrot.slane %v3720_v13, 9 }
 0x18d   : > { %v1319_v46 = vrot.slane %v1318_v4, 4  ;;  %v1122_v36 = vsel %vm4687_vm5, %v1117_v38, %v1121_v61  ;;  %v1440_v23 = vrot.slane %v5900_v56, 5  ;;  %v1443_v24 = vrot.slane %v5914_v12, 5  ;;  %v5972_v61 = vld [vmem:[%s4611_s21 + $0x70] sm:$0xf] }
 0x18e   : > { %v1127_v62 = vrot.slane %v1126_v34, 4  ;;  %v1497_v42 = vsel %vm4643_vm2, %v3744_v1, %v1496_v3  ;;  %v1498_v16 = vrot.slane %v1496_v3, 4  ;;  %v2986_v33 = vsel %vm2962_vm10, %v2953_v6, %v5717_v60 }
 0x18f   : > { %v1324_v30 = vsel %vm4687_vm5, %v1319_v46, %v1323_v35  ;;  %v1441_v56 = vsel %vm4643_vm2, %v3736_v18, %v1440_v23  ;;  %v1442_v25 = vrot.slane %v1440_v23, 4  ;;  %v2970_v12 = vsel %vm2962_vm10, %v2937_v7, %v5742_v37  ;;  %v3759_v35 = vld [vmem:[%s4611_s21 + $0x6c] sm:$0xf]  ;;  %v5986_v23 = vld [vmem:[%s4611_s21 + $0xd4] sm:$0x1] }
 0x190   : > { %v3904_v32 = vcombine.low %v1314_v20, %v1324_v30  ;;  %v1132_v13 = vsel %vm4687_vm5, %v1127_v62, %v1131_v50  ;;  %v1500_v60 = vsel %vm4643_vm2, %v1498_v16, %v1499_v10  ;;  %v1911_v6 = vshrl.u32 %v5948_v48, 16  ;;  %v5977_v20 = vpop.permute.xlu0 %2566  ;;  %v3796_v30 = vld [vmem:[%s4611_s21 + $0x3c] sm:$0xe] }
 0x191   : > { %v3896_v4 = vcombine.low %v1122_v36, %v1132_v13  ;;  %v3920_v38 = vcombine.low %v1497_v42, %v1500_v60  ;;  %v1444_v37 = vsel %vm4643_vm2, %v1442_v25, %v1443_v24  ;;  %v1914_v7 = vshll.u32 %v5948_v48, 16  ;;  %v5998_v60 = vpop.permute.xlu1 %2678 }
 0x192   : > { %2508 = vrot.lane.b32.xlu1 %v3904_v32, %s4388_s18  ;;  %v3912_v50 = vcombine.low %v1441_v56, %v1444_v37  ;;  %v1913_v1 = vrot.slane %v1911_v6, 4  ;;  %v1924_v34 = vshrl.u32 %v5961_v22, 16  ;;  %v3936_v3 = vcombine.low %v5948_v48, %v5961_v22  ;;  %v5995_v48 = vld [vmem:[%s4611_s21 + $0x74] sm:$0x1] }
 0x193   : > { %2492 = vrot.lane.b32.xlu0 %v3896_v4, %s4388_s18  ;;  %v1916_v10 = vrot.slane %v1914_v7, 5  ;;  %v1719_v18 = vshrl.u32 %v3759_v35, 16  ;;  %v1722_v46 = vshll.u32 %v3759_v35, 16  ;;  %v1732_v36 = vshrl.u32 %v5972_v61, 16  ;;  %v3804_v7 = vld [vmem:[%s4611_s21 + $0x9c] sm:$0xe] }
 0x194   : > { %v3928_v24 = vcombine.low %v3759_v35, %v5972_v61  ;;  %v3019_v62 = vsel %vm2995_vm11, %v2986_v33, %v5759_v58  ;;  %v3003_v42 = vsel %vm2995_vm11, %v2970_v12, %v5776_v28  ;;  %v1920_v16 = vshll.u32 %v5961_v22, 16 }
 0x195   : > { %v1721_v56 = vrot.slane %v1719_v18, 4  ;;  %v1724_v25 = vrot.slane %v1722_v46, 5  ;;  %v1917_v32 = vor.u32 %v1916_v10, %v1913_v1  ;;  %v1926_v13 = vrot.slane %v1924_v34, 4  ;;  %v6006_v1 = vpop.permute.xlu0 %2662 }
 0x196   : > { %2588 = vrot.lane.b32.xlu1 %v3920_v38, %s4385_s22  ;;  %v1922_v6 = vrot.slane %v1920_v16, 5  ;;  %v1930_v58 = vshll.u32 %v5986_v23, 16  ;;  %v1728_v33 = vshll.u32 %v5972_v61, 16  ;;  %v1734_v28 = vrot.slane %v1732_v36, 4 }
 0x197   : > { %2572 = vrot.lane.b32.xlu0 %v3912_v50, %s4385_s22  ;;  %v1918_v12 = vrot.slane %v1917_v32, 4  ;;  %v1725_v35 = vor.u32 %v1724_v25, %v1721_v56  ;;  %v1738_v4 = vshll.u32 %v5995_v48, 16  ;;  %v3812_v37 = vrot.slane %v3796_v30, 9 }
 0x198   : > { %v1927_v34 = vor.u32 %v1926_v13, %v1922_v6  ;;  %v1932_v10 = vrot.slane %v1930_v58, 5  ;;  %v1730_v18 = vrot.slane %v1728_v33, 5  ;;  %v6438_v38 = vrot.slane %v5076_v5, 5 }
 0x199   : > { %v1923_v36 = vsel %vm4687_vm5, %v1918_v12, %v1922_v6  ;;  %v1726_v16 = vrot.slane %v1725_v35, 4  ;;  %v1740_v50 = vrot.slane %v1738_v4, 5  ;;  %v6440_v13 = vrot.slane %v5097_v41, 5  ;;  %v3797_v35 = vld [vmem:[%s4611_s21 + $0x48] sm:$0xe] }
 0x19a   : > { %v2023_v46 = vrot.slane %v6438_v38, 4  ;;  %v6439_v56 = vmov %v6438_v38  ;;  %2684 = vrot.lane.b32.xlu1 %v3936_v3, %s4389_s4  ;;  %v1928_v25 = vrot.slane %v1927_v34, 4  ;;  %v1735_v32 = vor.u32 %v1734_v28, %v1730_v18  ;;  %v6028_v28 = vpop.permute.xlu1 %2758 }
 0x19b   : > { %v2022_v30 = vsel %vm4643_vm2, %v3812_v37, %v6439_v56  ;;  %v3820_v33 = vrot.slane %v3804_v7, 9  ;;  %2668 = vrot.lane.b32.xlu0 %v3928_v24, %s4389_s4  ;;  %v1731_v5 = vsel %vm4687_vm5, %v1726_v16, %v1730_v18  ;;  %v6441_v12 = vrot.slane %v5060_v59, 5  ;;  %v3805_v18 = vld [vmem:[%s4611_s21 + $0xa8] sm:$0xe]  ;;  %v4195_v56 = vld [vmem:[%s4611_s21 + $0x30] sm:$0xf] }
 0x19c   : > { %v2025_v58 = vsel %vm4643_vm2, %v2023_v46, %v6440_v13  ;;  %v3039_v41 = vsel %vm3028_vm12, %v3003_v42, %v5819_v57  ;;  %v1933_v4 = vsel %vm4687_vm5, %v1928_v25, %v1932_v10  ;;  %v1736_v24 = vrot.slane %v1735_v32, 4  ;;  %v4193_v46 = vld [vmem:[%s4611_s21 + $0x90] sm:$0xf]  ;;  %v4194_v10 = vld [vmem:[%s4611_s21 + $0x94] sm:$0xf]  ;;  %v2743_v25 = vpop.permute.xlu0 %2742 }
 0x19d   : > { %v3956_v6 = vcombine.low %v2022_v30, %v2025_v58  ;;  %v2079_v3 = vrot.slane %v6441_v12, 4  ;;  %v6442_v37 = vmov %v6441_v12  ;;  %v3063_v34 = vsel %vm3028_vm12, %v3019_v62, %v5794_v21  ;;  %v4196_v59 = vld [vmem:[%s4611_s21 + $0x34] sm:$0xf] }
 0x19e   : > { %v2078_v7 = vsel %vm4643_vm2, %v3820_v33, %v6442_v37  ;;  %v3952_v38 = vcombine.low %v1923_v36, %v1933_v4  ;;  %v6443_v57 = vrot.slane %v5084_v27, 5  ;;  %v3837_v16 = vcombine.low %v4193_v46, %v4194_v10  ;;  %v3798_v37 = vld [vmem:[%s4611_s21 + $0x54] sm:$0xe] }
 0x19f   : > { %3981 = vmatprep.mubr.msk.bf16.mxu0 %vm2814_vm6, %v3956_v6  ;;  %v3829_v30 = vcombine.low %v4195_v56, %v4196_v59  ;;  %v1741_v32 = vsel %vm4687_vm5, %v1736_v24, %v1740_v50  ;;  %v3813_v62 = vrot.slane %v3797_v35, 9  ;;  %v6444_v36 = vrot.slane %v5289_v49, 5 }
 0x1a0   : > { %v2081_v42 = vsel %vm4643_vm2, %v2079_v3, %v6443_v57  ;;  %3254 = vmatmul.mubr.bf16.gmra.mrb[12].mxu0 %v3039_v41  ;;  %v2094_v27 = vrot.slane %v5521_v15, 5  ;;  %2764 = vrot.lane.b32.xlu1 %v3952_v38, %s4390_s8  ;;  %v3944_v58 = vcombine.low %v1731_v5, %v1741_v32  ;;  %v3821_v6 = vrot.slane %v3805_v18, 9  ;;  %v6077_v35 = vpop.permute.xlu1 %2248  ;;  %v3806_v18 = vld [vmem:[%s4611_s21 + $0xb4] sm:$0xe] }
 0x1a1   : > { %v3964_v21 = vcombine.low %v2078_v7, %v2081_v42  ;;  %v2030_v13 = vrot.slane %v6444_v36, 4  ;;  %v2829_v33 = vsel %vm2814_vm6, %v3829_v30, %v5855_v8  ;;  %v2853_v19 = vsel %vm2814_vm6, %v3837_v16, %v5841_v63  ;;  %v6452_v30 = vld [vmem:[#allocation12_spill] sm:$0xff] }
 0x1a2   : > { %v2873_v50 = vsel %vm2863_vm7, %v2829_v33, %v5878_v52  ;;  %v6445_v12 = vmov %v6444_v36  ;;  %v6446_v5 = vrot.slane %v5315_v40, 5  ;;  %2748 = vrot.lane.b32.xlu0 %v3944_v58, %s4390_s8  ;;  %v2889_v3 = vsel %vm2863_vm7, %v2853_v19, %v5869_v31  ;;  %v3807_v36 = vld [vmem:[%s4611_s21 + $0xc0] sm:$0xe]  ;;  %v3800_v19 = vld [vmem:[%s4611_s21 + $0x6c] sm:$0xe] }
 0x1a3   : > { %3989 = vmatprep.mubr.msk.bf16.mxu1 %vm2814_vm6, %v3964_v21  ;;  %v2029_v15 = vsel %vm4643_vm2, %v3813_v62, %v6445_v12  ;;  %v2906_v63 = vsel %vm2896_vm8, %v2873_v50, %v5916_v44  ;;  %v6447_v49 = vrot.slane %v5279_v51, 5  ;;  %v2038_v40 = vrot.slane %v5534_v14, 5  ;;  %v6099_v51 = vpop.permute.xlu0 %2232 }
 0x1a4   : > { %v2032_v8 = vsel %vm4643_vm2, %v2030_v13, %v6446_v5  ;;  %3318 = vmatmul.mubr.bf16.gmra.mrb[12].mxu1 %v3063_v34  ;;  %v2922_v4 = vsel %vm2896_vm8, %v2889_v3, %v5906_v45  ;;  %v2939_v24 = vsel %vm2929_vm9, %v2906_v63, %v5939_v11  ;;  %v2098_v7 = vrot.slane %v5726_v54, 5  ;;  %v3808_v63 = vld [vmem:[%s4611_s21 + $0xcc] sm:$0xe] }
 0x1a5   : > { %v3957_v52 = vcombine.low %v2029_v15, %v2032_v8  ;;  %v2086_v41 = vrot.slane %v6447_v49, 4  ;;  %v6448_v31 = vmov %v6447_v49  ;;  %v2955_v34 = vsel %vm2929_vm9, %v2922_v4, %v5932_v47 }
 0x1a6   : > { %v2085_v44 = vsel %vm4643_vm2, %v3821_v6, %v6448_v31  ;;  %v2972_v14 = vsel %vm2962_vm10, %v2939_v24, %v5977_v20  ;;  %v6449_v45 = vrot.slane %v5304_v26, 5  ;;  %v2042_v38 = vrot.slane %v5740_v9, 5  ;;  %v3799_v20 = vld [vmem:[%s4611_s21 + $0x60] sm:$0xe] }
 0x1a7   : > { %3982 = vmatprep.mubr.msk.bf16.mxu0 %vm2814_vm6, %v3957_v52  ;;  %v2988_v54 = vsel %vm2962_vm10, %v2955_v34, %v5963_v2  ;;  %v3005_v47 = vsel %vm2995_vm11, %v2972_v14, %v6006_v1  ;;  %v2045_v42 = vrot.slane %v5763_v53, 5  ;;  %v3814_v10 = vrot.slane %v3798_v37, 9  ;;  %v2329_v2 = vpop.permute.xlu1 %2328  ;;  %v6450_v1 = vld [vmem:[#allocation13_spill] sm:$0xff]  ;;  %v2313_v13 = vpop.permute.xlu0 %2312 }
 0x1a8   : > { %v2088_v11 = vsel %vm4643_vm2, %v2086_v41, %v6449_v45  ;;  %v3021_v26 = vsel %vm2995_vm11, %v2988_v54, %v5998_v60  ;;  %v3042_v46 = vsel %vm3028_vm12, %v3005_v47, %v2743_v25  ;;  %v6451_v16 = vrot.slane %v6450_v1, 5  ;;  %v4200_v1 = vld [vmem:[%s4611_s21 + $0x40] sm:$0xf] }
 0x1a9   : > { %v3965_v57 = vcombine.low %v2085_v44, %v2088_v11  ;;  %3262 = vmatmul.mubr.bf16.gmra.mrb[16].mxu0 %v3042_v46  ;;  %v3066_v9 = vsel %vm3028_vm12, %v3021_v26, %v6028_v28  ;;  %v3822_v59 = vrot.slane %v3806_v18, 9  ;;  %v6453_v53 = vrot.slane %v6452_v30, 5  ;;  %v4197_v26 = vld [vmem:[%s4611_s21 + $0x9c] sm:$0xf]  ;;  %v4198_v46 = vld [vmem:[%s4611_s21 + $0xa0] sm:$0xf] }
 0x1aa   : > { %v2037_v56 = vrot.slane %v6451_v16, 4  ;;  %v2101_v60 = vrot.slane %v5750_v43, 5  ;;  %v6454_v25 = vmov %v6451_v16  ;;  %v3815_v62 = vrot.slane %v3799_v20, 9 }
 0x1ab   : > { %3990 = vmatprep.mubr.msk.bf16.mxu1 %vm2814_vm6, %v3965_v57  ;;  %v2093_v32 = vrot.slane %v6453_v53, 4  ;;  %v2036_v21 = vsel %vm4643_vm2, %v3814_v10, %v6454_v25  ;;  %v6455_v58 = vmov %v6453_v53  ;;  %v2044_v6 = vrot.slane %v2042_v38, 4  ;;  %v2409_v37 = vpop.permute.xlu0 %2408 }
 0x1ac   : > { %v2039_v28 = vsel %vm4643_vm2, %v2037_v56, %v2038_v40  ;;  %v2092_v33 = vsel %vm4643_vm2, %v3822_v59, %v6455_v58  ;;  %3326 = vmatmul.mubr.bf16.gmra.mrb[16].mxu1 %v3066_v9  ;;  %v2043_v15 = vsel %vm4643_vm2, %v3815_v62, %v2042_v38  ;;  %v3823_v8 = vrot.slane %v3807_v36, 9  ;;  %v2425_v40 = vpop.permute.xlu1 %2424  ;;  %v4199_v9 = vld [vmem:[%s4611_s21 + $0x3c] sm:$0xf] }
 0x1ad   : > { %v2095_v43 = vsel %vm4643_vm2, %v2093_v32, %v2094_v27  ;;  %v3958_v50 = vcombine.low %v2036_v21, %v2039_v28  ;;  %v2046_v5 = vsel %vm4643_vm2, %v2044_v6, %v2045_v42  ;;  %v2100_v3 = vrot.slane %v2098_v7, 4 }
 0x1ae   : > { %v3966_v12 = vcombine.low %v2092_v33, %v2095_v43  ;;  %v3959_v52 = vcombine.low %v2043_v15, %v2046_v5  ;;  %v3840_v27 = vcombine.low %v5789_v39, %v5792_v0  ;;  %v3832_v49 = vcombine.low %v5831_v29, %v5834_v55 }
 0x1af   : > { %3983 = vmatprep.mubr.msk.bf16.mxu0 %vm2814_vm6, %v3958_v50  ;;  %v3816_v41 = vrot.slane %v3800_v19, 9  ;;  %v2099_v4 = vsel %vm4643_vm2, %v3823_v8, %v2098_v7  ;;  %v2102_v24 = vsel %vm4643_vm2, %v2100_v3, %v2101_v60  ;;  %v2049_v31 = vrot.slane %v5972_v61, 5 }
 0x1b0   : > { %3991 = vmatprep.mubr.msk.bf16.mxu1 %vm2814_vm6, %v3966_v12  ;;  %v2052_v44 = vrot.slane %v5995_v48, 5  ;;  %v3967_v34 = vcombine.low %v2099_v4, %v2102_v24  ;;  %v3824_v14 = vrot.slane %v3808_v63, 9  ;;  %v2105_v45 = vrot.slane %v5961_v22, 5  ;;  %v4203_v24 = vld [vmem:[%s4611_s21 + $0x48] sm:$0xf] }
 0x1b1   : > { %v6154_v11 = vsel %vm4643_vm2, %v3816_v41, %v2049_v31  ;;  %v2051_v7 = vrot.slane %v2049_v31, 4  ;;  %v2108_v18 = vrot.slane %v5986_v23, 5  ;;  %v2505_v47 = vpop.permute.xlu1 %2504  ;;  %v3838_v10 = vcombine.low %v4197_v26, %v4198_v46  ;;  %v4201_v41 = vld [vmem:[%s4611_s21 + $0xa8] sm:$0xf]  ;;  %v4204_v31 = vld [vmem:[%s4611_s21 + $0x4c] sm:$0xf] }
 0x1b2   : > { %v6159_v61 = vsel %vm4643_vm2, %v3824_v14, %v2105_v45  ;;  %v2107_v48 = vrot.slane %v2105_v45, 4  ;;  %v2489_v57 = vpop.permute.xlu0 %2488  ;;  %v3830_v16 = vcombine.low %v4199_v9, %v4200_v1 }
 0x1b3   : > { %v6163_v38 = vsel %vm4643_vm2, %v2051_v7, %v2052_v44  ;;  %v2856_v59 = vsel %vm2814_vm6, %v3838_v10, %v6077_v35  ;;  %v3831_v44 = vcombine.low %v4203_v24, %v4204_v31 }
 0x1b4   : > { %v3960_v22 = vcombine.low %v6154_v11, %v6163_v38  ;;  %v6169_v54 = vsel %vm4643_vm2, %v2107_v48, %v2108_v18  ;;  %v2832_v30 = vsel %vm2814_vm6, %v3830_v16, %v6099_v51  ;;  %v2891_v53 = vsel %vm2863_vm7, %v2856_v59, %v2329_v2 }
 0x1b5   : > { %v3968_v23 = vcombine.low %v6159_v61, %v6169_v54  ;;  %v2585_v20 = vpop.permute.xlu1 %2584  ;;  %v2875_v32 = vsel %vm2863_vm7, %v2832_v30, %v2313_v13  ;;  %v2924_v60 = vsel %vm2896_vm8, %v2891_v53, %v2425_v40  ;;  %v4202_v40 = vld [vmem:[%s4611_s21 + $0xac] sm:$0xf]  ;;  %s4392_s21 = smov [#allocation8]  }
 0x1b6   : > { %v2569_v42 = vpop.permute.xlu0 %2568  ;;  %v2908_v25 = vsel %vm2896_vm8, %v2875_v32, %v2409_v37  ;;  %v2957_v21 = vsel %vm2929_vm9, %v2924_v60, %v2505_v47  ;;  %v3839_v4 = vcombine.low %v4201_v41, %v4202_v40  ;;  %v3358_v60 = vld [vmem:[#allocation7] sm:$0x3]  ;;  %s4295_s20 = sshll.u32 %s4392_s21, 4  ;;  %s4296_s20 = int_to_ptr.vmem [resolvable:$false] %s4295_s20 }
 0x1b7   : > { %v2941_v62 = vsel %vm2929_vm9, %v2908_v25, %v2489_v57  ;;  %v2990_v36 = vsel %vm2962_vm10, %v2957_v21, %v2585_v20  ;;  %s4297_s22 = scalar_lea.vmem %s4296_s20, 8192  ;;  %p4298_p3 = scmp.lt.s32.totalorder %s6348_s26, %s4296_s20 }
 0x1b8   : > { %v2974_v35 = vsel %vm2962_vm10, %v2941_v62, %v2569_v42  ;;  %p4299_p5 = scmp.lt.s32.totalorder %s4297_s22, %s4291_s7 }
 0x1b9   : > { %v2681_v56 = vpop.permute.xlu1 %2680 }
 0x1ba   : > { %v2665_v17 = vpop.permute.xlu0 %2664  ;;  %v3023_v28 = vsel %vm2995_vm11, %v2990_v36, %v2681_v56  ;;  %v3359_v56 = vlaneseq  ;;  %p4300_p9 = por %p4299_p5, %p4298_p3 }
 0x1bb   : > { %v3007_v51 = vsel %vm2995_vm11, %v2974_v35, %v2665_v17 }
 0x1bc   : > { %v3360_v17 = vshrl.u32 %v3359_v56, 7  ;;  %p4301_p2 = pnand %p4300_p9, %p4294_p10 }
 0x1be   : > { %v3361_v53 = vsub.s32 0, %v3360_v17  ;;  %v3397_v25 = vsub.s32 1, %v3360_v17 }
 0x1c0   : > { %v2761_v58 = vpop.permute.xlu1 %2760  ;;  %v6221_v62 = vrot.slane %v3358_v60, %v3361_v53  ;;  %v6223_v54 = vrot.slane %v3358_v60, %v3397_v25 }
 0x1c1   : > { %v2745_v2 = vpop.permute.xlu0 %2744  ;;  %v3069_v13 = vsel %vm3028_vm12, %v3023_v28, %v2761_v58 }
 0x1c2   : > { %v3045_v33 = vsel %vm3028_vm12, %v3007_v51, %v2745_v2  ;;  %3334 = vmatmul.mubr.bf16.gmra.mrb[20].mxu1 %v3069_v13 }
 0x1c3   : > { %3270 = vmatmul.mubr.bf16.gmra.mrb[20].mxu0 %v3045_v33  ;;  %3992 = vmatprep.mubr.msk.bf16.mxu1 %vm2814_vm6, %v3967_v34 }
 0x1c4   : > { %3984 = vmatprep.mubr.msk.bf16.mxu0 %vm2814_vm6, %v3959_v52 }
 0x1c8   : > { %v2251_v43 = vpop.permute.xlu1 %2250 }
 0x1c9   : > { %v2859_v34 = vsel %vm2814_vm6, %v3839_v4, %v2251_v43 }
 0x1cd   : > { %v2235_v6 = vpop.permute.xlu0 %2234 }
 0x1ce   : > { %v2331_v19 = vpop.permute.xlu1 %2330  ;;  %v2835_v14 = vsel %vm2814_vm6, %v3831_v44, %v2235_v6 }
 0x1cf   : > { %v2893_v45 = vsel %vm2863_vm7, %v2859_v34, %v2331_v19 }
 0x1d1   : > { %v2315_v50 = vpop.permute.xlu0 %2314 }
 0x1d2   : > { %v2427_v12 = vpop.permute.xlu1 %2426  ;;  %v2877_v7 = vsel %vm2863_vm7, %v2835_v14, %v2315_v50 }
 0x1d3   : > { %v2926_v18 = vsel %vm2896_vm8, %v2893_v45, %v2427_v12 }
 0x1d5   : > { %v2411_v15 = vpop.permute.xlu0 %2410 }
 0x1d6   : > { %v2910_v48 = vsel %vm2896_vm8, %v2877_v7, %v2411_v15 }
 0x1da   : > { %v2507_v5 = vpop.permute.xlu1 %2506 }
 0x1db   : > { %v2491_v8 = vpop.permute.xlu0 %2490  ;;  %v2959_v47 = vsel %vm2929_vm9, %v2926_v18, %v2507_v5 }
 0x1dc   : > { %v2943_v57 = vsel %vm2929_vm9, %v2910_v48, %v2491_v8 }
 0x1de   : > { %v2587_v3 = vpop.permute.xlu1 %2586 }
 0x1df   : > { %v2571_v63 = vpop.permute.xlu0 %2570  ;;  %v2992_v20 = vsel %vm2962_vm10, %v2959_v47, %v2587_v3 }
 0x1e0   : > { %v2976_v42 = vsel %vm2962_vm10, %v2943_v57, %v2571_v63 }
 0x1e2   : > { %v2683_v37 = vpop.permute.xlu1 %2682 }
 0x1e3   : > { %v2667_v52 = vpop.permute.xlu0 %2666  ;;  %v3025_v26 = vsel %vm2995_vm11, %v2992_v20, %v2683_v37 }
 0x1e4   : > { %v3009_v10 = vsel %vm2995_vm11, %v2976_v42, %v2667_v52 }
 0x1e9   : > { %v2763_v46 = vpop.permute.xlu1 %2762 }
 0x1ea   : > { %v3072_v1 = vsel %vm3028_vm12, %v3025_v26, %v2763_v46 }
 0x1eb   : > { %v2747_v9 = vpop.permute.xlu0 %2746  ;;  %3342 = vmatmul.mubr.bf16.gmra.mrb[24].mxu1 %v3072_v1 }
 0x1ec   : > { %v3048_v16 = vsel %vm3028_vm12, %v3009_v10, %v2747_v9  ;;  %3993 = vmatprep.mubr.msk.bf16.mxu1 %vm2814_vm6, %v3968_v23 }
 0x1ed   : > { %3278 = vmatmul.mubr.bf16.gmra.mrb[24].mxu0 %v3048_v16 }
 0x1ee   : > { %3985 = vmatprep.mubr.msk.bf16.mxu0 %vm2814_vm6, %v3960_v22 }
 0x1f2   : > { %v2253_v59 = vpop.permute.xlu1 %2252 }
 0x1f3   : > { %v2862_v24 = vsel %vm2814_vm6, %v3840_v27, %v2253_v59 }
 0x1f6   : > { %v2237_v30 = vpop.permute.xlu0 %2236 }
 0x1f7   : > { %v2838_v34 = vsel %vm2814_vm6, %v3832_v49, %v2237_v30 }
 0x1f8   : > { %v2333_v32 = vpop.permute.xlu1 %2332 }
 0x1f9   : > { %v2895_v44 = vsel %vm2863_vm7, %v2862_v24, %v2333_v32 }
 0x1fa   : > { %v2317_v21 = vpop.permute.xlu0 %2316 }
 0x1fb   : > { %v2879_v14 = vsel %vm2863_vm7, %v2838_v34, %v2317_v21 }
 0x1fc   : > { %v2429_v61 = vpop.permute.xlu1 %2428 }
 0x1fd   : > { %v3231_v36 = vpop.f32.mrb[0].mxu0  ;;  %v2928_v52 = vsel %vm2896_vm8, %v2895_v44, %v2429_v61 }
 0x1fe   : > { %v2413_v23 = vpop.permute.xlu0 %2412  ;;  %v3363_v11 = vmul.f32 %v6221_v62, %v3231_v36  ;;  %v3295_v38 = vpop.f32.mrb[0].mxu1 }
 0x1ff   : > { %v3233_v22 = vpop.f32.mrb[1].mxu0  ;;  %v3379_v35 = vmul.f32 %v6221_v62, %v3295_v38  ;;  %v3297_v28 = vpop.f32.mrb[1].mxu1  ;;  %v2912_v7 = vsel %vm2896_vm8, %v2879_v14, %v2413_v23 }
 0x200   : > { %v3234_v58 = vpop.f32.mrb[2].mxu0  ;;  %v3399_v51 = vadd.f32 %v6223_v54, %v3363_v11  ;;  %v3298_v13 = vpop.f32.mrb[2].mxu1 }
 0x201   : > { %v3364_v2 = vmul.f32 %v6221_v62, %v3234_v58  ;;  %v3236_v33 = vpop.f32.mrb[3].mxu0  ;;  %v3415_v43 = vadd.f32 %v6223_v54, %v3379_v35  ;;  %v3380_v6 = vmul.f32 %v6221_v62, %v3298_v13  ;;  %v3300_v19 = vpop.f32.mrb[3].mxu1 }
 0x202   : > { %v3431_v50 = vmax.f32 %v3399_v51, 0.0 }
 0x203   : > { %v3400_v12 = vadd.f32 %v6223_v54, %v3364_v2  ;;  %v3447_v5 = vmax.f32 %v3415_v43, 0.0  ;;  %v3416_v8 = vadd.f32 %v6223_v54, %v3380_v6 }
 0x204   : > { %v2509_v15 = vpop.permute.xlu1 %2508  ;;  %3463 = vst [vmem:[%s6234_s10] sm:$0xff] %v3431_v50 }
 0x205   : > { %v2493_v3 = vpop.permute.xlu0 %2492  ;;  %v3432_v63 = vmax.f32 %v3400_v12, 0.0  ;;  %3479 = vst [vmem:[%s6234_s10 + $0x80] sm:$0xff] %v3447_v5  ;;  %v3448_v41 = vmax.f32 %v3416_v8, 0.0  ;;  %v2961_v45 = vsel %vm2929_vm9, %v2928_v52, %v2509_v15 }
 0x206   : > { %v2945_v0 = vsel %vm2929_vm9, %v2912_v7, %v2493_v3 }
 0x207   : > { %3464 = vst [vmem:[%s6234_s10 + $0x8] sm:$0xff] %v3432_v63  ;;  %3480 = vst [vmem:[%s6234_s10 + $0x88] sm:$0xff] %v3448_v41 }
 0x208   : > { %v2589_v40 = vpop.permute.xlu1 %2588 }
 0x209   : > { %v2573_v4 = vpop.permute.xlu0 %2572  ;;  %v2994_v39 = vsel %vm2962_vm10, %v2961_v45, %v2589_v40 }
 0x20a   : > { %v2978_v48 = vsel %vm2962_vm10, %v2945_v0, %v2573_v4 }
 0x20c   : > { %v2685_v31 = vpop.permute.xlu1 %2684 }
 0x20d   : > { %v2669_v37 = vpop.permute.xlu0 %2668  ;;  %v3027_v27 = vsel %vm2995_vm11, %v2994_v39, %v2685_v31 }
 0x20e   : > { %v3011_v55 = vsel %vm2995_vm11, %v2978_v48, %v2669_v37 }
 0x212   : > { %v2765_v18 = vpop.permute.xlu1 %2764 }
 0x213   : > { %v3075_v29 = vsel %vm3028_vm12, %v3027_v27, %v2765_v18 }
 0x214   : > { %v2749_v49 = vpop.permute.xlu0 %2748  ;;  %3350 = vmatmul.mubr.bf16.gmra.mrb[28].mxu1 %v3075_v29 }
 0x215   : > { %v3051_v47 = vsel %vm3028_vm12, %v3011_v55, %v2749_v49 }
 0x216   : > { %3286 = vmatmul.mubr.bf16.gmra.mrb[28].mxu0 %v3051_v47 }
 0x224   : > { %v3239_v57 = vpop.f32.mrb[4].mxu0 }
 0x225   : > { %v3365_v20 = vmul.f32 %v6221_v62, %v3239_v57  ;;  %v3241_v42 = vpop.f32.mrb[5].mxu0 }
 0x226   : > { %v3303_v26 = vpop.f32.mrb[4].mxu1  ;;  %v3242_v46 = vpop.f32.mrb[6].mxu0 }
 0x227   : > { %v3401_v10 = vadd.f32 %v6223_v54, %v3365_v20  ;;  %v3381_v9 = vmul.f32 %v6221_v62, %v3303_v26  ;;  %v3305_v1 = vpop.f32.mrb[5].mxu1  ;;  %v3366_v16 = vmul.f32 %v6221_v62, %v3242_v46  ;;  %v3244_v56 = vpop.f32.mrb[7].mxu0 }
 0x228   : > { %v3306_v59 = vpop.f32.mrb[6].mxu1 }
 0x229   : > { %v3433_v17 = vmax.f32 %v3401_v10, 0.0  ;;  %v3417_v30 = vadd.f32 %v6223_v54, %v3381_v9  ;;  %v3402_v53 = vadd.f32 %v6223_v54, %v3366_v16  ;;  %v3382_v32 = vmul.f32 %v6221_v62, %v3306_v59  ;;  %v3308_v60 = vpop.f32.mrb[7].mxu1 }
 0x22b   : > { %3465 = vst [vmem:[%s6234_s10 + $0x10] sm:$0xff] %v3433_v17  ;;  %v3449_v25 = vmax.f32 %v3417_v30, 0.0  ;;  %v3434_v21 = vmax.f32 %v3402_v53, 0.0  ;;  %v3418_v61 = vadd.f32 %v6223_v54, %v3382_v32 }
 0x22d   : > { %3481 = vst [vmem:[%s6234_s10 + $0x90] sm:$0xff] %v3449_v25  ;;  %3466 = vst [vmem:[%s6234_s10 + $0x18] sm:$0xff] %v3434_v21  ;;  %v3450_v23 = vmax.f32 %v3418_v61, 0.0 }
 0x22f   : > { %3482 = vst [vmem:[%s6234_s10 + $0x98] sm:$0xff] %v3450_v23 }
 0x24e   : > { %v3247_v36 = vpop.f32.mrb[8].mxu0 }
 0x24f   : > { %v3367_v11 = vmul.f32 %v6221_v62, %v3247_v36  ;;  %v3249_v38 = vpop.f32.mrb[9].mxu0 }
 0x250   : > { %v3311_v22 = vpop.f32.mrb[8].mxu1  ;;  %v3250_v35 = vpop.f32.mrb[10].mxu0 }
 0x251   : > { %v3403_v28 = vadd.f32 %v6223_v54, %v3367_v11  ;;  %v3383_v58 = vmul.f32 %v6221_v62, %v3311_v22  ;;  %v3313_v51 = vpop.f32.mrb[9].mxu1  ;;  %v3368_v2 = vmul.f32 %v6221_v62, %v3250_v35  ;;  %v3252_v13 = vpop.f32.mrb[11].mxu0 }
 0x252   : > { %v3314_v33 = vpop.f32.mrb[10].mxu1 }
 0x253   : > { %v3435_v43 = vmax.f32 %v3403_v28, 0.0  ;;  %v3419_v6 = vadd.f32 %v6223_v54, %v3383_v58  ;;  %v3404_v19 = vadd.f32 %v6223_v54, %v3368_v2  ;;  %v3384_v50 = vmul.f32 %v6221_v62, %v3314_v33  ;;  %v3316_v12 = vpop.f32.mrb[11].mxu1 }
 0x255   : > { %3467 = vst [vmem:[%s6234_s10 + $0x20] sm:$0xff] %v3435_v43  ;;  %v3451_v15 = vmax.f32 %v3419_v6, 0.0  ;;  %v3436_v5 = vmax.f32 %v3404_v19, 0.0  ;;  %v3420_v8 = vadd.f32 %v6223_v54, %v3384_v50 }
 0x257   : > { %3483 = vst [vmem:[%s6234_s10 + $0xa0] sm:$0xff] %v3451_v15  ;;  %3468 = vst [vmem:[%s6234_s10 + $0x28] sm:$0xff] %v3436_v5  ;;  %v3452_v3 = vmax.f32 %v3420_v8, 0.0 }
 0x259   : > { %3484 = vst [vmem:[%s6234_s10 + $0xa8] sm:$0xff] %v3452_v3 }
 0x273   : > { %v3255_v63 = vpop.f32.mrb[12].mxu0 }
 0x274   : > { %v3369_v41 = vmul.f32 %v6221_v62, %v3255_v63  ;;  %v3257_v40 = vpop.f32.mrb[13].mxu0 }
 0x275   : > { %v3258_v4 = vpop.f32.mrb[14].mxu0 }
 0x276   : > { %v3405_v24 = vadd.f32 %v6223_v54, %v3369_v41  ;;  %v3370_v44 = vmul.f32 %v6221_v62, %v3258_v4  ;;  %v3260_v37 = vpop.f32.mrb[15].mxu0 }
 0x277   : > { %v3319_v31 = vpop.f32.mrb[12].mxu1 }
 0x278   : > { %v3385_v34 = vmul.f32 %v6221_v62, %v3319_v31  ;;  %v3321_v52 = vpop.f32.mrb[13].mxu1  ;;  %v3437_v14 = vmax.f32 %v3405_v24, 0.0  ;;  %v3406_v45 = vadd.f32 %v6223_v54, %v3370_v44 }
 0x279   : > { %v3322_v7 = vpop.f32.mrb[14].mxu1 }
 0x27a   : > { %v3421_v39 = vadd.f32 %v6223_v54, %v3385_v34  ;;  %v3386_v0 = vmul.f32 %v6221_v62, %v3322_v7  ;;  %v3324_v27 = vpop.f32.mrb[15].mxu1  ;;  %3469 = vst [vmem:[%s6234_s10 + $0x30] sm:$0xff] %v3437_v14  ;;  %v3438_v18 = vmax.f32 %v3406_v45, 0.0 }
 0x27c   : > { %v3453_v48 = vmax.f32 %v3421_v39, 0.0  ;;  %v3422_v29 = vadd.f32 %v6223_v54, %v3386_v0  ;;  %v3263_v55 = vpop.f32.mrb[16].mxu0  ;;  %3470 = vst [vmem:[%s6234_s10 + $0x38] sm:$0xff] %v3438_v18 }
 0x27d   : > { %v3371_v49 = vmul.f32 %v6221_v62, %v3263_v55  ;;  %v3265_v47 = vpop.f32.mrb[17].mxu0 }
 0x27e   : > { %3485 = vst [vmem:[%s6234_s10 + $0xb0] sm:$0xff] %v3453_v48  ;;  %v3454_v57 = vmax.f32 %v3422_v29, 0.0  ;;  %v3266_v20 = vpop.f32.mrb[18].mxu0 }
 0x27f   : > { %v3407_v42 = vadd.f32 %v6223_v54, %v3371_v49  ;;  %v3327_v26 = vpop.f32.mrb[16].mxu1  ;;  %v3372_v46 = vmul.f32 %v6221_v62, %v3266_v20  ;;  %v3268_v10 = vpop.f32.mrb[19].mxu0 }
 0x280   : > { %3486 = vst [vmem:[%s6234_s10 + $0xb8] sm:$0xff] %v3454_v57  ;;  %v3387_v9 = vmul.f32 %v6221_v62, %v3327_v26  ;;  %v3329_v1 = vpop.f32.mrb[17].mxu1 }
 0x281   : > { %v3439_v16 = vmax.f32 %v3407_v42, 0.0  ;;  %v3408_v56 = vadd.f32 %v6223_v54, %v3372_v46  ;;  %v3330_v59 = vpop.f32.mrb[18].mxu1 }
 0x282   : > { %v3423_v17 = vadd.f32 %v6223_v54, %v3387_v9  ;;  %v3388_v30 = vmul.f32 %v6221_v62, %v3330_v59  ;;  %v3332_v53 = vpop.f32.mrb[19].mxu1 }
 0x283   : > { %3471 = vst [vmem:[%s6234_s10 + $0x40] sm:$0xff] %v3439_v16  ;;  %v3440_v32 = vmax.f32 %v3408_v56, 0.0 }
 0x284   : > { %v3455_v60 = vmax.f32 %v3423_v17, 0.0  ;;  %v3424_v25 = vadd.f32 %v6223_v54, %v3388_v30 }
 0x285   : > { %3472 = vst [vmem:[%s6234_s10 + $0x48] sm:$0xff] %v3440_v32 }
 0x286   : > { %3487 = vst [vmem:[%s6234_s10 + $0xc0] sm:$0xff] %v3455_v60  ;;  %v3456_v21 = vmax.f32 %v3424_v25, 0.0 }
 0x288   : > { %3488 = vst [vmem:[%s6234_s10 + $0xc8] sm:$0xff] %v3456_v21 }
 0x295   : > { %v3335_v61 = vpop.f32.mrb[20].mxu1 }
 0x296   : > { %v3271_v23 = vpop.f32.mrb[20].mxu0  ;;  %v3389_v36 = vmul.f32 %v6221_v62, %v3335_v61  ;;  %v3337_v11 = vpop.f32.mrb[21].mxu1 }
 0x297   : > { %v3373_v38 = vmul.f32 %v6221_v62, %v3271_v23  ;;  %v3273_v22 = vpop.f32.mrb[21].mxu0  ;;  %v3338_v35 = vpop.f32.mrb[22].mxu1 }
 0x298   : > { %v3425_v28 = vadd.f32 %v6223_v54, %v3389_v36  ;;  %v3274_v58 = vpop.f32.mrb[22].mxu0  ;;  %v3390_v51 = vmul.f32 %v6221_v62, %v3338_v35  ;;  %v3340_v2 = vpop.f32.mrb[23].mxu1 }
 0x299   : > { %v3409_v13 = vadd.f32 %v6223_v54, %v3373_v38  ;;  %v3374_v33 = vmul.f32 %v6221_v62, %v3274_v58  ;;  %v3276_v43 = vpop.f32.mrb[23].mxu0 }
 0x29a   : > { %v3457_v6 = vmax.f32 %v3425_v28, 0.0  ;;  %v3426_v19 = vadd.f32 %v6223_v54, %v3390_v51 }
 0x29b   : > { %v3441_v50 = vmax.f32 %v3409_v13, 0.0  ;;  %v3410_v12 = vadd.f32 %v6223_v54, %v3374_v33 }
 0x29c   : > { %3489 = vst [vmem:[%s6234_s10 + $0xd0] sm:$0xff] %v3457_v6  ;;  %v3458_v15 = vmax.f32 %v3426_v19, 0.0 }
 0x29d   : > { %3473 = vst [vmem:[%s6234_s10 + $0x50] sm:$0xff] %v3441_v50  ;;  %v3442_v5 = vmax.f32 %v3410_v12, 0.0 }
 0x29e   : > { %3490 = vst [vmem:[%s6234_s10 + $0xd8] sm:$0xff] %v3458_v15 }
 0x29f   : > { %3474 = vst [vmem:[%s6234_s10 + $0x58] sm:$0xff] %v3442_v5 }
 0x2be   : > { %v3343_v8 = vpop.f32.mrb[24].mxu1 }
 0x2bf   : > { %v3391_v63 = vmul.f32 %v6221_v62, %v3343_v8  ;;  %v3345_v41 = vpop.f32.mrb[25].mxu1 }
 0x2c0   : > { %v3279_v3 = vpop.f32.mrb[24].mxu0  ;;  %v3346_v24 = vpop.f32.mrb[26].mxu1 }
 0x2c1   : > { %v3375_v40 = vmul.f32 %v6221_v62, %v3279_v3  ;;  %v3281_v4 = vpop.f32.mrb[25].mxu0  ;;  %v3427_v31 = vadd.f32 %v6223_v54, %v3391_v63  ;;  %v3392_v37 = vmul.f32 %v6221_v62, %v3346_v24  ;;  %v3348_v34 = vpop.f32.mrb[27].mxu1 }
 0x2c2   : > { %v3282_v44 = vpop.f32.mrb[26].mxu0 }
 0x2c3   : > { %v3411_v52 = vadd.f32 %v6223_v54, %v3375_v40  ;;  %v3376_v14 = vmul.f32 %v6221_v62, %v3282_v44  ;;  %v3284_v45 = vpop.f32.mrb[27].mxu0  ;;  %v3459_v7 = vmax.f32 %v3427_v31, 0.0  ;;  %v3428_v39 = vadd.f32 %v6223_v54, %v3392_v37 }
 0x2c5   : > { %v3443_v0 = vmax.f32 %v3411_v52, 0.0  ;;  %v3412_v27 = vadd.f32 %v6223_v54, %v3376_v14  ;;  %3491 = vst [vmem:[%s6234_s10 + $0xe0] sm:$0xff] %v3459_v7  ;;  %v3460_v18 = vmax.f32 %v3428_v39, 0.0 }
 0x2c7   : > { %3475 = vst [vmem:[%s6234_s10 + $0x60] sm:$0xff] %v3443_v0  ;;  %v3444_v48 = vmax.f32 %v3412_v27, 0.0  ;;  %3492 = vst [vmem:[%s6234_s10 + $0xe8] sm:$0xff] %v3460_v18 }
 0x2c9   : > { %3476 = vst [vmem:[%s6234_s10 + $0x68] sm:$0xff] %v3444_v48 }
 0x2e7   : > { %v3351_v29 = vpop.f32.mrb[28].mxu1 }
 0x2e8   : > { %v3393_v55 = vmul.f32 %v6221_v62, %v3351_v29  ;;  %v3353_v49 = vpop.f32.mrb[29].mxu1 }
 0x2e9   : > { %v3287_v47 = vpop.f32.mrb[28].mxu0  ;;  %v3354_v57 = vpop.f32.mrb[30].mxu1 }
 0x2ea   : > { %v3377_v20 = vmul.f32 %v6221_v62, %v3287_v47  ;;  %v3429_v42 = vadd.f32 %v6223_v54, %v3393_v55  ;;  %v3289_v26 = vpop.f32.mrb[29].mxu0  ;;  %v3394_v46 = vmul.f32 %v6221_v62, %v3354_v57  ;;  %v3356_v10 = vpop.f32.mrb[31].mxu1 }
 0x2eb   : > { %v3290_v9 = vpop.f32.mrb[30].mxu0 }
 0x2ec   : > { %v3413_v1 = vadd.f32 %v6223_v54, %v3377_v20  ;;  %v3461_v16 = vmax.f32 %v3429_v42, 0.0  ;;  %v3378_v56 = vmul.f32 %v6221_v62, %v3290_v9  ;;  %v3430_v59 = vadd.f32 %v6223_v54, %v3394_v46  ;;  %v3292_v17 = vpop.f32.mrb[31].mxu0 }
 0x2ee   : > { %v3445_v30 = vmax.f32 %v3413_v1, 0.0  ;;  %3493 = vst [vmem:[%s6234_s10 + $0xf0] sm:$0xff] %v3461_v16  ;;  %v3414_v53 = vadd.f32 %v6223_v54, %v3378_v56  ;;  %v3462_v32 = vmax.f32 %v3430_v59, 0.0 }
 0x2f0   : > { %3477 = vst [vmem:[%s6234_s10 + $0x70] sm:$0xff] %v3445_v30  ;;  %v3446_v62 = vmax.f32 %v3414_v53, 0.0  ;;  %3494 = vst [vmem:[%s6234_s10 + $0xf8] sm:$0xff] %v3462_v32 }
 0x2f2   : > { %3478 = vst [vmem:[%s6234_s10 + $0x78] sm:$0xff] %v3446_v62 }
 0x2f3   : > { %4304 = shalt.err (!%p4301_p2)
}
 0x2f4   : > { %s4305_s24 = scalar_lea.hbm %s6346_s6, 4096  ;;  %s4309_s4 = scalar_lea.hbm %s6403_s3, 8192 }
 0x2f5   : > { %p4306_p0 = scmp.ne.s32.totalorder %s6346_s6, %s4305_s24  ;;  %p4310_p6 = scmp.lt.u32.totalorder %s6346_s6, %s6403_s3 }
 0x2f6   : > { %p4311_p7 = scmp.lt.u32.totalorder %s4309_s4, %s4305_s24  ;;  %p4313_p8 = scmp.lt.u32.totalorder %s4305_s24, %s6346_s6 }
 0x2f7   : > { %p4307_p4 = pnand %p4306_p0, %p6456_p12 }
 0x2f8   : > { %p4312_p11 = por %p4311_p7, %p4310_p6 }
 0x2f9   : > { %p4308_p13 = pneg %p4307_p4 }
 0x2fa   : > { %p4314_p1 = por %p4313_p8, %p4312_p11 }
 0x2fc   : > { %p4315_p10 = pnand %p4314_p1, %p4308_p13 }
 0x2fe   : > { %4318 = shalt.err (!%p4315_p10)
}
 0x2ff   : > { %s4393_s10 = smov 128   ;;  %s4394_s30 = smov 8  }
 0x300   : > { %4031 = dma.vmem_to_hbm [thread:$0]  (%p6456_p12), %s6348_s26, 4096, %s6346_s6, %s3496_s15, %s4393_s10, %s4393_s10, %s4394_s30  }
 0x301 PF: > { %s3529_s25 = sand.u32 1, %s4357_s12   ;;  %p6457_p3 = scmp.ne.s32.totalorder %s6415_s23, 0 }
 0x302   : > { %p6458_p5 = scmp.ge.s32.totalorder %s4377_s17, 2  ;;  %s3530_s29 = scalar_lea.sflag [#allocation4], %s3529_s25 }
 0x304   : > { %p4045_p9 = pnand %p6458_p5, %p6457_p3 }
 0x306   : > { %4352 = dma.done.wait (!%p4045_p9), %s3530_s29, 4096  }
 0x307   : > { %4354 = vsyncadd (!%p4045_p9), %s3530_s29, 4294963200  ;;  %s20_s17 = sadd.s32 1, %s4377_s17   ;;  %s6459_s12 = smov %s4361_s13 }
 0x308   : > { %p17_p2 = scmp.ge.s32.totalorder %s20_s17, 4   ;;  %s6460_s13 = smov %s4365_s14 }
 0x309   : > { %s6461_s14 = smov %s4563_s5  ;;  %s6462_s15 = smov %s4373_s16 }
 0x30a   : > { %s6463_s16 = smov %s6465_s19  ;;  %19 = sbr.rel (!%p17_p2) target bundleno = 7 (0x7), region = 89 }
 0x311   :  { %3535 = vsyncpa [#allocation3], 1 }
 0x312   :  { %3537 = vsyncpa [#allocation3 + $0x1], 1 }
 0x313   :  { %3538 = vsyncpa [#allocation6], 1 }
 0x314   :  { %3539 = vsyncpa [#allocation4], 1 }
 0x315   :  { %3541 = vsyncpa [#allocation4 + $0x1], 1 }

</bundles_post_ra>
